<compile_context>
chip_gen: v7x
topology: tpu7x:2x2x1
jax: 0.10.0
libtpu: 0.0.40
codegen_flags: <defaults>
</compile_context>

<pallas_src>
import functools
import math

import jax
import jax.numpy as jnp
from jax.experimental import pallas as pl
from jax.experimental.pallas import tpu as pltpu


_VMEM_LIMIT = 32 * 1024 * 1024   # safe on v5e/v6e (128 MiB physical) and v7x (64 MiB)


def _round_up(a, b):
    return (a + b - 1) // b * b


# ----------------------------------------------------------------------------
# Pallas kernels
# ----------------------------------------------------------------------------

def _conv_bn_relu_kernel(x_ref, w_ref, s_ref, b_ref, o_ref, *, kh, kw, th, wo, relu):
    """Direct (im2col-free) conv + folded BN + ReLU for stride=1.

    x_ref: (Hp, Wp, Cin)     whole padded image, resident in VMEM per batch element (bf16)
    w_ref: (kh*kw, Cin, tn)  weight taps (bf16)
    s_ref, b_ref: (1, tn)    folded BN scale / shift (f32)
    o_ref: (th, wo, tn)      output tile (lane-dense: full wo rows x tn channels)
    """
    i = pl.program_id(2)                      # output-row tile index
    h0 = i * th
    cin = x_ref.shape[-1]
    tn = o_ref.shape[-1]

    acc = jnp.zeros((th * wo, tn), jnp.float32)
    for t in range(kh * kw):                  # taps unrolled; reduction stays in-kernel
        di, dj = divmod(t, kw)
        xw = x_ref[pl.ds(h0 + di, th), pl.ds(dj, wo), :]          # (th, wo, cin) bf16
        acc = acc + jnp.dot(xw.reshape(th * wo, cin), w_ref[t],
                            preferred_element_type=jnp.float32)

    y = acc * s_ref[...] + b_ref[...]
    if relu:
        y = jnp.maximum(y, 0.0)
    o_ref[...] = y.reshape(th, wo, tn).astype(o_ref.dtype)


def _mm_bn_kernel(x_ref, w_ref, s_ref, b_ref, o_ref, acc_ref, *, relu):
    """out = relu((x @ w) * scale + shift), f32 accumulator (im2col fallback path)."""
    @pl.when(pl.program_id(2) == 0)
    def _():
        acc_ref[...] = jnp.zeros_like(acc_ref)

    acc_ref[...] += jnp.dot(x_ref[...], w_ref[...],
                            preferred_element_type=jnp.float32)

    @pl.when(pl.program_id(2) == pl.num_programs(2) - 1)
    def _():
        y = acc_ref[...] * s_ref[...] + b_ref[...]
        if relu:
            y = jnp.maximum(y, 0.0)
        o_ref[...] = y.astype(o_ref.dtype)


# ----------------------------------------------------------------------------
# Wrappers
# ----------------------------------------------------------------------------

def _pick_cout_tile(cout):
    if cout <= 256:
        return cout
    for tn in (256, 128):
        if cout % tn == 0:
            return tn
    return cout


def _pick_row_tile(ho, wo):
    """Largest divisor of Ho such that one output tile is ~<=2048 rows of the matmul."""
    target = max(1, 2048 // max(wo, 1))
    best = 1
    for th in range(1, ho + 1):
        if ho % th == 0 and th <= target:
            best = th
    return best


def _conv_bn_direct(x, w, scale, shift, pad, relu, out_dtype):
    """Fused stride-1 conv + BN + ReLU; no im2col materialization, no M/N padding."""
    N, H, W, cin = x.shape
    kh, kw, _, cout = w.shape
    Hp, Wp = H + 2 * pad, W + 2 * pad
    Ho, Wo = Hp - kh + 1, Wp - kw + 1
    xp = jnp.pad(x, ((0, 0), (pad, pad), (pad, pad), (0, 0))) if pad else x

    w_taps = w.reshape(kh * kw, cin, cout)                      # bf16
    s2 = scale.reshape(1, cout).astype(jnp.float32)
    b2 = shift.reshape(1, cout).astype(jnp.float32)

    tn = _pick_cout_tile(cout)
    th = _pick_row_tile(Ho, Wo)
    grid = (N, cout // tn, Ho // th)                            # all parallel

    kern = functools.partial(_conv_bn_relu_kernel,
                             kh=kh, kw=kw, th=th, wo=Wo, relu=relu)
    return pl.pallas_call(
        kern,
        out_shape=jax.ShapeDtypeStruct((N, Ho, Wo, cout), out_dtype),
        grid_spec=pltpu.PrefetchScalarGridSpec(
            num_scalar_prefetch=0,
            grid=grid,
            in_specs=[
                # whole padded image: same block index across (j, i) -> DMA'd once per n
                pl.BlockSpec((None, Hp, Wp, cin), lambda n, j, i: (n, 0, 0, 0)),
                pl.BlockSpec((kh * kw, cin, tn), lambda n, j, i: (0, 0, j)),
                pl.BlockSpec((1, tn), lambda n, j, i: (0, j)),
                pl.BlockSpec((1, tn), lambda n, j, i: (0, j)),
            ],
            out_specs=pl.BlockSpec((None, th, Wo, tn), lambda n, j, i: (n, i, 0, j)),
        ),
        compiler_params=pltpu.CompilerParams(
            dimension_semantics=("parallel", "parallel", "parallel"),
            vmem_limit_bytes=_VMEM_LIMIT),
    )(xp, w_taps, s2, b2)


def _im2col(x, kh, kw, stride, pad):
    """x: (N,H,W,C) bf16 -> patches (N*Ho*Wo, kh*kw*C). Used only for stride > 1."""
    N, H, W, C = x.shape
    xp = jnp.pad(x, ((0, 0), (pad, pad), (pad, pad), (0, 0))) if pad else x
    Ho = (H + 2 * pad - kh) // stride + 1
    Wo = (W + 2 * pad - kw) // stride + 1
    cols = [xp[:, i:i + stride * Ho:stride, j:j + stride * Wo:stride, :]
            for i in range(kh) for j in range(kw)]
    patches = jnp.concatenate(cols, axis=-1)
    return patches.reshape(N * Ho * Wo, kh * kw * C), (N, Ho, Wo)


def _matmul_bn(x, w, scale, shift, relu, out_dtype):
    """relu((x @ w) * scale + shift) via a tiled Pallas MXU kernel (bf16 operands)."""
    M, K = x.shape
    N = w.shape[1]
    tm = min(512, _round_up(M, 8))
    tn = min(256, _round_up(N, 128))
    tk = min(512, _round_up(K, 128))
    Mp, Kp, Np = _round_up(M, tm), _round_up(K, tk), _round_up(N, tn)

    xp = jnp.pad(x, ((0, Mp - M), (0, Kp - K)))
    wp = jnp.pad(w, ((0, Kp - K), (0, Np - N)))
    sp = jnp.pad(scale.reshape(1, -1).astype(jnp.float32), ((0, 0), (0, Np - N)))
    bp = jnp.pad(shift.reshape(1, -1).astype(jnp.float32), ((0, 0), (0, Np - N)))

    out = pl.pallas_call(
        functools.partial(_mm_bn_kernel, relu=relu),
        out_shape=jax.ShapeDtypeStruct((Mp, Np), out_dtype),
        grid_spec=pltpu.PrefetchScalarGridSpec(
            num_scalar_prefetch=0,
            grid=(Mp // tm, Np // tn, Kp // tk),
            in_specs=[
                pl.BlockSpec((tm, tk), lambda i, j, k: (i, k)),
                pl.BlockSpec((tk, tn), lambda i, j, k: (k, j)),
                pl.BlockSpec((1, tn), lambda i, j, k: (0, j)),
                pl.BlockSpec((1, tn), lambda i, j, k: (0, j)),
            ],
            out_specs=pl.BlockSpec((tm, tn), lambda i, j, k: (i, j)),
            scratch_shapes=[pltpu.VMEM((tm, tn), jnp.float32)],
        ),
        compiler_params=pltpu.CompilerParams(
            dimension_semantics=("parallel", "parallel", "arbitrary"),
            vmem_limit_bytes=_VMEM_LIMIT),
    )(xp, wp, sp, bp)
    return out[:M, :N]


def basic_conv2d_nhwc(x, params, *, stride=1, padding=0, relu=True,
                      out_dtype=jnp.float32):
    """Conv2d(bias=False) + folded inference BatchNorm(eps=1e-3) + ReLU, NHWC."""
    w = params["w"].astype(jnp.bfloat16)                 # (kh, kw, cin, cout)
    scale, shift = params["scale"], params["shift"]
    kh, kw, cin, cout = w.shape
    assert x.shape[-1] == cin
    xb = x.astype(jnp.bfloat16)

    if stride == 1:
        return _conv_bn_direct(xb, w, scale, shift, padding, relu, out_dtype)

    # TODO(synk): strided convs use a bf16 im2col fallback instead of a fully fused
    # window-gather kernel (stride-1, the common BasicConv2d case, is im2col-free).
    patches, (N, Ho, Wo) = _im2col(xb, kh, kw, stride, padding)
    w_mat = w.reshape(kh * kw * cin, cout)
    y = _matmul_bn(patches, w_mat, scale, shift, relu, out_dtype)
    return y.reshape(N, Ho, Wo, cout)


def basic_conv2d_forward(x_nchw, params, *, stride=1, padding=0,
                         out_dtype=jnp.float32):
    """PyTorch BasicConv2d.forward: conv -> bn -> relu. Takes/returns NCHW."""
    # TODO(synk): BatchNorm is evaluated in inference mode (running stats folded into
    # per-channel scale/shift); training-mode batch statistics are not modeled.
    x = jnp.transpose(x_nchw, (0, 2, 3, 1))              # NCHW -> NHWC
    y = basic_conv2d_nhwc(x, params, stride=stride, padding=padding,
                          relu=True, out_dtype=out_dtype)
    return jnp.transpose(y, (0, 3, 1, 2))                # NHWC -> NCHW


# ----------------------------------------------------------------------------
# Deterministic parameter construction + pure-JAX reference (for verification)
# ----------------------------------------------------------------------------

def make_basic_conv2d_params(key, cin, cout, ksize, eps=1e-3):
    k_w, k_g, k_b, k_m, k_v = jax.random.split(key, 5)
    w_oihw = jax.random.normal(k_w, (cout, cin, ksize, ksize), jnp.float32)
    w_oihw = w_oihw / math.sqrt(cin * ksize * ksize)
    gamma = 1.0 + 0.1 * jax.random.normal(k_g, (cout,), jnp.float32)
    beta = 0.1 * jax.random.normal(k_b, (cout,), jnp.float32)
    mean = 0.1 * jax.random.normal(k_m, (cout,), jnp.float32)
    var = 0.5 + jax.random.uniform(k_v, (cout,), jnp.float32)
    scale = gamma / jnp.sqrt(var + eps)
    shift = beta - mean * scale
    return {"w": jnp.transpose(w_oihw, (2, 3, 1, 0)),    # OIHW -> HWIO
            "scale": scale, "shift": shift}


def _reference_nchw(x_nchw, params, stride, padding):
    """Pure-JAX reference with the same bf16-rounded operands (f32 accumulation)."""
    x = jnp.transpose(x_nchw, (0, 2, 3, 1)).astype(jnp.bfloat16).astype(jnp.float32)
    w = params["w"].astype(jnp.bfloat16).astype(jnp.float32)
    y = jax.lax.conv_general_dilated(
        x, w, window_strides=(stride, stride),
        padding=((padding, padding), (padding, padding)),
        dimension_numbers=("NHWC", "HWIO", "NHWC"))
    y = y * params["scale"][None, None, None, :] + params["shift"][None, None, None, :]
    y = jnp.maximum(y, 0.0)
    return jnp.transpose(y, (0, 3, 1, 2))


# ----------------------------------------------------------------------------

if __name__ == "__main__":
    key = jax.random.PRNGKey(0)
    kp3, kp1, kx = jax.random.split(key, 3)

    N, Cin, H, W, Cout = 2, 16, 16, 16, 128
    p3 = make_basic_conv2d_params(kp3, Cin, Cout, 3)   # BasicConv2d(16,128,kernel_size=3,padding=1)
    p1 = make_basic_conv2d_params(kp1, Cin, Cout, 1)   # BasicConv2d(16,128,kernel_size=1)
    x = jax.random.normal(kx, (N, Cin, H, W), jnp.float32)

    @jax.jit
    def fwd(x, p3, p1):
        y_a = basic_conv2d_forward(x, p3, stride=1, padding=1)   # fused direct-conv kernel
        y_b = basic_conv2d_forward(x, p1, stride=1, padding=0)   # fused direct-conv kernel (1x1)
        y_c = basic_conv2d_forward(x, p3, stride=2, padding=1)   # bf16 im2col fallback kernel
        return y_a, y_b, y_c

    y_a, y_b, y_c = jax.block_until_ready(fwd(x, p3, p1))

    assert y_a.shape == (N, Cout, H, W) and y_a.dtype == jnp.float32
    assert y_b.shape == (N, Cout, H, W) and y_b.dtype == jnp.float32
    assert y_c.shape == (N, Cout, H // 2, W // 2) and y_c.dtype == jnp.float32

    refs = (_reference_nchw(x, p3, 1, 1),
            _reference_nchw(x, p1, 1, 0),
            _reference_nchw(x, p3, 2, 1))
    for y, r in zip((y_a, y_b, y_c), refs):
        assert bool(jnp.all(jnp.isfinite(y)))
        err = float(jnp.max(jnp.abs(y - r)))
        assert err < 2e-2, f"max abs error {err}"

    print("KERNEL_OK")
</pallas_src>

<mosaic_0001>
module attributes {stable_mosaic.version = 11 : i64} {
  func.func @_conv_bn_relu_kernel(%arg0: i32, %arg1: i32, %arg2: i32, %arg3: memref<1x18x18x16xbf16, #tpu.memory_space<vmem>>, %arg4: memref<9x16x128xbf16, #tpu.memory_space<vmem>>, %arg5: memref<1x128xf32, #tpu.memory_space<vmem>>, %arg6: memref<1x128xf32, #tpu.memory_space<vmem>>, %arg7: memref<1x16x16x128xf32, #tpu.memory_space<vmem>>) attributes {dimension_semantics = [#tpu.dimension_semantics<parallel>, #tpu.dimension_semantics<parallel>, #tpu.dimension_semantics<parallel>], iteration_bounds = array<i64: 2, 1, 1>, scalar_prefetch = 0 : i64, scratch_operands = 0 : i64, tpu.core_type = #tpu.core_type<tc>, window_params = [{transform_indices = @transform_0, window_bounds = array<i64: 1, 18, 18, 16>}, {transform_indices = @transform_1, window_bounds = array<i64: 9, 16, 128>}, {transform_indices = @transform_2, window_bounds = array<i64: 1, 128>}, {transform_indices = @transform_3, window_bounds = array<i64: 1, 128>}, {transform_indices = @transform_4, window_bounds = array<i64: 1, 16, 16, 128>}]} {
    %c16_i32 = arith.constant 16 : i32
    %0 = arith.muli %arg2, %c16_i32 : i32
    %cst = arith.constant 0.000000e+00 : f32
    %1 = vector.broadcast %cst : f32 to vector<256x128xf32>
    %c0_i32 = arith.constant 0 : i32
    %2 = arith.addi %0, %c0_i32 : i32
    %c0 = arith.constant 0 : index
    %3 = arith.index_cast %2 : i32 to index
    %c0_0 = arith.constant 0 : index
    %c0_1 = arith.constant 0 : index
    %4 = vector.load %arg3[%c0, %3, %c0_0, %c0_1] : memref<1x18x18x16xbf16, #tpu.memory_space<vmem>>, vector<1x16x16x16xbf16>
    %5 = vector.shape_cast %4 : vector<1x16x16x16xbf16> to vector<16x16x16xbf16>
    %6 = vector.shape_cast %5 : vector<16x16x16xbf16> to vector<256x16xbf16>
    %c0_2 = arith.constant 0 : index
    %c0_3 = arith.constant 0 : index
    %c0_4 = arith.constant 0 : index
    %7 = vector.load %arg4[%c0_2, %c0_3, %c0_4] : memref<9x16x128xbf16, #tpu.memory_space<vmem>>, vector<1x16x128xbf16>
    %8 = vector.shape_cast %7 : vector<1x16x128xbf16> to vector<16x128xbf16>
    %cst_5 = arith.constant dense<0.000000e+00> : vector<256x128xf32>
    %9 = tpu.matmul %6, %8, %cst_5 {dimension_numbers = #tpu.dot_dimension_numbers<[1], [0], [0], [1], [0, 0, 1, 1], [], []>} : vector<256x16xbf16>, vector<16x128xbf16>, vector<256x128xf32> -> vector<256x128xf32>
    %10 = arith.addf %1, %9 : vector<256x128xf32>
    %c0_i32_6 = arith.constant 0 : i32
    %11 = arith.addi %0, %c0_i32_6 : i32
    %c0_7 = arith.constant 0 : index
    %12 = arith.index_cast %11 : i32 to index
    %c1 = arith.constant 1 : index
    %c0_8 = arith.constant 0 : index
    %13 = vector.load %arg3[%c0_7, %12, %c1, %c0_8] : memref<1x18x18x16xbf16, #tpu.memory_space<vmem>>, vector<1x16x16x16xbf16>
    %14 = vector.shape_cast %13 : vector<1x16x16x16xbf16> to vector<16x16x16xbf16>
    %15 = vector.shape_cast %14 : vector<16x16x16xbf16> to vector<256x16xbf16>
    %c1_9 = arith.constant 1 : index
    %c0_10 = arith.constant 0 : index
    %c0_11 = arith.constant 0 : index
    %16 = vector.load %arg4[%c1_9, %c0_10, %c0_11] : memref<9x16x128xbf16, #tpu.memory_space<vmem>>, vector<1x16x128xbf16>
    %17 = vector.shape_cast %16 : vector<1x16x128xbf16> to vector<16x128xbf16>
    %cst_12 = arith.constant dense<0.000000e+00> : vector<256x128xf32>
    %18 = tpu.matmul %15, %17, %cst_12 {dimension_numbers = #tpu.dot_dimension_numbers<[1], [0], [0], [1], [0, 0, 1, 1], [], []>} : vector<256x16xbf16>, vector<16x128xbf16>, vector<256x128xf32> -> vector<256x128xf32>
    %19 = arith.addf %10, %18 : vector<256x128xf32>
    %c0_i32_13 = arith.constant 0 : i32
    %20 = arith.addi %0, %c0_i32_13 : i32
    %c0_14 = arith.constant 0 : index
    %21 = arith.index_cast %20 : i32 to index
    %c2 = arith.constant 2 : index
    %c0_15 = arith.constant 0 : index
    %22 = vector.load %arg3[%c0_14, %21, %c2, %c0_15] : memref<1x18x18x16xbf16, #tpu.memory_space<vmem>>, vector<1x16x16x16xbf16>
    %23 = vector.shape_cast %22 : vector<1x16x16x16xbf16> to vector<16x16x16xbf16>
    %24 = vector.shape_cast %23 : vector<16x16x16xbf16> to vector<256x16xbf16>
    %c2_16 = arith.constant 2 : index
    %c0_17 = arith.constant 0 : index
    %c0_18 = arith.constant 0 : index
    %25 = vector.load %arg4[%c2_16, %c0_17, %c0_18] : memref<9x16x128xbf16, #tpu.memory_space<vmem>>, vector<1x16x128xbf16>
    %26 = vector.shape_cast %25 : vector<1x16x128xbf16> to vector<16x128xbf16>
    %cst_19 = arith.constant dense<0.000000e+00> : vector<256x128xf32>
    %27 = tpu.matmul %24, %26, %cst_19 {dimension_numbers = #tpu.dot_dimension_numbers<[1], [0], [0], [1], [0, 0, 1, 1], [], []>} : vector<256x16xbf16>, vector<16x128xbf16>, vector<256x128xf32> -> vector<256x128xf32>
    %28 = arith.addf %19, %27 : vector<256x128xf32>
    %c1_i32 = arith.constant 1 : i32
    %29 = arith.addi %0, %c1_i32 : i32
    %c0_20 = arith.constant 0 : index
    %30 = arith.index_cast %29 : i32 to index
    %c0_21 = arith.constant 0 : index
    %c0_22 = arith.constant 0 : index
    %31 = vector.load %arg3[%c0_20, %30, %c0_21, %c0_22] : memref<1x18x18x16xbf16, #tpu.memory_space<vmem>>, vector<1x16x16x16xbf16>
    %32 = vector.shape_cast %31 : vector<1x16x16x16xbf16> to vector<16x16x16xbf16>
    %33 = vector.shape_cast %32 : vector<16x16x16xbf16> to vector<256x16xbf16>
    %c3 = arith.constant 3 : index
    %c0_23 = arith.constant 0 : index
    %c0_24 = arith.constant 0 : index
    %34 = vector.load %arg4[%c3, %c0_23, %c0_24] : memref<9x16x128xbf16, #tpu.memory_space<vmem>>, vector<1x16x128xbf16>
    %35 = vector.shape_cast %34 : vector<1x16x128xbf16> to vector<16x128xbf16>
    %cst_25 = arith.constant dense<0.000000e+00> : vector<256x128xf32>
    %36 = tpu.matmul %33, %35, %cst_25 {dimension_numbers = #tpu.dot_dimension_numbers<[1], [0], [0], [1], [0, 0, 1, 1], [], []>} : vector<256x16xbf16>, vector<16x128xbf16>, vector<256x128xf32> -> vector<256x128xf32>
    %37 = arith.addf %28, %36 : vector<256x128xf32>
    %c1_i32_26 = arith.constant 1 : i32
    %38 = arith.addi %0, %c1_i32_26 : i32
    %c0_27 = arith.constant 0 : index
    %39 = arith.index_cast %38 : i32 to index
    %c1_28 = arith.constant 1 : index
    %c0_29 = arith.constant 0 : index
    %40 = vector.load %arg3[%c0_27, %39, %c1_28, %c0_29] : memref<1x18x18x16xbf16, #tpu.memory_space<vmem>>, vector<1x16x16x16xbf16>
    %41 = vector.shape_cast %40 : vector<1x16x16x16xbf16> to vector<16x16x16xbf16>
    %42 = vector.shape_cast %41 : vector<16x16x16xbf16> to vector<256x16xbf16>
    %c4 = arith.constant 4 : index
    %c0_30 = arith.constant 0 : index
    %c0_31 = arith.constant 0 : index
    %43 = vector.load %arg4[%c4, %c0_30, %c0_31] : memref<9x16x128xbf16, #tpu.memory_space<vmem>>, vector<1x16x128xbf16>
    %44 = vector.shape_cast %43 : vector<1x16x128xbf16> to vector<16x128xbf16>
    %cst_32 = arith.constant dense<0.000000e+00> : vector<256x128xf32>
    %45 = tpu.matmul %42, %44, %cst_32 {dimension_numbers = #tpu.dot_dimension_numbers<[1], [0], [0], [1], [0, 0, 1, 1], [], []>} : vector<256x16xbf16>, vector<16x128xbf16>, vector<256x128xf32> -> vector<256x128xf32>
    %46 = arith.addf %37, %45 : vector<256x128xf32>
    %c1_i32_33 = arith.constant 1 : i32
    %47 = arith.addi %0, %c1_i32_33 : i32
    %c0_34 = arith.constant 0 : index
    %48 = arith.index_cast %47 : i32 to index
    %c2_35 = arith.constant 2 : index
    %c0_36 = arith.constant 0 : index
    %49 = vector.load %arg3[%c0_34, %48, %c2_35, %c0_36] : memref<1x18x18x16xbf16, #tpu.memory_space<vmem>>, vector<1x16x16x16xbf16>
    %50 = vector.shape_cast %49 : vector<1x16x16x16xbf16> to vector<16x16x16xbf16>
    %51 = vector.shape_cast %50 : vector<16x16x16xbf16> to vector<256x16xbf16>
    %c5 = arith.constant 5 : index
    %c0_37 = arith.constant 0 : index
    %c0_38 = arith.constant 0 : index
    %52 = vector.load %arg4[%c5, %c0_37, %c0_38] : memref<9x16x128xbf16, #tpu.memory_space<vmem>>, vector<1x16x128xbf16>
    %53 = vector.shape_cast %52 : vector<1x16x128xbf16> to vector<16x128xbf16>
    %cst_39 = arith.constant dense<0.000000e+00> : vector<256x128xf32>
    %54 = tpu.matmul %51, %53, %cst_39 {dimension_numbers = #tpu.dot_dimension_numbers<[1], [0], [0], [1], [0, 0, 1, 1], [], []>} : vector<256x16xbf16>, vector<16x128xbf16>, vector<256x128xf32> -> vector<256x128xf32>
    %55 = arith.addf %46, %54 : vector<256x128xf32>
    %c2_i32 = arith.constant 2 : i32
    %56 = arith.addi %0, %c2_i32 : i32
    %c0_40 = arith.constant 0 : index
    %57 = arith.index_cast %56 : i32 to index
    %c0_41 = arith.constant 0 : index
    %c0_42 = arith.constant 0 : index
    %58 = vector.load %arg3[%c0_40, %57, %c0_41, %c0_42] : memref<1x18x18x16xbf16, #tpu.memory_space<vmem>>, vector<1x16x16x16xbf16>
    %59 = vector.shape_cast %58 : vector<1x16x16x16xbf16> to vector<16x16x16xbf16>
    %60 = vector.shape_cast %59 : vector<16x16x16xbf16> to vector<256x16xbf16>
    %c6 = arith.constant 6 : index
    %c0_43 = arith.constant 0 : index
    %c0_44 = arith.constant 0 : index
    %61 = vector.load %arg4[%c6, %c0_43, %c0_44] : memref<9x16x128xbf16, #tpu.memory_space<vmem>>, vector<1x16x128xbf16>
    %62 = vector.shape_cast %61 : vector<1x16x128xbf16> to vector<16x128xbf16>
    %cst_45 = arith.constant dense<0.000000e+00> : vector<256x128xf32>
    %63 = tpu.matmul %60, %62, %cst_45 {dimension_numbers = #tpu.dot_dimension_numbers<[1], [0], [0], [1], [0, 0, 1, 1], [], []>} : vector<256x16xbf16>, vector<16x128xbf16>, vector<256x128xf32> -> vector<256x128xf32>
    %64 = arith.addf %55, %63 : vector<256x128xf32>
    %c2_i32_46 = arith.constant 2 : i32
    %65 = arith.addi %0, %c2_i32_46 : i32
    %c0_47 = arith.constant 0 : index
    %66 = arith.index_cast %65 : i32 to index
    %c1_48 = arith.constant 1 : index
    %c0_49 = arith.constant 0 : index
    %67 = vector.load %arg3[%c0_47, %66, %c1_48, %c0_49] : memref<1x18x18x16xbf16, #tpu.memory_space<vmem>>, vector<1x16x16x16xbf16>
    %68 = vector.shape_cast %67 : vector<1x16x16x16xbf16> to vector<16x16x16xbf16>
    %69 = vector.shape_cast %68 : vector<16x16x16xbf16> to vector<256x16xbf16>
    %c7 = arith.constant 7 : index
    %c0_50 = arith.constant 0 : index
    %c0_51 = arith.constant 0 : index
    %70 = vector.load %arg4[%c7, %c0_50, %c0_51] : memref<9x16x128xbf16, #tpu.memory_space<vmem>>, vector<1x16x128xbf16>
    %71 = vector.shape_cast %70 : vector<1x16x128xbf16> to vector<16x128xbf16>
    %cst_52 = arith.constant dense<0.000000e+00> : vector<256x128xf32>
    %72 = tpu.matmul %69, %71, %cst_52 {dimension_numbers = #tpu.dot_dimension_numbers<[1], [0], [0], [1], [0, 0, 1, 1], [], []>} : vector<256x16xbf16>, vector<16x128xbf16>, vector<256x128xf32> -> vector<256x128xf32>
    %73 = arith.addf %64, %72 : vector<256x128xf32>
    %c2_i32_53 = arith.constant 2 : i32
    %74 = arith.addi %0, %c2_i32_53 : i32
    %c0_54 = arith.constant 0 : index
    %75 = arith.index_cast %74 : i32 to index
    %c2_55 = arith.constant 2 : index
    %c0_56 = arith.constant 0 : index
    %76 = vector.load %arg3[%c0_54, %75, %c2_55, %c0_56] : memref<1x18x18x16xbf16, #tpu.memory_space<vmem>>, vector<1x16x16x16xbf16>
    %77 = vector.shape_cast %76 : vector<1x16x16x16xbf16> to vector<16x16x16xbf16>
    %78 = vector.shape_cast %77 : vector<16x16x16xbf16> to vector<256x16xbf16>
    %c8 = arith.constant 8 : index
    %c0_57 = arith.constant 0 : index
    %c0_58 = arith.constant 0 : index
    %79 = vector.load %arg4[%c8, %c0_57, %c0_58] : memref<9x16x128xbf16, #tpu.memory_space<vmem>>, vector<1x16x128xbf16>
    %80 = vector.shape_cast %79 : vector<1x16x128xbf16> to vector<16x128xbf16>
    %cst_59 = arith.constant dense<0.000000e+00> : vector<256x128xf32>
    %81 = tpu.matmul %78, %80, %cst_59 {dimension_numbers = #tpu.dot_dimension_numbers<[1], [0], [0], [1], [0, 0, 1, 1], [], []>} : vector<256x16xbf16>, vector<16x128xbf16>, vector<256x128xf32> -> vector<256x128xf32>
    %82 = arith.addf %73, %81 : vector<256x128xf32>
    %c0_60 = arith.constant 0 : index
    %c0_61 = arith.constant 0 : index
    %83 = vector.load %arg5[%c0_60, %c0_61] : memref<1x128xf32, #tpu.memory_space<vmem>>, vector<1x128xf32>
    %84 = vector.broadcast %83 : vector<1x128xf32> to vector<256x128xf32>
    %85 = arith.mulf %82, %84 : vector<256x128xf32>
    %c0_62 = arith.constant 0 : index
    %c0_63 = arith.constant 0 : index
    %86 = vector.load %arg6[%c0_62, %c0_63] : memref<1x128xf32, #tpu.memory_space<vmem>>, vector<1x128xf32>
    %87 = vector.broadcast %86 : vector<1x128xf32> to vector<256x128xf32>
    %88 = arith.addf %85, %87 : vector<256x128xf32>
    %cst_64 = arith.constant 0.000000e+00 : f32
    %89 = vector.broadcast %cst_64 : f32 to vector<256x128xf32>
    %90 = arith.maximumf %88, %89 : vector<256x128xf32>
    %91 = vector.shape_cast %90 : vector<256x128xf32> to vector<16x16x128xf32>
    %c0_65 = arith.constant 0 : index
    %c0_66 = arith.constant 0 : index
    %c0_67 = arith.constant 0 : index
    %c0_68 = arith.constant 0 : index
    %92 = vector.load %arg7[%c0_65, %c0_66, %c0_67, %c0_68] : memref<1x16x16x128xf32, #tpu.memory_space<vmem>>, vector<1x16x16x128xf32>
    %93 = vector.shape_cast %92 : vector<1x16x16x128xf32> to vector<16x16x128xf32>
    %94 = vector.shape_cast %91 : vector<16x16x128xf32> to vector<1x16x16x128xf32>
    tpu.vector_store %arg7[%c0_65, %c0_66, %c0_67, %c0_68], %94 {strides = array<i32>} : memref<1x16x16x128xf32, #tpu.memory_space<vmem>>, vector<1x16x16x128xf32>,
    return
  }
  func.func @transform_0(%arg0: i32, %arg1: i32, %arg2: i32) -> (i32, i32, i32, i32) {
    %c0_i32 = arith.constant 0 : i32
    %c0_i32_0 = arith.constant 0 : i32
    %c0_i32_1 = arith.constant 0 : i32
    %c0_i32_2 = arith.constant 0 : i32
    return %arg0, %c0_i32, %c0_i32_0, %c0_i32_1 : i32, i32, i32, i32
  }
  func.func @transform_1(%arg0: i32, %arg1: i32, %arg2: i32) -> (i32, i32, i32) {
    %c0_i32 = arith.constant 0 : i32
    %c0_i32_0 = arith.constant 0 : i32
    %c0_i32_1 = arith.constant 0 : i32
    return %c0_i32, %c0_i32_0, %arg1 : i32, i32, i32
  }
  func.func @transform_2(%arg0: i32, %arg1: i32, %arg2: i32) -> (i32, i32) {
    %c0_i32 = arith.constant 0 : i32
    %c0_i32_0 = arith.constant 0 : i32
    return %c0_i32, %arg1 : i32, i32
  }
  func.func @transform_3(%arg0: i32, %arg1: i32, %arg2: i32) -> (i32, i32) {
    %c0_i32 = arith.constant 0 : i32
    %c0_i32_0 = arith.constant 0 : i32
    return %c0_i32, %arg1 : i32, i32
  }
  func.func @transform_4(%arg0: i32, %arg1: i32, %arg2: i32) -> (i32, i32, i32, i32) {
    %c0_i32 = arith.constant 0 : i32
    %c0_i32_0 = arith.constant 0 : i32
    return %arg0, %arg2, %c0_i32, %arg1 : i32, i32, i32, i32
  }
}

module attributes {stable_mosaic.version = 11 : i64} {
  func.func @_mm_bn_kernel(%arg0: i32, %arg1: i32, %arg2: i32, %arg3: memref<128x256xbf16, #tpu.memory_space<vmem>>, %arg4: memref<256x128xbf16, #tpu.memory_space<vmem>>, %arg5: memref<1x128xf32, #tpu.memory_space<vmem>>, %arg6: memref<1x128xf32, #tpu.memory_space<vmem>>, %arg7: memref<128x128xf32, #tpu.memory_space<vmem>>, %arg8: memref<128x128xf32, #tpu.memory_space<vmem>>) attributes {dimension_semantics = [#tpu.dimension_semantics<parallel>, #tpu.dimension_semantics<parallel>, #tpu.dimension_semantics<arbitrary>], iteration_bounds = array<i64: 1, 1, 1>, scalar_prefetch = 0 : i64, scratch_operands = 1 : i64, tpu.core_type = #tpu.core_type<tc>, window_params = [{transform_indices = @transform_0, window_bounds = array<i64: 128, 256>}, {transform_indices = @transform_1, window_bounds = array<i64: 256, 128>}, {transform_indices = @transform_2, window_bounds = array<i64: 1, 128>}, {transform_indices = @transform_3, window_bounds = array<i64: 1, 128>}, {transform_indices = @transform_4, window_bounds = array<i64: 128, 128>}]} {
    %c0_i32 = arith.constant 0 : i32
    %0 = arith.cmpi eq, %arg2, %c0_i32 : i32
    %1 = arith.extui %0 : i1 to i32
    %c0_i32_0 = arith.constant 0 : i32
    %2 = arith.cmpi ne, %1, %c0_i32_0 : i32
    scf.if %2 {
      %cst_10 = arith.constant 0.000000e+00 : f32
      %12 = vector.broadcast %cst_10 : f32 to vector<128x128xf32>
      %c0_11 = arith.constant 0 : index
      %c0_12 = arith.constant 0 : index
      %13 = vector.load %arg8[%c0_11, %c0_12] : memref<128x128xf32, #tpu.memory_space<vmem>>, vector<128x128xf32>
      tpu.vector_store %arg8[%c0_11, %c0_12], %12 {strides = array<i32>} : memref<128x128xf32, #tpu.memory_space<vmem>>, vector<128x128xf32>,
    } else {
    }
    %c0 = arith.constant 0 : index
    %c0_1 = arith.constant 0 : index
    %3 = vector.load %arg8[%c0, %c0_1] : memref<128x128xf32, #tpu.memory_space<vmem>>, vector<128x128xf32>
    %c0_2 = arith.constant 0 : index
    %c0_3 = arith.constant 0 : index
    %4 = vector.load %arg3[%c0_2, %c0_3] : memref<128x256xbf16, #tpu.memory_space<vmem>>, vector<128x256xbf16>
    %c0_4 = arith.constant 0 : index
    %c0_5 = arith.constant 0 : index
    %5 = vector.load %arg4[%c0_4, %c0_5] : memref<256x128xbf16, #tpu.memory_space<vmem>>, vector<256x128xbf16>
    %cst = arith.constant dense<0.000000e+00> : vector<128x128xf32>
    %6 = tpu.matmul %4, %5, %cst {dimension_numbers = #tpu.dot_dimension_numbers<[1], [0], [0], [1], [0, 0, 1, 1], [], []>} : vector<128x256xbf16>, vector<256x128xbf16>, vector<128x128xf32> -> vector<128x128xf32>
    %7 = arith.addf %3, %6 : vector<128x128xf32>
    %c0_6 = arith.constant 0 : index
    %c0_7 = arith.constant 0 : index
    %8 = vector.load %arg8[%c0_6, %c0_7] : memref<128x128xf32, #tpu.memory_space<vmem>>, vector<128x128xf32>
    tpu.vector_store %arg8[%c0_6, %c0_7], %7 {strides = array<i32>} : memref<128x128xf32, #tpu.memory_space<vmem>>, vector<128x128xf32>,
    %c0_i32_8 = arith.constant 0 : i32
    %9 = arith.cmpi eq, %arg2, %c0_i32_8 : i32
    %10 = arith.extui %9 : i1 to i32
    %c0_i32_9 = arith.constant 0 : i32
    %11 = arith.cmpi ne, %10, %c0_i32_9 : i32
    scf.if %11 {
      %c0_10 = arith.constant 0 : index
      %c0_11 = arith.constant 0 : index
      %12 = vector.load %arg8[%c0_10, %c0_11] : memref<128x128xf32, #tpu.memory_space<vmem>>, vector<128x128xf32>
      %c0_12 = arith.constant 0 : index
      %c0_13 = arith.constant 0 : index
      %13 = vector.load %arg5[%c0_12, %c0_13] : memref<1x128xf32, #tpu.memory_space<vmem>>, vector<1x128xf32>
      %14 = vector.broadcast %13 : vector<1x128xf32> to vector<128x128xf32>
      %15 = arith.mulf %12, %14 : vector<128x128xf32>
      %c0_14 = arith.constant 0 : index
      %c0_15 = arith.constant 0 : index
      %16 = vector.load %arg6[%c0_14, %c0_15] : memref<1x128xf32, #tpu.memory_space<vmem>>, vector<1x128xf32>
      %17 = vector.broadcast %16 : vector<1x128xf32> to vector<128x128xf32>
      %18 = arith.addf %15, %17 : vector<128x128xf32>
      %cst_16 = arith.constant 0.000000e+00 : f32
      %19 = vector.broadcast %cst_16 : f32 to vector<128x128xf32>
      %20 = arith.maximumf %18, %19 : vector<128x128xf32>
      %c0_17 = arith.constant 0 : index
      %c0_18 = arith.constant 0 : index
      %21 = vector.load %arg7[%c0_17, %c0_18] : memref<128x128xf32, #tpu.memory_space<vmem>>, vector<128x128xf32>
      tpu.vector_store %arg7[%c0_17, %c0_18], %20 {strides = array<i32>} : memref<128x128xf32, #tpu.memory_space<vmem>>, vector<128x128xf32>,
    } else {
    }
    return
  }
  func.func @transform_0(%arg0: i32, %arg1: i32, %arg2: i32) -> (i32, i32) {
    %c0_i32 = arith.constant 0 : i32
    return %arg0, %arg2 : i32, i32
  }
  func.func @transform_1(%arg0: i32, %arg1: i32, %arg2: i32) -> (i32, i32) {
    %c0_i32 = arith.constant 0 : i32
    return %arg2, %arg1 : i32, i32
  }
  func.func @transform_2(%arg0: i32, %arg1: i32, %arg2: i32) -> (i32, i32) {
    %c0_i32 = arith.constant 0 : i32
    %c0_i32_0 = arith.constant 0 : i32
    return %c0_i32, %arg1 : i32, i32
  }
  func.func @transform_3(%arg0: i32, %arg1: i32, %arg2: i32) -> (i32, i32) {
    %c0_i32 = arith.constant 0 : i32
    %c0_i32_0 = arith.constant 0 : i32
    return %c0_i32, %arg1 : i32, i32
  }
  func.func @transform_4(%arg0: i32, %arg1: i32, %arg2: i32) -> (i32, i32) {
    %c0_i32 = arith.constant 0 : i32
    return %arg0, %arg1 : i32, i32
  }
}

module attributes {stable_mosaic.version = 11 : i64} {
  func.func @_conv_bn_relu_kernel(%arg0: i32, %arg1: i32, %arg2: i32, %arg3: memref<1x16x16x16xbf16, #tpu.memory_space<vmem>>, %arg4: memref<1x16x128xbf16, #tpu.memory_space<vmem>>, %arg5: memref<1x128xf32, #tpu.memory_space<vmem>>, %arg6: memref<1x128xf32, #tpu.memory_space<vmem>>, %arg7: memref<1x16x16x128xf32, #tpu.memory_space<vmem>>) attributes {dimension_semantics = [#tpu.dimension_semantics<parallel>, #tpu.dimension_semantics<parallel>, #tpu.dimension_semantics<parallel>], iteration_bounds = array<i64: 2, 1, 1>, scalar_prefetch = 0 : i64, scratch_operands = 0 : i64, tpu.core_type = #tpu.core_type<tc>, window_params = [{transform_indices = @transform_0, window_bounds = array<i64: 1, 16, 16, 16>}, {transform_indices = @transform_1, window_bounds = array<i64: 1, 16, 128>}, {transform_indices = @transform_2, window_bounds = array<i64: 1, 128>}, {transform_indices = @transform_3, window_bounds = array<i64: 1, 128>}, {transform_indices = @transform_4, window_bounds = array<i64: 1, 16, 16, 128>}]} {
    %c16_i32 = arith.constant 16 : i32
    %0 = arith.muli %arg2, %c16_i32 : i32
    %cst = arith.constant 0.000000e+00 : f32
    %1 = vector.broadcast %cst : f32 to vector<256x128xf32>
    %c0_i32 = arith.constant 0 : i32
    %2 = arith.addi %0, %c0_i32 : i32
    %c0 = arith.constant 0 : index
    %3 = arith.index_cast %2 : i32 to index
    %c0_0 = arith.constant 0 : index
    %c0_1 = arith.constant 0 : index
    %4 = vector.load %arg3[%c0, %3, %c0_0, %c0_1] : memref<1x16x16x16xbf16, #tpu.memory_space<vmem>>, vector<1x16x16x16xbf16>
    %5 = vector.shape_cast %4 : vector<1x16x16x16xbf16> to vector<16x16x16xbf16>
    %6 = vector.shape_cast %5 : vector<16x16x16xbf16> to vector<256x16xbf16>
    %c0_2 = arith.constant 0 : index
    %c0_3 = arith.constant 0 : index
    %c0_4 = arith.constant 0 : index
    %7 = vector.load %arg4[%c0_2, %c0_3, %c0_4] : memref<1x16x128xbf16, #tpu.memory_space<vmem>>, vector<1x16x128xbf16>
    %8 = vector.shape_cast %7 : vector<1x16x128xbf16> to vector<16x128xbf16>
    %cst_5 = arith.constant dense<0.000000e+00> : vector<256x128xf32>
    %9 = tpu.matmul %6, %8, %cst_5 {dimension_numbers = #tpu.dot_dimension_numbers<[1], [0], [0], [1], [0, 0, 1, 1], [], []>} : vector<256x16xbf16>, vector<16x128xbf16>, vector<256x128xf32> -> vector<256x128xf32>
    %10 = arith.addf %1, %9 : vector<256x128xf32>
    %c0_6 = arith.constant 0 : index
    %c0_7 = arith.constant 0 : index
    %11 = vector.load %arg5[%c0_6, %c0_7] : memref<1x128xf32, #tpu.memory_space<vmem>>, vector<1x128xf32>
    %12 = vector.broadcast %11 : vector<1x128xf32> to vector<256x128xf32>
    %13 = arith.mulf %10, %12 : vector<256x128xf32>
    %c0_8 = arith.constant 0 : index
    %c0_9 = arith.constant 0 : index
    %14 = vector.load %arg6[%c0_8, %c0_9] : memref<1x128xf32, #tpu.memory_space<vmem>>, vector<1x128xf32>
    %15 = vector.broadcast %14 : vector<1x128xf32> to vector<256x128xf32>
    %16 = arith.addf %13, %15 : vector<256x128xf32>
    %cst_10 = arith.constant 0.000000e+00 : f32
    %17 = vector.broadcast %cst_10 : f32 to vector<256x128xf32>
    %18 = arith.maximumf %16, %17 : vector<256x128xf32>
    %19 = vector.shape_cast %18 : vector<256x128xf32> to vector<16x16x128xf32>
    %c0_11 = arith.constant 0 : index
    %c0_12 = arith.constant 0 : index
    %c0_13 = arith.constant 0 : index
    %c0_14 = arith.constant 0 : index
    %20 = vector.load %arg7[%c0_11, %c0_12, %c0_13, %c0_14] : memref<1x16x16x128xf32, #tpu.memory_space<vmem>>, vector<1x16x16x128xf32>
    %21 = vector.shape_cast %20 : vector<1x16x16x128xf32> to vector<16x16x128xf32>
    %22 = vector.shape_cast %19 : vector<16x16x128xf32> to vector<1x16x16x128xf32>
    tpu.vector_store %arg7[%c0_11, %c0_12, %c0_13, %c0_14], %22 {strides = array<i32>} : memref<1x16x16x128xf32, #tpu.memory_space<vmem>>, vector<1x16x16x128xf32>,
    return
  }
  func.func @transform_0(%arg0: i32, %arg1: i32, %arg2: i32) -> (i32, i32, i32, i32) {
    %c0_i32 = arith.constant 0 : i32
    %c0_i32_0 = arith.constant 0 : i32
    %c0_i32_1 = arith.constant 0 : i32
    %c0_i32_2 = arith.constant 0 : i32
    return %arg0, %c0_i32, %c0_i32_0, %c0_i32_1 : i32, i32, i32, i32
  }
  func.func @transform_1(%arg0: i32, %arg1: i32, %arg2: i32) -> (i32, i32, i32) {
    %c0_i32 = arith.constant 0 : i32
    %c0_i32_0 = arith.constant 0 : i32
    %c0_i32_1 = arith.constant 0 : i32
    return %c0_i32, %c0_i32_0, %arg1 : i32, i32, i32
  }
  func.func @transform_2(%arg0: i32, %arg1: i32, %arg2: i32) -> (i32, i32) {
    %c0_i32 = arith.constant 0 : i32
    %c0_i32_0 = arith.constant 0 : i32
    return %c0_i32, %arg1 : i32, i32
  }
  func.func @transform_3(%arg0: i32, %arg1: i32, %arg2: i32) -> (i32, i32) {
    %c0_i32 = arith.constant 0 : i32
    %c0_i32_0 = arith.constant 0 : i32
    return %c0_i32, %arg1 : i32, i32
  }
  func.func @transform_4(%arg0: i32, %arg1: i32, %arg2: i32) -> (i32, i32, i32, i32) {
    %c0_i32 = arith.constant 0 : i32
    %c0_i32_0 = arith.constant 0 : i32
    return %arg0, %arg2, %c0_i32, %arg1 : i32, i32, i32, i32
  }
}

</mosaic_0001>

<bundles_post_ra>
// kernel: fwd.5
= control target key start
LH: loop header
LB: loop body
LE: loop exit
PB: predicated region body
PF: predicated region fallthrough
CT: control target
= control target key end

     0   :  { %s880_s0 = inlined_call_operand.vmem [shape: bf16[128,256], index: 0, kind: input, shape index: {}]   ;;  %s881_s1 = inlined_call_operand.vmem [shape: bf16[256,128], index: 1, kind: input, shape index: {}]   ;;  %s882_s2 = inlined_call_operand.vmem [shape: f32[1,128], index: 2, kind: input, shape index: {}]   ;;  %s883_s3 = inlined_call_operand.vmem [shape: f32[1,128], index: 3, kind: input, shape index: {}]   ;;  %s884_s4 = inlined_call_operand.hbm [shape: f32[128,128], index: 4, kind: output, shape index: {}]  }
   0x1   :  { %v638_v0 = vld [vmem:[%s881_s1 + $0x40] sm:$0xff]   ;;  %v640_v2 = vld [vmem:[%s881_s1 + $0x48] sm:$0xff]   ;;  %v642_v4 = vld [vmem:[%s881_s1 + $0x50] sm:$0xff]  }
   0x2   :  { %v639_v1 = vld [vmem:[%s881_s1] sm:$0xff]   ;;  %555 = vmatprep.subr.bf16.mxu0 %v638_v0  ;;  %619 = vmatprep.subr.bf16.mxu1 %v638_v0  ;;  %v641_v3 = vld [vmem:[%s881_s1 + $0x8] sm:$0xff]   ;;  %v643_v5 = vld [vmem:[%s881_s1 + $0x10] sm:$0xff]  }
   0x3   :  { %556 = vmatpush3.bf16.msra.mxu0 %v639_v1  ;;  %627 = vmatpush3.bf16.msra.mxu1 %v639_v1  ;;  %v644_v6 = vld [vmem:[%s881_s1 + $0x58] sm:$0xff]   ;;  %v646_v8 = vld [vmem:[%s881_s1 + $0x60] sm:$0xff]   ;;  %v648_v10 = vld [vmem:[%s881_s1 + $0x68] sm:$0xff]  }
   0x4   :  { %557 = vmatprep.subr.bf16.mxu0 %v640_v2  ;;  %620 = vmatprep.subr.bf16.mxu1 %v640_v2  ;;  %v645_v7 = vld [vmem:[%s881_s1 + $0x18] sm:$0xff]   ;;  %v647_v9 = vld [vmem:[%s881_s1 + $0x20] sm:$0xff]   ;;  %v649_v13 = vld [vmem:[%s881_s1 + $0x28] sm:$0xff]  }
   0x5   :  { %v656_v11 = vld [vmem:[%s880_s0 + $0x4] ss:$8 sps:$4 sm:$0xff]   ;;  %v650_v14 = vld [vmem:[%s881_s1 + $0x70] sm:$0xff]   ;;  %v652_v16 = vld [vmem:[%s881_s1 + $0x78] sm:$0xff]  }
   0x6   :  { %v659_v12 = vld [vmem:[%s880_s0 + $0x44] ss:$8 sps:$4 sm:$0xff]   ;;  %311 = vmatprep.mubr.bf16.mxu0 %v656_v11  ;;  %v651_v15 = vld [vmem:[%s881_s1 + $0x30] sm:$0xff]  }
   0x7   :  { %558 = vmatpush3.bf16.msra.mxu0 %v641_v3  ;;  %628 = vmatpush3.bf16.msra.mxu1 %v641_v3 }
   0x8   :  { %559 = vmatprep.subr.bf16.mxu0 %v642_v4  ;;  %621 = vmatprep.subr.bf16.mxu1 %v642_v4 }
   0x9   :  { %343 = vmatprep.mubr.bf16.mxu1 %v659_v12 }
   0xb   :  { %560 = vmatpush3.bf16.msra.mxu0 %v643_v5  ;;  %629 = vmatpush3.bf16.msra.mxu1 %v643_v5 }
   0xc   :  { %561 = vmatprep.subr.bf16.mxu0 %v644_v6  ;;  %622 = vmatprep.subr.bf16.mxu1 %v644_v6 }
   0xf   :  { %562 = vmatpush3.bf16.msra.mxu0 %v645_v7  ;;  %630 = vmatpush3.bf16.msra.mxu1 %v645_v7 }
  0x10   :  { %563 = vmatprep.subr.bf16.mxu0 %v646_v8  ;;  %623 = vmatprep.subr.bf16.mxu1 %v646_v8 }
  0x13   :  { %564 = vmatpush3.bf16.msra.mxu0 %v647_v9  ;;  %631 = vmatpush3.bf16.msra.mxu1 %v647_v9 }
  0x14   :  { %565 = vmatprep.subr.bf16.mxu0 %v648_v10  ;;  %624 = vmatprep.subr.bf16.mxu1 %v648_v10 }
  0x17   :  { %566 = vmatpush3.bf16.msra.mxu0 %v649_v13  ;;  %632 = vmatpush3.bf16.msra.mxu1 %v649_v13 }
  0x18   :  { %567 = vmatprep.subr.bf16.mxu0 %v650_v14  ;;  %625 = vmatprep.subr.bf16.mxu1 %v650_v14 }
  0x19   :  { %9 = vsyncpa [#allocation4], 0  ;;  %v653_v17 = vld [vmem:[%s881_s1 + $0x38] sm:$0xff]   ;;  %v654_v18 = vld [vmem:[%s880_s0] ss:$8 sps:$4 sm:$0xff]  }
  0x1a   :  { %v657_v19 = vld [vmem:[%s880_s0 + $0x40] ss:$8 sps:$4 sm:$0xff]   ;;  %v660_v20 = vld [vmem:[%s880_s0 + $0x14] ss:$8 sps:$4 sm:$0xff]   ;;  %v664_v22 = vld [vmem:[%s880_s0 + $0x10] ss:$8 sps:$4 sm:$0xff]  }
  0x1b   :  { %568 = vmatpush3.bf16.msra.mxu0 %v651_v15  ;;  %633 = vmatpush3.bf16.msra.mxu1 %v651_v15  ;;  %v662_v21 = vld [vmem:[%s880_s0 + $0x54] ss:$8 sps:$4 sm:$0xff]   ;;  %v665_v23 = vld [vmem:[%s880_s0 + $0x50] ss:$8 sps:$4 sm:$0xff]   ;;  %v666_v24 = vld [vmem:[%s880_s0 + $0x24] ss:$8 sps:$4 sm:$0xff]  }
  0x1c   :  { %569 = vmatprep.subr.bf16.mxu0 %v652_v16  ;;  %626 = vmatprep.subr.bf16.mxu1 %v652_v16  ;;  %v668_v25 = vld [vmem:[%s880_s0 + $0x64] ss:$8 sps:$4 sm:$0xff]   ;;  %v670_v26 = vld [vmem:[%s880_s0 + $0x20] ss:$8 sps:$4 sm:$0xff]   ;;  %v672_v28 = vld [vmem:[%s880_s0 + $0x34] ss:$8 sps:$4 sm:$0xff]  }
  0x1d   :  { %v671_v27 = vld [vmem:[%s880_s0 + $0x60] ss:$8 sps:$4 sm:$0xff]   ;;  %v674_v29 = vld [vmem:[%s880_s0 + $0x74] ss:$8 sps:$4 sm:$0xff]   ;;  %v676_v30 = vld [vmem:[%s880_s0 + $0x30] ss:$8 sps:$4 sm:$0xff]  }
  0x1e   :  { %v677_v31 = vld [vmem:[%s880_s0 + $0x70] ss:$8 sps:$4 sm:$0xff]   ;;  %v829_v35 = vld [vmem:[%s882_s2] ss:$0 sm:$0xff]  ;;  %s702_s0 = smov [#allocation3]  }
  0x1f   :  { %570 = vmatpush3.bf16.msra.mxu0 %v653_v17  ;;  %634 = vmatpush3.bf16.msra.mxu1 %v653_v17  ;;  %v834_v41 = vld [vmem:[%s883_s3] ss:$0 sm:$0xff]  ;;  %s510_s2 = sshll.u32 %s702_s0, 4  ;;  %s511_s2 = int_to_ptr.vmem [resolvable:$true] %s510_s2 }
  0x20   :  { %s678_s3 = scalar_lea.vmem %s511_s2, 2048  ;;  %p683_p1 = scmp.lt.s32.totalorder %s511_s2, %s511_s2 }
  0x21   :  { %p679_p0 = scmp.ne.s32.totalorder %s511_s2, %s678_s3  ;;  %p684_p2 = scmp.lt.s32.totalorder %s678_s3, %s678_s3 }
  0x22   :  { %312 = vmatmul.mubr.bf16.vlgmr.msra.gmra.mrb[0].mxu0 %v654_v18  ;;  %344 = vmatmul.mubr.bf16.vlgmr.msra.gmra.mrb[0].mxu1 %v657_v19 }
  0x23   :  { %319 = vmatprep.mubr.bf16.mxu0 %v660_v20  ;;  %351 = vmatprep.mubr.bf16.mxu1 %v662_v21  ;;  %p685_p3 = por %p684_p2, %p683_p1 }
  0x25   :  { %p686_p4 = pnand %p685_p3, %p679_p0 }
  0x2a   :  { %320 = vmatmul.mubr.bf16.gmra.mrb[4].mxu0 %v664_v22  ;;  %352 = vmatmul.mubr.bf16.gmra.mrb[4].mxu1 %v665_v23 }
  0x2b   :  { %327 = vmatprep.mubr.bf16.mxu0 %v666_v24  ;;  %359 = vmatprep.mubr.bf16.mxu1 %v668_v25 }
  0x32   :  { %328 = vmatmul.mubr.bf16.gmra.mrb[8].mxu0 %v670_v26  ;;  %360 = vmatmul.mubr.bf16.gmra.mrb[8].mxu1 %v671_v27 }
  0x33   :  { %335 = vmatprep.mubr.bf16.mxu0 %v672_v28  ;;  %367 = vmatprep.mubr.bf16.mxu1 %v674_v29 }
  0x3a   :  { %336 = vmatmul.mubr.bf16.gmra.mrb[12].mxu0 %v676_v30  ;;  %368 = vmatmul.mubr.bf16.gmra.mrb[12].mxu1 %v677_v31 }
  0xf5   :  { %v571_v32 = vpop.f32.mrb[0].mxu0  ;;  %v595_v33 = vpop.f32.mrb[0].mxu1 }
  0xf6   :  { %v572_v34 = vpop.f32.mrb[1].mxu0  ;;  %v596_v36 = vpop.f32.mrb[1].mxu1 }
  0xf7   :  { %v573_v37 = vadd.f32 %v572_v34, %v571_v32  ;;  %v597_v38 = vadd.f32 %v596_v36, %v595_v33  ;;  %v574_v39 = vpop.f32.mrb[2].mxu0  ;;  %v598_v40 = vpop.f32.mrb[2].mxu1 }
  0xf8   :  { %v575_v42 = vpop.f32.mrb[3].mxu0  ;;  %v599_v43 = vpop.f32.mrb[3].mxu1 }
  0xf9   :  { %v434_v44 = vmul.f32 %v573_v37, %v829_v35  ;;  %v442_v45 = vmul.f32 %v597_v38, %v829_v35  ;;  %v576_v46 = vadd.f32 %v575_v42, %v574_v39  ;;  %v600_v47 = vadd.f32 %v599_v43, %v598_v40 }
  0xfb   :  { %v457_v48 = vadd.f32 %v834_v41, %v434_v44  ;;  %v465_v49 = vadd.f32 %v834_v41, %v442_v45  ;;  %v435_v50 = vmul.f32 %v576_v46, %v829_v35  ;;  %v443_v51 = vmul.f32 %v600_v47, %v829_v35 }
  0xfd   :  { %v473_v52 = vmax.f32 %v457_v48, 0.0  ;;  %v481_v53 = vmax.f32 %v465_v49, 0.0  ;;  %v458_v54 = vadd.f32 %v834_v41, %v435_v50  ;;  %v466_v55 = vadd.f32 %v834_v41, %v443_v51  ;;  %v577_v56 = vpop.f32.mrb[4].mxu0  ;;  %v601_v57 = vpop.f32.mrb[4].mxu1 }
  0xfe   :  { %v578_v58 = vpop.f32.mrb[5].mxu0  ;;  %v602_v59 = vpop.f32.mrb[5].mxu1 }
  0xff   :  { %489 = vst [vmem:[#allocation3] sm:$0xff] %v473_v52  ;;  %497 = vst [vmem:[#allocation3 + $0x40] sm:$0xff] %v481_v53  ;;  %v474_v60 = vmax.f32 %v458_v54, 0.0  ;;  %v482_v61 = vmax.f32 %v466_v55, 0.0  ;;  %v579_v62 = vadd.f32 %v578_v58, %v577_v56  ;;  %v603_v63 = vadd.f32 %v602_v59, %v601_v57  ;;  %v580_v0 = vpop.f32.mrb[6].mxu0  ;;  %v604_v1 = vpop.f32.mrb[6].mxu1 }
 0x100   :  { %v581_v2 = vpop.f32.mrb[7].mxu0  ;;  %v605_v3 = vpop.f32.mrb[7].mxu1 }
 0x101   :  { %490 = vst [vmem:[#allocation3 + $0x8] sm:$0xff] %v474_v60  ;;  %498 = vst [vmem:[#allocation3 + $0x48] sm:$0xff] %v482_v61  ;;  %v436_v4 = vmul.f32 %v579_v62, %v829_v35  ;;  %v444_v5 = vmul.f32 %v603_v63, %v829_v35  ;;  %v582_v6 = vadd.f32 %v581_v2, %v580_v0 }
 0x102   :  { %v606_v7 = vadd.f32 %v605_v3, %v604_v1 }
 0x103   :  { %v459_v8 = vadd.f32 %v834_v41, %v436_v4  ;;  %v467_v9 = vadd.f32 %v834_v41, %v444_v5  ;;  %v437_v10 = vmul.f32 %v582_v6, %v829_v35 }
 0x104   :  { %v445_v11 = vmul.f32 %v606_v7, %v829_v35 }
 0x105   :  { %v475_v12 = vmax.f32 %v459_v8, 0.0  ;;  %v483_v13 = vmax.f32 %v467_v9, 0.0  ;;  %v460_v14 = vadd.f32 %v834_v41, %v437_v10  ;;  %v583_v16 = vpop.f32.mrb[8].mxu0  ;;  %v607_v17 = vpop.f32.mrb[8].mxu1 }
 0x106   :  { %v468_v15 = vadd.f32 %v834_v41, %v445_v11  ;;  %v584_v18 = vpop.f32.mrb[9].mxu0  ;;  %v608_v19 = vpop.f32.mrb[9].mxu1 }
 0x107   :  { %491 = vst [vmem:[#allocation3 + $0x10] sm:$0xff] %v475_v12  ;;  %499 = vst [vmem:[#allocation3 + $0x50] sm:$0xff] %v483_v13  ;;  %v476_v20 = vmax.f32 %v460_v14, 0.0  ;;  %v585_v22 = vadd.f32 %v584_v18, %v583_v16  ;;  %v609_v23 = vadd.f32 %v608_v19, %v607_v17  ;;  %v586_v24 = vpop.f32.mrb[10].mxu0  ;;  %v610_v25 = vpop.f32.mrb[10].mxu1 }
 0x108   :  { %v484_v21 = vmax.f32 %v468_v15, 0.0  ;;  %v587_v26 = vpop.f32.mrb[11].mxu0  ;;  %v611_v27 = vpop.f32.mrb[11].mxu1 }
 0x109   :  { %492 = vst [vmem:[#allocation3 + $0x18] sm:$0xff] %v476_v20  ;;  %v438_v28 = vmul.f32 %v585_v22, %v829_v35  ;;  %v446_v29 = vmul.f32 %v609_v23, %v829_v35  ;;  %v588_v30 = vadd.f32 %v587_v26, %v586_v24  ;;  %v612_v31 = vadd.f32 %v611_v27, %v610_v25 }
 0x10a   :  { %500 = vst [vmem:[#allocation3 + $0x58] sm:$0xff] %v484_v21 }
 0x10b   :  { %v461_v32 = vadd.f32 %v834_v41, %v438_v28  ;;  %v469_v33 = vadd.f32 %v834_v41, %v446_v29  ;;  %v439_v34 = vmul.f32 %v588_v30, %v829_v35  ;;  %v447_v36 = vmul.f32 %v612_v31, %v829_v35 }
 0x10d   :  { %v477_v37 = vmax.f32 %v461_v32, 0.0  ;;  %v485_v38 = vmax.f32 %v469_v33, 0.0  ;;  %v462_v39 = vadd.f32 %v834_v41, %v439_v34  ;;  %v470_v40 = vadd.f32 %v834_v41, %v447_v36  ;;  %v589_v42 = vpop.f32.mrb[12].mxu0  ;;  %v613_v43 = vpop.f32.mrb[12].mxu1 }
 0x10e   :  { %v590_v44 = vpop.f32.mrb[13].mxu0  ;;  %v614_v45 = vpop.f32.mrb[13].mxu1 }
 0x10f   :  { %493 = vst [vmem:[#allocation3 + $0x20] sm:$0xff] %v477_v37  ;;  %501 = vst [vmem:[#allocation3 + $0x60] sm:$0xff] %v485_v38  ;;  %v478_v46 = vmax.f32 %v462_v39, 0.0  ;;  %v486_v47 = vmax.f32 %v470_v40, 0.0  ;;  %v591_v48 = vadd.f32 %v590_v44, %v589_v42  ;;  %v615_v49 = vadd.f32 %v614_v45, %v613_v43  ;;  %v592_v50 = vpop.f32.mrb[14].mxu0  ;;  %v616_v51 = vpop.f32.mrb[14].mxu1 }
 0x110   :  { %v593_v52 = vpop.f32.mrb[15].mxu0  ;;  %v617_v53 = vpop.f32.mrb[15].mxu1 }
 0x111   :  { %494 = vst [vmem:[#allocation3 + $0x28] sm:$0xff] %v478_v46  ;;  %502 = vst [vmem:[#allocation3 + $0x68] sm:$0xff] %v486_v47  ;;  %v440_v54 = vmul.f32 %v591_v48, %v829_v35  ;;  %v448_v55 = vmul.f32 %v615_v49, %v829_v35  ;;  %v594_v56 = vadd.f32 %v593_v52, %v592_v50 }
 0x112   :  { %v618_v57 = vadd.f32 %v617_v53, %v616_v51 }
 0x113   :  { %v463_v58 = vadd.f32 %v834_v41, %v440_v54  ;;  %v471_v59 = vadd.f32 %v834_v41, %v448_v55  ;;  %v441_v60 = vmul.f32 %v594_v56, %v829_v35 }
 0x114   :  { %v449_v61 = vmul.f32 %v618_v57, %v829_v35 }
 0x115   :  { %v479_v62 = vmax.f32 %v463_v58, 0.0  ;;  %v487_v63 = vmax.f32 %v471_v59, 0.0  ;;  %v464_v0 = vadd.f32 %v834_v41, %v441_v60 }
 0x116   :  { %v472_v1 = vadd.f32 %v834_v41, %v449_v61 }
 0x117   :  { %495 = vst [vmem:[#allocation3 + $0x30] sm:$0xff] %v479_v62  ;;  %503 = vst [vmem:[#allocation3 + $0x70] sm:$0xff] %v487_v63  ;;  %v480_v2 = vmax.f32 %v464_v0, 0.0 }
 0x118   :  { %v488_v3 = vmax.f32 %v472_v1, 0.0 }
 0x119   :  { %496 = vst [vmem:[#allocation3 + $0x38] sm:$0xff] %v480_v2 }
 0x11a   :  { %504 = vst [vmem:[#allocation3 + $0x78] sm:$0xff] %v488_v3 }
 0x11b   :  { %689 = shalt.err (!%p686_p4)
}
 0x11c   :  { %s690_s6 = scalar_lea.hbm %s884_s4, 2048 }
 0x11d   :  { %p691_p5 = scmp.ne.s32.totalorder %s884_s4, %s690_s6  ;;  %p694_p6 = scmp.lt.u32.totalorder %s690_s6, %s884_s4 }
 0x11f   :  { %p696_p7 = pnand %p694_p6, %p691_p5 }
 0x121   :  { %699 = shalt.err (!%p696_p7)
}
 0x122   :  { %s703_s10 = smov 128   ;;  %s704_s11 = smov 8  }
 0x123   :  { %516 = dma.vmem_to_hbm [thread:$0]  %s511_s2, 2048, %s884_s4, [#allocation4], %s703_s10, %s703_s10, %s704_s11  }
 0x124   :  { %700 = dma.done.wait [#allocation4], 2048  }
 0x125   :  { %701 = vsyncadd [#allocation4], 4294965248 }
 0x126   :  { %520 = vsyncpa [#allocation4], 1 }

// kernel: fwd.4
= control target key start
LH: loop header
LB: loop body
LE: loop exit
PB: predicated region body
PF: predicated region fallthrough
CT: control target
= control target key end

     0   :  { %9 = vsyncpa [#allocation3], 0  ;;  %s1431_s0 = inlined_call_operand.vmem [shape: bf16[2,16,16,16], index: 0, kind: input, shape index: {}]   ;;  %s1432_s1 = inlined_call_operand.vmem [shape: bf16[1,16,128], index: 1, kind: input, shape index: {}]   ;;  %s1433_s2 = inlined_call_operand.vmem [shape: f32[1,128], index: 2, kind: input, shape index: {}]   ;;  %s1434_s3 = inlined_call_operand.vmem [shape: f32[1,128], index: 3, kind: input, shape index: {}]   ;;  %s1435_s4 = inlined_call_operand.hbm [shape: f32[2,16,16,128], index: 4, kind: output, shape index: {}]  }
   0x1   :  { %11 = vsyncpa [#allocation3 + $0x1], 0  ;;  %s1166_s15 = smov 0   ;;  %s1168_s16 = smov 0  }
   0x2   :  { %s1170_s17 = smov 0   ;;  %s1172_s18 = smov 0  }
   0x3   :  { %s1174_s19 = smov 0   ;;  %s1176_s20 = smov 0  }
   0x4 LB: > { %s878_s21 = sadd.s32 4294967295, %s1136_s20   ;;  %s879_s22 = sadd.s32 4294967294, %s1136_s20   ;;  %s1136_s20 = sphi %s1176_s20, %s17_s20   ;;  %s1132_s19 = sphi %s1174_s19, %s1442_s19   ;;  %s1128_s18 = sphi %s1172_s18, %s1441_s18   ;;  %s1124_s17 = sphi %s1170_s17, %s1440_s17   ;;  %s1120_s16 = sphi %s1168_s16, %s1439_s16   ;;  %s1116_s15 = sphi %s1166_s15, %s1438_s15  }
   0x5   : > { %s36_s23 = sadd.s32 1, %s1132_s19  ;;  %s151_s24 = sadd.s32 1, %s1124_s17 }
   0x6   : > { %p38_p0 = scmp.ge.s32.totalorder %s36_s23, 2  ;;  %p161_p1 = scmp.ne.s32.totalorder %s1124_s17, %s1120_s16 }
   0x7   : > { %p162_p2 = scmp.eq.s32.totalorder %s878_s21, 1  ;;  %p167_p3 = scmp.ne.s32.totalorder %s1120_s16, %s1116_s15 }
   0x8   : > { %s1444_s23 = smov (%p38_p0, %s36_s23), 0  ;;  %p168_p5 = scmp.eq.s32.totalorder %s879_s22, 1 }
   0x9   : > { %p1206_p4 = por %p162_p2, %p161_p1  ;;  %s144_s26 = ssub.s32 %s1132_s19, %s1444_s23 }
   0xa   : > { %p885_p6 = scmp.ge.s32.totalorder %s1136_s20, 1  ;;  %p149_p7 = scmp.eq.s32.totalorder %s144_s26, 0 }
   0xb   : > { %p1213_p8 = por %p168_p5, %p167_p3  ;;  %p213_p9 = scmp.lt.s32.totalorder %s1136_s20, 3 }
   0xc   : > { %s1219_s28 = scalar_select %p149_p7, %s1124_s17, %s151_s24  }
   0xd   : > { %p214_p10 = pnand %p885_p6, %p213_p9 }
   0xe   : > { %v1041_v0 = vld [vmem:[%s1432_s1] sm:$0xff] (!%p214_p10)   ;;  %p249_p11 = scmp.lt.s32.totalorder (!%p214_p10), %s1128_s18, 1  ;;  %vm390_vm0 = vcmask (!%p214_p10), 130048   ;;  %s246_s10 = sand.u32 (!%p214_p10), 1, %s1120_s16  }
   0xf   : > { %217 = sbr.rel (%p214_p10) target bundleno = 289 (0x121), region = 36  ;;  %948 = vmatprep.subr.bf16.mxu0 (!%p214_p10), %v1041_v0  ;;  %982 = vmatprep.subr.bf16.mxu1 (!%p214_p10), %v1041_v0  ;;  %v1267_v17 = vld [vmem:[%s1433_s2] ss:$0 sm:$0xff] (!%p214_p10)  ;;  %s886_s21 = sshll.u32 (!%p214_p10), %s246_s10, 8 }
  0x10   : > { %949 = vmatpush3.bf16.msra.mxu0 (!%p214_p10), %v1041_v0  ;;  %983 = vmatpush3.bf16.msra.mxu1 (!%p214_p10), %v1041_v0  ;;  %v1272_v19 = vld [vmem:[%s1434_s3] ss:$0 sm:$0xff] (!%p214_p10)  ;;  %s1291_s22 = scalar_lea.vmem (!%p214_p10), [#allocation2], %s886_s21  ;;  %s930_s24 = sshll.u32 (!%p214_p10), %s1128_s18, 12 }
  0x11   : > { %s760_s26 = sshll.u32 (!%p214_p10), %s1291_s22, 4  ;;  %s1374_s30 = scalar_lea.hbm (!%p214_p10), %s1435_s4, %s930_s24  ;;  %s1376_s26 = int_to_ptr.vmem [resolvable:$true] %s760_s26 }
  0x12   : > { %s1138_s7 = smov (!%p214_p10), [#allocation2]  }
  0x13   : > { %s1062_s8 = sshll.u32 (!%p214_p10), %s1138_s7, 4  ;;  %s1063_s8 = int_to_ptr.vmem [resolvable:$false] %s1062_s8 }
  0x14   : > { %p1065_p1 = scmp.lt.s32.totalorder (!%p214_p10), %s1376_s26, %s1063_s8 }
  0x16   : > { %s250_s5 = scalar_select %p249_p11, %s1128_s18, 1 }
  0x18   : > { %s929_s6 = sshll.u32 %s250_s5, 7  ;;  %s1385_s5 = scalar_lea.sflag [#allocation3], %s246_s10 }
  0x19   : > { %s1229_s9 = scalar_lea.vmem %s1431_s0, %s929_s6  ;;  %s1058_s6 = scalar_lea.vmem %s1376_s26, 4096 }
  0x1a   : > { %v1042_v1 = vld [vmem:[%s1229_s9] sm:$0xff]   ;;  %v1044_v3 = vld [vmem:[%s1229_s9 + $0x8] sm:$0xff]   ;;  %v1046_v5 = vld [vmem:[%s1229_s9 + $0x10] sm:$0xff]   ;;  %p1059_p12 = scmp.ne.s32.totalorder %s1376_s26, %s1058_s6 }
  0x1b   : > { %v1043_v2 = vld [vmem:[%s1229_s9 + $0x40] sm:$0xff]   ;;  %950 = vmatprep.mubr.msk.bf16.mxu0 %vm390_vm0, %v1042_v1  ;;  %v1045_v4 = vld [vmem:[%s1229_s9 + $0x48] sm:$0xff]   ;;  %v1047_v6 = vld [vmem:[%s1229_s9 + $0x50] sm:$0xff]  }
  0x1c   : > { %966 = vmatprep.mubr.msk.bf16.mxu1 %vm390_vm0, %v1043_v2  ;;  %951 = vmatmul.mubr.msk.bf16.vlgmr.msra.gmra.mrb[0].mxu0 %vm390_vm0, %v1044_v3  ;;  %v1048_v7 = vld [vmem:[%s1229_s9 + $0x18] sm:$0xff]   ;;  %v1050_v9 = vld [vmem:[%s1229_s9 + $0x20] sm:$0xff]   ;;  %v1052_v11 = vld [vmem:[%s1229_s9 + $0x28] sm:$0xff]   ;;  %p1060_p13 = pnand %p1059_p12, %p1206_p4 }
  0x1d   : > { %967 = vmatmul.mubr.msk.bf16.vlgmr.msra.gmra.mrb[0].mxu1 %vm390_vm0, %v1045_v4  ;;  %954 = vmatprep.mubr.msk.bf16.mxu0 %vm390_vm0, %v1046_v5  ;;  %v1049_v8 = vld [vmem:[%s1229_s9 + $0x58] sm:$0xff]   ;;  %v1051_v10 = vld [vmem:[%s1229_s9 + $0x60] sm:$0xff]   ;;  %v1053_v12 = vld [vmem:[%s1229_s9 + $0x68] sm:$0xff]  }
  0x1e   : > { %970 = vmatprep.mubr.msk.bf16.mxu1 %vm390_vm0, %v1047_v6  ;;  %v1054_v13 = vld [vmem:[%s1229_s9 + $0x30] sm:$0xff]   ;;  %v1056_v15 = vld [vmem:[%s1229_s9 + $0x38] sm:$0xff]   ;;  %p1061_p0 = pneg %p1060_p13 }
  0x1f   : > { %v1055_v14 = vld [vmem:[%s1229_s9 + $0x70] sm:$0xff]   ;;  %v1057_v16 = vld [vmem:[%s1229_s9 + $0x78] sm:$0xff]   ;;  %s1064_s9 = scalar_lea.vmem %s1063_s8, 8192 }
  0x20   : > { %p1066_p2 = scmp.lt.s32.totalorder %s1064_s9, %s1058_s6 }
  0x22   : > { %p1067_p3 = por %p1066_p2, %p1065_p1 }
  0x24   : > { %955 = vmatmul.mubr.msk.bf16.gmra.mrb[4].mxu0 %vm390_vm0, %v1048_v7  ;;  %p1068_p5 = pnand %p1067_p3, %p1061_p0 }
  0x25   : > { %971 = vmatmul.mubr.msk.bf16.gmra.mrb[4].mxu1 %vm390_vm0, %v1049_v8  ;;  %958 = vmatprep.mubr.msk.bf16.mxu0 %vm390_vm0, %v1050_v9 }
  0x26   : > { %974 = vmatprep.mubr.msk.bf16.mxu1 %vm390_vm0, %v1051_v10 }
  0x2c   : > { %959 = vmatmul.mubr.msk.bf16.gmra.mrb[8].mxu0 %vm390_vm0, %v1052_v11 }
  0x2d   : > { %975 = vmatmul.mubr.msk.bf16.gmra.mrb[8].mxu1 %vm390_vm0, %v1053_v12  ;;  %962 = vmatprep.mubr.msk.bf16.mxu0 %vm390_vm0, %v1054_v13 }
  0x2e   : > { %978 = vmatprep.mubr.msk.bf16.mxu1 %vm390_vm0, %v1055_v14 }
  0x34   : > { %963 = vmatmul.mubr.msk.bf16.gmra.mrb[12].mxu0 %vm390_vm0, %v1056_v15 }
  0x35   : > { %979 = vmatmul.mubr.msk.bf16.gmra.mrb[12].mxu1 %vm390_vm0, %v1057_v16 }
  0xef   : > { %v952_v18 = vpop.f32.mrb[0].mxu0 }
  0xf0   : > { %v609_v20 = vmul.f32 %v952_v18, %v1267_v17  ;;  %v968_v21 = vpop.f32.mrb[0].mxu1  ;;  %v473_v22 = vpop.f32.mrb[1].mxu0 }
  0xf1   : > { %v625_v23 = vmul.f32 %v968_v21, %v1267_v17  ;;  %v607_v24 = vmul.f32 %v1267_v17, %v473_v22  ;;  %v537_v25 = vpop.f32.mrb[1].mxu1  ;;  %v953_v26 = vpop.f32.mrb[2].mxu0 }
  0xf2   : > { %v648_v27 = vadd.f32 %v1272_v19, %v609_v20  ;;  %v623_v28 = vmul.f32 %v1267_v17, %v537_v25  ;;  %v610_v29 = vmul.f32 %v953_v26, %v1267_v17  ;;  %v969_v30 = vpop.f32.mrb[2].mxu1  ;;  %v476_v31 = vpop.f32.mrb[3].mxu0 }
  0xf3   : > { %v664_v32 = vadd.f32 %v1272_v19, %v625_v23  ;;  %v646_v33 = vadd.f32 %v1272_v19, %v607_v24  ;;  %v626_v34 = vmul.f32 %v969_v30, %v1267_v17  ;;  %v608_v35 = vmul.f32 %v1267_v17, %v476_v31  ;;  %v540_v36 = vpop.f32.mrb[3].mxu1 }
  0xf4   : > { %v680_v37 = vmax.f32 %v648_v27, 0.0  ;;  %v662_v38 = vadd.f32 %v1272_v19, %v623_v28  ;;  %v649_v39 = vadd.f32 %v1272_v19, %v610_v29  ;;  %v624_v40 = vmul.f32 %v1267_v17, %v540_v36 }
  0xf5   : > { %v696_v41 = vmax.f32 %v664_v32, 0.0  ;;  %v678_v42 = vmax.f32 %v646_v33, 0.0  ;;  %v665_v43 = vadd.f32 %v1272_v19, %v626_v34  ;;  %v647_v44 = vadd.f32 %v1272_v19, %v608_v35 }
  0xf6   : > { %712 = vst [vmem:[%s1291_s22 + $0x10] sm:$0xff] %v680_v37  ;;  %v694_v45 = vmax.f32 %v662_v38, 0.0  ;;  %v681_v46 = vmax.f32 %v649_v39, 0.0  ;;  %v663_v47 = vadd.f32 %v1272_v19, %v624_v40 }
  0xf7   : > { %728 = vst [vmem:[%s1291_s22 + $0x90] sm:$0xff] %v696_v41  ;;  %710 = vst [vmem:[%s1291_s22] sm:$0xff] %v678_v42  ;;  %v697_v48 = vmax.f32 %v665_v43, 0.0  ;;  %v679_v49 = vmax.f32 %v647_v44, 0.0  ;;  %v956_v50 = vpop.f32.mrb[4].mxu0 }
  0xf8   : > { %726 = vst [vmem:[%s1291_s22 + $0x80] sm:$0xff] %v694_v45  ;;  %713 = vst [vmem:[%s1291_s22 + $0x18] sm:$0xff] %v681_v46  ;;  %v695_v51 = vmax.f32 %v663_v47, 0.0  ;;  %v613_v52 = vmul.f32 %v956_v50, %v1267_v17  ;;  %v972_v53 = vpop.f32.mrb[4].mxu1  ;;  %v489_v54 = vpop.f32.mrb[5].mxu0 }
  0xf9   : > { %729 = vst [vmem:[%s1291_s22 + $0x98] sm:$0xff] %v697_v48  ;;  %711 = vst [vmem:[%s1291_s22 + $0x8] sm:$0xff] %v679_v49  ;;  %v629_v55 = vmul.f32 %v972_v53, %v1267_v17  ;;  %v611_v56 = vmul.f32 %v1267_v17, %v489_v54  ;;  %v553_v57 = vpop.f32.mrb[5].mxu1  ;;  %v957_v58 = vpop.f32.mrb[6].mxu0 }
  0xfa   : > { %727 = vst [vmem:[%s1291_s22 + $0x88] sm:$0xff] %v695_v51  ;;  %v652_v59 = vadd.f32 %v1272_v19, %v613_v52  ;;  %v627_v60 = vmul.f32 %v1267_v17, %v553_v57  ;;  %v614_v61 = vmul.f32 %v957_v58, %v1267_v17  ;;  %v973_v62 = vpop.f32.mrb[6].mxu1  ;;  %v492_v63 = vpop.f32.mrb[7].mxu0 }
  0xfb   : > { %v668_v0 = vadd.f32 %v1272_v19, %v629_v55  ;;  %v650_v1 = vadd.f32 %v1272_v19, %v611_v56  ;;  %v630_v2 = vmul.f32 %v973_v62, %v1267_v17  ;;  %v612_v3 = vmul.f32 %v1267_v17, %v492_v63  ;;  %v556_v4 = vpop.f32.mrb[7].mxu1 }
  0xfc   : > { %v684_v5 = vmax.f32 %v652_v59, 0.0  ;;  %v666_v6 = vadd.f32 %v1272_v19, %v627_v60  ;;  %v653_v7 = vadd.f32 %v1272_v19, %v614_v61  ;;  %v628_v8 = vmul.f32 %v1267_v17, %v556_v4 }
  0xfd   : > { %v700_v9 = vmax.f32 %v668_v0, 0.0  ;;  %v682_v10 = vmax.f32 %v650_v1, 0.0  ;;  %v669_v11 = vadd.f32 %v1272_v19, %v630_v2  ;;  %v651_v12 = vadd.f32 %v1272_v19, %v612_v3 }
  0xfe   : > { %716 = vst [vmem:[%s1291_s22 + $0x30] sm:$0xff] %v684_v5  ;;  %v698_v13 = vmax.f32 %v666_v6, 0.0  ;;  %v685_v14 = vmax.f32 %v653_v7, 0.0  ;;  %v667_v15 = vadd.f32 %v1272_v19, %v628_v8 }
  0xff   : > { %732 = vst [vmem:[%s1291_s22 + $0xb0] sm:$0xff] %v700_v9  ;;  %714 = vst [vmem:[%s1291_s22 + $0x20] sm:$0xff] %v682_v10  ;;  %v701_v16 = vmax.f32 %v669_v11, 0.0  ;;  %v683_v18 = vmax.f32 %v651_v12, 0.0  ;;  %v960_v20 = vpop.f32.mrb[8].mxu0 }
 0x100   : > { %730 = vst [vmem:[%s1291_s22 + $0xa0] sm:$0xff] %v698_v13  ;;  %717 = vst [vmem:[%s1291_s22 + $0x38] sm:$0xff] %v685_v14  ;;  %v699_v21 = vmax.f32 %v667_v15, 0.0  ;;  %v617_v22 = vmul.f32 %v960_v20, %v1267_v17  ;;  %v976_v23 = vpop.f32.mrb[8].mxu1  ;;  %v505_v24 = vpop.f32.mrb[9].mxu0 }
 0x101   : > { %733 = vst [vmem:[%s1291_s22 + $0xb8] sm:$0xff] %v701_v16  ;;  %715 = vst [vmem:[%s1291_s22 + $0x28] sm:$0xff] %v683_v18  ;;  %v633_v25 = vmul.f32 %v976_v23, %v1267_v17  ;;  %v615_v26 = vmul.f32 %v1267_v17, %v505_v24  ;;  %v569_v27 = vpop.f32.mrb[9].mxu1  ;;  %v961_v28 = vpop.f32.mrb[10].mxu0 }
 0x102   : > { %731 = vst [vmem:[%s1291_s22 + $0xa8] sm:$0xff] %v699_v21  ;;  %v656_v29 = vadd.f32 %v1272_v19, %v617_v22  ;;  %v631_v30 = vmul.f32 %v1267_v17, %v569_v27  ;;  %v618_v31 = vmul.f32 %v961_v28, %v1267_v17  ;;  %v977_v32 = vpop.f32.mrb[10].mxu1  ;;  %v508_v33 = vpop.f32.mrb[11].mxu0 }
 0x103   : > { %v672_v34 = vadd.f32 %v1272_v19, %v633_v25  ;;  %v654_v35 = vadd.f32 %v1272_v19, %v615_v26  ;;  %v634_v36 = vmul.f32 %v977_v32, %v1267_v17  ;;  %v616_v37 = vmul.f32 %v1267_v17, %v508_v33  ;;  %v572_v38 = vpop.f32.mrb[11].mxu1 }
 0x104   : > { %v688_v39 = vmax.f32 %v656_v29, 0.0  ;;  %v670_v40 = vadd.f32 %v1272_v19, %v631_v30  ;;  %v657_v41 = vadd.f32 %v1272_v19, %v618_v31  ;;  %v632_v42 = vmul.f32 %v1267_v17, %v572_v38 }
 0x105   : > { %v704_v43 = vmax.f32 %v672_v34, 0.0  ;;  %v686_v44 = vmax.f32 %v654_v35, 0.0  ;;  %v673_v45 = vadd.f32 %v1272_v19, %v634_v36  ;;  %v655_v46 = vadd.f32 %v1272_v19, %v616_v37 }
 0x106   : > { %720 = vst [vmem:[%s1291_s22 + $0x50] sm:$0xff] %v688_v39  ;;  %v702_v47 = vmax.f32 %v670_v40, 0.0  ;;  %v689_v48 = vmax.f32 %v657_v41, 0.0  ;;  %v671_v49 = vadd.f32 %v1272_v19, %v632_v42 }
 0x107   : > { %736 = vst [vmem:[%s1291_s22 + $0xd0] sm:$0xff] %v704_v43  ;;  %718 = vst [vmem:[%s1291_s22 + $0x40] sm:$0xff] %v686_v44  ;;  %v705_v50 = vmax.f32 %v673_v45, 0.0  ;;  %v687_v51 = vmax.f32 %v655_v46, 0.0  ;;  %v964_v52 = vpop.f32.mrb[12].mxu0 }
 0x108   : > { %734 = vst [vmem:[%s1291_s22 + $0xc0] sm:$0xff] %v702_v47  ;;  %721 = vst [vmem:[%s1291_s22 + $0x58] sm:$0xff] %v689_v48  ;;  %v703_v53 = vmax.f32 %v671_v49, 0.0  ;;  %v621_v54 = vmul.f32 %v964_v52, %v1267_v17  ;;  %v980_v55 = vpop.f32.mrb[12].mxu1  ;;  %v521_v56 = vpop.f32.mrb[13].mxu0 }
 0x109   : > { %737 = vst [vmem:[%s1291_s22 + $0xd8] sm:$0xff] %v705_v50  ;;  %719 = vst [vmem:[%s1291_s22 + $0x48] sm:$0xff] %v687_v51  ;;  %v637_v57 = vmul.f32 %v980_v55, %v1267_v17  ;;  %v619_v58 = vmul.f32 %v1267_v17, %v521_v56  ;;  %v585_v59 = vpop.f32.mrb[13].mxu1  ;;  %v965_v60 = vpop.f32.mrb[14].mxu0 }
 0x10a   : > { %735 = vst [vmem:[%s1291_s22 + $0xc8] sm:$0xff] %v703_v53  ;;  %v660_v61 = vadd.f32 %v1272_v19, %v621_v54  ;;  %v635_v62 = vmul.f32 %v1267_v17, %v585_v59  ;;  %v622_v63 = vmul.f32 %v965_v60, %v1267_v17  ;;  %v981_v0 = vpop.f32.mrb[14].mxu1  ;;  %v524_v1 = vpop.f32.mrb[15].mxu0 }
 0x10b   : > { %v676_v2 = vadd.f32 %v1272_v19, %v637_v57  ;;  %v658_v3 = vadd.f32 %v1272_v19, %v619_v58  ;;  %v638_v4 = vmul.f32 %v981_v0, %v1267_v17  ;;  %v620_v5 = vmul.f32 %v1267_v17, %v524_v1  ;;  %v588_v6 = vpop.f32.mrb[15].mxu1 }
 0x10c   : > { %v692_v7 = vmax.f32 %v660_v61, 0.0  ;;  %v674_v8 = vadd.f32 %v1272_v19, %v635_v62  ;;  %v661_v9 = vadd.f32 %v1272_v19, %v622_v63  ;;  %v636_v10 = vmul.f32 %v1267_v17, %v588_v6 }
 0x10d   : > { %v708_v11 = vmax.f32 %v676_v2, 0.0  ;;  %v690_v12 = vmax.f32 %v658_v3, 0.0  ;;  %v677_v13 = vadd.f32 %v1272_v19, %v638_v4  ;;  %v659_v14 = vadd.f32 %v1272_v19, %v620_v5 }
 0x10e   : > { %724 = vst [vmem:[%s1291_s22 + $0x70] sm:$0xff] %v692_v7  ;;  %v706_v15 = vmax.f32 %v674_v8, 0.0  ;;  %v693_v16 = vmax.f32 %v661_v9, 0.0  ;;  %v675_v18 = vadd.f32 %v1272_v19, %v636_v10 }
 0x10f   : > { %740 = vst [vmem:[%s1291_s22 + $0xf0] sm:$0xff] %v708_v11  ;;  %722 = vst [vmem:[%s1291_s22 + $0x60] sm:$0xff] %v690_v12  ;;  %v709_v17 = vmax.f32 %v677_v13, 0.0  ;;  %v691_v20 = vmax.f32 %v659_v14, 0.0 }
 0x110   : > { %738 = vst [vmem:[%s1291_s22 + $0xe0] sm:$0xff] %v706_v15  ;;  %725 = vst [vmem:[%s1291_s22 + $0x78] sm:$0xff] %v693_v16  ;;  %v707_v21 = vmax.f32 %v675_v18, 0.0 }
 0x111   : > { %741 = vst [vmem:[%s1291_s22 + $0xf8] sm:$0xff] %v709_v17  ;;  %723 = vst [vmem:[%s1291_s22 + $0x68] sm:$0xff] %v691_v20 }
 0x112   : > { %739 = vst [vmem:[%s1291_s22 + $0xe8] sm:$0xff] %v707_v21 }
 0x113   : > { %1071 = shalt.err (!%p1068_p5)
}
 0x114   : > { %s1072_s10 = scalar_lea.hbm %s1374_s30, 4096  ;;  %s1076_s13 = scalar_lea.hbm %s1435_s4, 8192 }
 0x115   : > { %p1073_p6 = scmp.ne.s32.totalorder %s1374_s30, %s1072_s10  ;;  %p1077_p10 = scmp.lt.u32.totalorder %s1374_s30, %s1435_s4 }
 0x116   : > { %p1078_p11 = scmp.lt.u32.totalorder %s1076_s13, %s1072_s10  ;;  %p1080_p13 = scmp.lt.u32.totalorder %s1072_s10, %s1374_s30 }
 0x117   : > { %p1074_p7 = pnand %p1073_p6, %p1206_p4 }
 0x118   : > { %p1079_p12 = por %p1078_p11, %p1077_p10 }
 0x119   : > { %p1075_p9 = pneg %p1074_p7 }
 0x11a   : > { %p1081_p0 = por %p1080_p13, %p1079_p12 }
 0x11c   : > { %p1082_p1 = pnand %p1081_p0, %p1075_p9 }
 0x11e   : > { %1085 = shalt.err (!%p1082_p1)
}
 0x11f   : > { %s1139_s22 = smov 128   ;;  %s1140_s24 = smov 8  }
 0x120   : > { %984 = dma.vmem_to_hbm [thread:$0]  (%p1206_p4), %s1376_s26, 4096, %s1374_s30, %s1385_s5, %s1139_s22, %s1139_s22, %s1140_s24  }
 0x121 PF: > { %p990_p2 = scmp.ge.s32.totalorder %s1136_s20, 2  ;;  %s775_s18 = sand.u32 1, %s1116_s15  }
 0x122   : > { %s776_s29 = scalar_lea.sflag [#allocation3], %s775_s18 }
 0x123   : > { %p987_p3 = pnand %p990_p2, %p1213_p8 }
 0x125   : > { %1111 = dma.done.wait (!%p987_p3), %s776_s29, 4096  }
 0x126   : > { %1113 = vsyncadd (!%p987_p3), %s776_s29, 4294963200  ;;  %s17_s20 = sadd.s32 1, %s1136_s20   ;;  %s1438_s15 = smov %s1120_s16 }
 0x127   : > { %p14_p5 = scmp.ge.s32.totalorder %s17_s20, 4   ;;  %s1439_s16 = smov %s1124_s17 }
 0x128   : > { %s1440_s17 = smov %s1219_s28  ;;  %s1441_s18 = smov %s1132_s19 }
 0x129   : > { %s1442_s19 = smov %s1444_s23  ;;  %16 = sbr.rel (!%p14_p5) target bundleno = 4 (0x4), region = 81 }
 0x130   :  { %781 = vsyncpa [#allocation3], 1 }
 0x131   :  { %783 = vsyncpa [#allocation3 + $0x1], 1 }

// kernel: fwd.3
= control target key start
LH: loop header
LB: loop body
LE: loop exit
PB: predicated region body
PF: predicated region fallthrough
CT: control target
= control target key end

     0   :  { %9 = vsyncpa [#allocation3], 0  ;;  %s8648_s0 = inlined_call_operand.vmem [shape: bf16[2,18,18,16], index: 0, kind: input, shape index: {}]   ;;  %s8649_s1 = inlined_call_operand.vmem [shape: bf16[9,16,128], index: 1, kind: input, shape index: {}]   ;;  %s8650_s2 = inlined_call_operand.vmem [shape: f32[1,128], index: 2, kind: input, shape index: {}]   ;;  %s8651_s3 = inlined_call_operand.vmem [shape: f32[1,128], index: 3, kind: input, shape index: {}]   ;;  %s8652_s4 = inlined_call_operand.hbm [shape: f32[2,16,16,128], index: 4, kind: output, shape index: {}]  }
   0x1   :  { %11 = vsyncpa [#allocation3 + $0x1], 0  ;;  %s6726_s15 = smov 0   ;;  %s6728_s16 = smov 0  }
   0x2   :  { %s6730_s17 = smov 0   ;;  %s6732_s18 = smov 0  }
   0x3   :  { %s6734_s19 = smov 0   ;;  %s6736_s20 = smov 0  }
   0x4 LB: > { %s5156_s21 = sadd.s32 4294967295, %s6696_s20   ;;  %s5157_s22 = sadd.s32 4294967294, %s6696_s20   ;;  %s6696_s20 = sphi %s6736_s20, %s17_s20   ;;  %s6692_s19 = sphi %s6734_s19, %s8723_s19   ;;  %s6688_s18 = sphi %s6732_s18, %s8722_s18   ;;  %s6684_s17 = sphi %s6730_s17, %s8721_s17   ;;  %s6680_s16 = sphi %s6728_s16, %s8720_s16   ;;  %s6676_s15 = sphi %s6726_s15, %s8719_s15  }
   0x5   : > { %s36_s23 = sadd.s32 1, %s6692_s19  ;;  %s151_s24 = sadd.s32 1, %s6684_s17 }
   0x6   : > { %p38_p0 = scmp.ge.s32.totalorder %s36_s23, 2  ;;  %p161_p1 = scmp.ne.s32.totalorder %s6684_s17, %s6680_s16 }
   0x7   : > { %p162_p2 = scmp.eq.s32.totalorder %s5156_s21, 1  ;;  %p167_p3 = scmp.ne.s32.totalorder %s6680_s16, %s6676_s15 }
   0x8   : > { %s8725_s23 = smov (%p38_p0, %s36_s23), 0  ;;  %p168_p5 = scmp.eq.s32.totalorder %s5157_s22, 1 }
   0x9   : > { %p6766_p4 = por %p162_p2, %p161_p1  ;;  %s144_s26 = ssub.s32 %s6692_s19, %s8725_s23 }
   0xa   : > { %p5163_p6 = scmp.ge.s32.totalorder %s6696_s20, 1  ;;  %p149_p7 = scmp.eq.s32.totalorder %s144_s26, 0 }
   0xb   : > { %p6773_p8 = por %p168_p5, %p167_p3  ;;  %p213_p9 = scmp.lt.s32.totalorder %s6696_s20, 3 }
   0xc   : > { %s6779_s28 = scalar_select %p149_p7, %s6684_s17, %s151_s24  }
   0xd   : > { %p214_p10 = pnand %p5163_p6, %p213_p9 }
   0xf   : > { %217 = sbr.rel (%p214_p10) target bundleno = 613 (0x265), region = 36 }
  0x16   : > { %v6502_v0 = vld [vmem:[%s8649_s1 + $0x8] sm:$0xff]   ;;  %p249_p11 = scmp.lt.s32.totalorder %s6688_s18, 1  ;;  %v6503_v1 = vld [vmem:[%s8649_s1 + $0x20] sm:$0xff]   ;;  %vm320_vm0 = vsmask.f32 3328  ;;  %vm764_vm3 = vcmask 130048  }
  0x17   : > { %5880 = vmatprep.subr.bf16.mxu1 %v6502_v0  ;;  %v6792_v2 = vld [vmem:[%s8649_s1] sm:$0xff]   ;;  %6016 = vmatprep.subr.bf16.mxu0 %v6503_v1  ;;  %v6798_v3 = vld [vmem:[%s8649_s1 + $0x28] sm:$0xff]   ;;  %vm321_vm1 = vsmask.f32 7440  ;;  %vm1317_vm4 = vcmask 1042432   ;;  %vm1318_vm5 = vcmask 1046532  }
  0x18   : > { %s250_s7 = scalar_select %p249_p11, %s6688_s18, 1  ;;  %5881 = vmatpush3.bf16.msra.mxu1 %v6502_v0  ;;  %6017 = vmatpush3.bf16.msra.mxu0 %v6503_v1  ;;  %vm6822_vm2 = vmor %vm320_vm0, %vm321_vm1 }
  0x19   : > { %5914 = vmatprep.subr.bf16.mxu1 %v6792_v2  ;;  %6050 = vmatprep.subr.bf16.mxu0 %v6798_v3  ;;  %vm7044_vm6 = vmor %vm1317_vm4, %vm1318_vm5  ;;  %s246_s14 = sand.u32 1, %s6680_s16   ;;  %s5726_s5 = sshll.u32 %s6688_s18, 12 }
  0x1a   : > { %s6444_s10 = smul.u32 216, %s250_s7  ;;  %s5164_s29 = sshll.u32 %s246_s14, 8 }
  0x1b   : > { %s8495_s30 = scalar_lea.vmem [#allocation2], %s5164_s29  ;;  %s8593_s9 = scalar_lea.hbm %s8652_s4, %s5726_s5 }
  0x1c   : > { %s6803_s21 = scalar_lea.vmem %s8648_s0, %s6444_s10  ;;  %s5030_s6 = sshll.u32 %s8495_s30, 4  ;;  %s8595_s6 = int_to_ptr.vmem [resolvable:$true] %s5030_s6 }
  0x1d   : > { %v270_v4 = vld [vmem:[%s6803_s21] sm:$0xf]  ;;  %v271_v5 = vld [vmem:[%s6803_s21 + $0x4] sm:$0xf]  ;;  %v304_v6 = vld [vmem:[%s6803_s21 + $0x8] sm:$0x1] }
  0x1e   : > { %v324_v7 = vshrl.u32 %v270_v4, 16  ;;  %v327_v8 = vshll.u32 %v270_v4, 16  ;;  %v333_v9 = vshll.u32 %v271_v5, 16  ;;  %v337_v10 = vshrl.u32 %v271_v5, 16  ;;  %v5352_v11 = vld [vmem:[%s6803_s21 + $0xc] sm:$0xf] }
  0x1f   : > { %v343_v12 = vshll.u32 %v304_v6, 16  ;;  %v6811_v13 = vld [vmem:[%s6803_s21 + $0x10] sm:$0xf]  ;;  %v6814_v14 = vld [vmem:[%s6803_s21 + $0x14] sm:$0x1]  ;;  %v2145_v20 = vshrl.u32 %v5352_v11, 16 }
  0x20   : > { %v326_v15 = vrot.slane %v324_v7, 4  ;;  %v329_v16 = vrot.slane %v327_v8, 5  ;;  %v335_v17 = vrot.slane %v333_v9, 5  ;;  %v339_v18 = vrot.slane %v337_v10, 4  ;;  %v272_v27 = vld [vmem:[%s6803_s21 + $0xc] sm:$0xf] }
  0x21   : > { %v345_v19 = vrot.slane %v343_v12, 5  ;;  %v2148_v21 = vshll.u32 %v5352_v11, 16  ;;  %v2154_v22 = vshll.u32 %v6811_v13, 16  ;;  %v2158_v25 = vshrl.u32 %v6811_v13, 16  ;;  %v273_v32 = vld [vmem:[%s6803_s21 + $0x10] sm:$0xf] }
  0x22   : > { %v330_v23 = vor.u32 %v329_v16, %v326_v15  ;;  %v340_v24 = vor.u32 %v339_v18, %v335_v17  ;;  %v2164_v26 = vshll.u32 %v6814_v14, 16  ;;  %v2147_v29 = vrot.slane %v2145_v20, 4  ;;  %v305_v38 = vld [vmem:[%s6803_s21 + $0x14] sm:$0x1]  ;;  %v5355_v49 = vld [vmem:[%s6803_s21 + $0x18] sm:$0xf] }
  0x23   : > { %v2150_v30 = vrot.slane %v2148_v21, 5  ;;  %v2156_v31 = vrot.slane %v2154_v22, 5  ;;  %v2160_v35 = vrot.slane %v2158_v25, 4  ;;  %v348_v39 = vshrl.u32 %v272_v27, 16  ;;  %v6834_v54 = vld [vmem:[%s6803_s21 + $0x1c] sm:$0xf] }
  0x24   : > { %v331_v33 = vrot.slane %v330_v23, 4  ;;  %v341_v34 = vrot.slane %v340_v24, 4  ;;  %v2166_v37 = vrot.slane %v2164_v26, 5  ;;  %v351_v40 = vshll.u32 %v272_v27, 16  ;;  %v6842_v59 = vld [vmem:[%s6803_s21 + $0x20] sm:$0x1] }
  0x25   : > { %v2151_v36 = vor.u32 %v2150_v30, %v2147_v29  ;;  %v2161_v43 = vor.u32 %v2160_v35, %v2156_v31  ;;  %v357_v44 = vshll.u32 %v273_v32, 16  ;;  %v350_v47 = vrot.slane %v348_v39, 4  ;;  %v274_v10 = vld [vmem:[%s6803_s21 + $0x18] sm:$0xf]  ;;  %v306_v24 = vld [vmem:[%s6803_s21 + $0x20] sm:$0x1] }
  0x26   : > { %v336_v41 = vsel %vm6822_vm2, %v331_v33, %v335_v17  ;;  %v346_v42 = vsel %vm6822_vm2, %v341_v34, %v345_v19  ;;  %v353_v48 = vrot.slane %v351_v40, 5  ;;  %v361_v52 = vshrl.u32 %v273_v32, 16  ;;  %v275_v17 = vld [vmem:[%s6803_s21 + $0x1c] sm:$0xf]  ;;  %v5358_v32 = vld [vmem:[%s6803_s21 + $0x24] sm:$0xf] }
  0x27   : > { %v5168_v45 = vcombine.low %v336_v41, %v346_v42  ;;  %v2152_v46 = vrot.slane %v2151_v36, 4  ;;  %v2162_v50 = vrot.slane %v2161_v43, 4  ;;  %v359_v51 = vrot.slane %v357_v44, 5  ;;  %s8602_s18 = scalar_lea.sflag [#allocation3], %s246_s14  ;;  %s6618_s10 = scalar_lea.vmem %s8595_s6, 4096 }
  0x28   : > { %v367_v53 = vshll.u32 %v305_v38, 16  ;;  %v2892_v56 = vrot.slane %v6811_v13, 5  ;;  %v2895_v57 = vrot.slane %v6814_v14, 5  ;;  %v354_v58 = vor.u32 %v353_v48, %v350_v47  ;;  %v6508_v38 = vld [vmem:[%s8649_s1 + $0x10] sm:$0xff]   ;;  %v7077_v14 = vld [vmem:[%s6803_s21 + $0x7c] sm:$0xf]  ;;  %p6619_p12 = scmp.ne.s32.totalorder %s8595_s6, %s6618_s10 }
  0x29   : > { %5882 = vmatprep.mubr.msk.bf16.mxu1 %vm764_vm3, %v5168_v45  ;;  %v2157_v55 = vsel %vm6822_vm2, %v2152_v46, %v2156_v31  ;;  %v2167_v60 = vsel %vm6822_vm2, %v2162_v50, %v2166_v37  ;;  %v363_v61 = vrot.slane %v361_v52, 4  ;;  %v2169_v63 = vshrl.u32 %v5355_v49, 16  ;;  %v6865_v37 = vld [vmem:[%s6803_s21 + $0x28] sm:$0xf]  ;;  %v6874_v45 = vld [vmem:[%s6803_s21 + $0x2c] sm:$0x1] }
  0x2a   : > { %v369_v62 = vrot.slane %v367_v53, 5  ;;  %v5402_v0 = vcombine.low %v2157_v55, %v2167_v60  ;;  %v355_v1 = vrot.slane %v354_v58, 4  ;;  %v2172_v4 = vshll.u32 %v5355_v49, 16  ;;  %v276_v52 = vld [vmem:[%s6803_s21 + $0x24] sm:$0xf]  ;;  %p6620_p13 = pnand %p6619_p12, %p6766_p4  ;;  %s6698_s11 = smov [#allocation2]  }
  0x2b   : > { %v2178_v5 = vshll.u32 %v6834_v54, 16  ;;  %v364_v6 = vor.u32 %v363_v61, %v359_v51  ;;  %v2171_v7 = vrot.slane %v2169_v63, 4  ;;  %v2182_v8 = vshrl.u32 %v6834_v54, 16  ;;  %v277_v61 = vld [vmem:[%s6803_s21 + $0x28] sm:$0xf]  ;;  %s6622_s12 = sshll.u32 %s6698_s11, 4  ;;  %s6623_s12 = int_to_ptr.vmem [resolvable:$false] %s6622_s12 }
  0x2c   : > { %v2188_v9 = vshll.u32 %v6842_v59, 16  ;;  %6018 = vmatprep.mubr.msk.bf16.mxu0 %vm764_vm3, %v5402_v0  ;;  %v360_v11 = vsel %vm6822_vm2, %v355_v1, %v359_v51  ;;  %v2174_v12 = vrot.slane %v2172_v4, 5  ;;  %v2899_v16 = vrot.slane %v6834_v54, 5  ;;  %p6621_p0 = pneg %p6620_p13  ;;  %s6624_s13 = scalar_lea.vmem %s6623_s12, 8192 }
  0x2d   : > { %v2180_v15 = vrot.slane %v2178_v5, 5  ;;  %v365_v18 = vrot.slane %v364_v6, 4  ;;  %v2184_v19 = vrot.slane %v2182_v8, 4  ;;  %v2902_v21 = vrot.slane %v6842_v59, 5  ;;  %v307_v6 = vld [vmem:[%s6803_s21 + $0x2c] sm:$0x1]  ;;  %p6625_p1 = scmp.lt.s32.totalorder %s8595_s6, %s6623_s12  ;;  %p6626_p2 = scmp.lt.s32.totalorder %s6624_s13, %s6618_s10 }
  0x2e   : > { %v2190_v20 = vrot.slane %v2188_v9, 5  ;;  %v2175_v22 = vor.u32 %v2174_v12, %v2171_v7  ;;  %v6858_v23 = vrot.slane %v2899_v16, 4  ;;  %v372_v25 = vshrl.u32 %v274_v10, 16 }
  0x2f   : > { %v375_v26 = vshll.u32 %v274_v10, 16  ;;  %v370_v27 = vsel %vm6822_vm2, %v365_v18, %v369_v62  ;;  %v2185_v29 = vor.u32 %v2184_v19, %v2180_v15  ;;  %v381_v30 = vshll.u32 %v275_v17, 16  ;;  %v6885_v62 = vld [vmem:[%s8649_s1 + $0x30] sm:$0xff]   ;;  %p6627_p3 = por %p6626_p2, %p6625_p1 }
  0x30   : > { %v385_v31 = vshrl.u32 %v275_v17, 16  ;;  %v5169_v33 = vcombine.low %v360_v11, %v370_v27  ;;  %v2176_v34 = vrot.slane %v2175_v22, 4  ;;  %v374_v35 = vrot.slane %v372_v25, 4  ;;  %v6898_v22 = vld [vmem:[%s6803_s21 + $0x34] sm:$0xf] }
  0x31   : > { %v377_v36 = vrot.slane %v375_v26, 5  ;;  %v2186_v39 = vrot.slane %v2185_v29, 4  ;;  %v383_v40 = vrot.slane %v381_v30, 5  ;;  %v391_v42 = vshll.u32 %v306_v24, 16  ;;  %v6905_v30 = vld [vmem:[%s6803_s21 + $0x38] sm:$0x1]  ;;  %p6628_p5 = pnand %p6627_p3, %p6621_p0 }
  0x32   : > { %v387_v41 = vrot.slane %v385_v31, 4  ;;  %5883 = vmatmul.mubr.msk.bf16.vlgmr.msra.gmra.mrb[0].mxu1 %vm764_vm3, %v5169_v33  ;;  %v2181_v43 = vsel %vm6822_vm2, %v2176_v34, %v2180_v15  ;;  %v2193_v46 = vshrl.u32 %v5358_v32, 16  ;;  %v2196_v47 = vshll.u32 %v5358_v32, 16  ;;  %v5361_v15 = vld [vmem:[%s6803_s21 + $0x30] sm:$0xf] }
  0x33   : > { %v378_v44 = vor.u32 %v377_v36, %v374_v35  ;;  %5915 = vmatpush3.bf16.msra.mxu1 %v6792_v2  ;;  %v2191_v48 = vsel %vm6822_vm2, %v2186_v39, %v2190_v20  ;;  %v393_v50 = vrot.slane %v391_v42, 5  ;;  %v2202_v51 = vshll.u32 %v6865_v37, 16  ;;  %v278_v42 = vld [vmem:[%s6803_s21 + $0x30] sm:$0xf] }
  0x34   : > { %v388_v49 = vor.u32 %v387_v41, %v383_v40  ;;  %v5403_v53 = vcombine.low %v2181_v43, %v2191_v48  ;;  %v2195_v58 = vrot.slane %v2193_v46, 4  ;;  %v2198_v60 = vrot.slane %v2196_v47, 5  ;;  %5948 = vmatprep.subr.bf16.mxu1 %v6508_v38  ;;  %v279_v48 = vld [vmem:[%s6803_s21 + $0x34] sm:$0xf] }
  0x35   : > { %v379_v55 = vrot.slane %v378_v44, 4  ;;  %v2204_v63 = vrot.slane %v2202_v51, 5  ;;  %v2206_v0 = vshrl.u32 %v6865_v37, 16  ;;  %v2212_v1 = vshll.u32 %v6874_v45, 16 }
  0x36   : > { %v389_v2 = vrot.slane %v388_v49, 4  ;;  %6019 = vmatmul.mubr.msk.bf16.vlgmr.msra.gmra.mrb[0].mxu0 %vm764_vm3, %v5403_v53  ;;  %v2199_v5 = vor.u32 %v2198_v60, %v2195_v58  ;;  %v396_v7 = vshrl.u32 %v276_v52, 16  ;;  %v399_v8 = vshll.u32 %v276_v52, 16  ;;  %v308_v53 = vld [vmem:[%s6803_s21 + $0x38] sm:$0x1] }
  0x37   : > { %v384_v4 = vsel %vm6822_vm2, %v379_v55, %v383_v40  ;;  %6051 = vmatpush3.bf16.msra.mxu0 %v6798_v3  ;;  %v2208_v10 = vrot.slane %v2206_v0, 4  ;;  %v2214_v11 = vrot.slane %v2212_v1, 5  ;;  %v405_v12 = vshll.u32 %v277_v61, 16 }
  0x38   : > { %v394_v9 = vsel %vm6822_vm2, %v389_v2, %v393_v50  ;;  %v2200_v18 = vrot.slane %v2199_v5, 4  ;;  %v398_v19 = vrot.slane %v396_v7, 4  ;;  %v401_v20 = vrot.slane %v399_v8, 5  ;;  %6084 = vmatprep.subr.bf16.mxu0 %v6885_v62 }
  0x39   : > { %v5170_v17 = vcombine.low %v384_v4, %v394_v9  ;;  %v2209_v24 = vor.u32 %v2208_v10, %v2204_v63  ;;  %v407_v25 = vrot.slane %v405_v12, 5  ;;  %v409_v26 = vshrl.u32 %v277_v61, 16  ;;  %v5364_v4 = vld [vmem:[%s6803_s21 + $0x3c] sm:$0xf]  ;;  %v6922_v9 = vld [vmem:[%s6803_s21 + $0x40] sm:$0xf] }
  0x3a   : > { %v415_v3 = vshll.u32 %v307_v6, 16  ;;  %v2205_v27 = vsel %vm6822_vm2, %v2200_v18, %v2204_v63  ;;  %v402_v29 = vor.u32 %v401_v20, %v398_v19  ;;  %v2217_v31 = vshrl.u32 %v5361_v15, 16  ;;  %v6927_v20 = vld [vmem:[%s6803_s21 + $0x44] sm:$0x1] }
  0x3b   : > { %5886 = vmatprep.mubr.msk.bf16.mxu1 %vm764_vm3, %v5170_v17  ;;  %v2220_v32 = vshll.u32 %v5361_v15, 16  ;;  %v2210_v33 = vrot.slane %v2209_v24, 4  ;;  %v411_v34 = vrot.slane %v409_v26, 4  ;;  %v2226_v36 = vshll.u32 %v6898_v22, 16 }
  0x3c   : > { %v417_v35 = vrot.slane %v415_v3, 5  ;;  %v403_v38 = vrot.slane %v402_v29, 4  ;;  %v2219_v39 = vrot.slane %v2217_v31, 4  ;;  %v2230_v41 = vshrl.u32 %v6898_v22, 16  ;;  %v280_v29 = vld [vmem:[%s6803_s21 + $0x3c] sm:$0xf] }
  0x3d   : > { %v2222_v40 = vrot.slane %v2220_v32, 5  ;;  %v2215_v43 = vsel %vm6822_vm2, %v2210_v33, %v2214_v11  ;;  %v412_v44 = vor.u32 %v411_v34, %v407_v25  ;;  %v2228_v46 = vrot.slane %v2226_v36, 5 }
  0x3e   : > { %v2236_v47 = vshll.u32 %v6905_v30, 16  ;;  %v5404_v49 = vcombine.low %v2205_v27, %v2215_v43  ;;  %v408_v50 = vsel %vm6822_vm2, %v403_v38, %v407_v25  ;;  %v2232_v52 = vrot.slane %v2230_v41, 4 }
  0x3f   : > { %v2223_v51 = vor.u32 %v2222_v40, %v2219_v39  ;;  %v413_v55 = vrot.slane %v412_v44, 4  ;;  %v420_v60 = vshrl.u32 %v278_v42, 16  ;;  %v423_v61 = vshll.u32 %v278_v42, 16 }
  0x40   : > { %v2238_v58 = vrot.slane %v2236_v47, 5  ;;  %6022 = vmatprep.mubr.msk.bf16.mxu0 %vm764_vm3, %v5404_v49  ;;  %v2233_v63 = vor.u32 %v2232_v52, %v2228_v46  ;;  %v429_v0 = vshll.u32 %v279_v48, 16  ;;  %v433_v1 = vshrl.u32 %v279_v48, 16  ;;  %v309_v49 = vld [vmem:[%s6803_s21 + $0x44] sm:$0x1] }
  0x41   : > { %v2224_v2 = vrot.slane %v2223_v51, 4  ;;  %v418_v5 = vsel %vm6822_vm2, %v413_v55, %v417_v35  ;;  %v422_v6 = vrot.slane %v420_v60, 4  ;;  %v425_v7 = vrot.slane %v423_v61, 5  ;;  %v281_v35 = vld [vmem:[%s6803_s21 + $0x40] sm:$0xf] }
  0x42   : > { %v439_v8 = vshll.u32 %v308_v53, 16  ;;  %v5171_v10 = vcombine.low %v408_v50, %v418_v5  ;;  %v2234_v12 = vrot.slane %v2233_v63, 4  ;;  %v431_v15 = vrot.slane %v429_v0, 5  ;;  %v5367_v51 = vld [vmem:[%s6803_s21 + $0x48] sm:$0xf] }
  0x43   : > { %v2229_v11 = vsel %vm6822_vm2, %v2224_v2, %v2228_v46  ;;  %v426_v17 = vor.u32 %v425_v7, %v422_v6  ;;  %v435_v18 = vrot.slane %v433_v1, 4  ;;  %v2241_v24 = vshrl.u32 %v5364_v4, 16  ;;  %v6945_v60 = vld [vmem:[%s6803_s21 + $0x4c] sm:$0xf] }
  0x44   : > { %v441_v19 = vrot.slane %v439_v8, 5  ;;  %5887 = vmatmul.mubr.msk.bf16.gmra.mrb[4].mxu1 %vm764_vm3, %v5171_v10  ;;  %v2239_v25 = vsel %vm6822_vm2, %v2234_v12, %v2238_v58  ;;  %v2244_v26 = vshll.u32 %v5364_v4, 16  ;;  %v2250_v3 = vshll.u32 %v6922_v9, 16  ;;  %v6953_v10 = vld [vmem:[%s6803_s21 + $0x50] sm:$0x1] }
  0x45   : > { %v2254_v27 = vshrl.u32 %v6922_v9, 16  ;;  %v5405_v31 = vcombine.low %v2229_v11, %v2239_v25  ;;  %v427_v32 = vrot.slane %v426_v17, 4  ;;  %v436_v33 = vor.u32 %v435_v18, %v431_v15  ;;  %v6960_v25 = vld [vmem:[%s6803_s21 + $0x4c] sm:$0xf] }
  0x46   : > { %v2243_v34 = vrot.slane %v2241_v24, 4  ;;  %v2246_v36 = vrot.slane %v2244_v26, 5  ;;  %v2252_v38 = vrot.slane %v2250_v3, 5  ;;  %v2260_v40 = vshll.u32 %v6927_v20, 16 }
  0x47   : > { %v2256_v39 = vrot.slane %v2254_v27, 4  ;;  %6023 = vmatmul.mubr.msk.bf16.gmra.mrb[4].mxu0 %vm764_vm3, %v5405_v31  ;;  %v432_v41 = vsel %vm6822_vm2, %v427_v32, %v431_v15  ;;  %v437_v42 = vrot.slane %v436_v33, 4  ;;  %v444_v43 = vshrl.u32 %v280_v29, 16  ;;  %v6957_v15 = vld [vmem:[%s6803_s21 + $0x48] sm:$0xf] }
  0x48   : > { %v447_v44 = vshll.u32 %v280_v29, 16  ;;  %v2247_v46 = vor.u32 %v2246_v36, %v2243_v34  ;;  %v2262_v48 = vrot.slane %v2260_v40, 5  ;;  %v453_v50 = vshll.u32 %v281_v35, 16  ;;  %v310_v34 = vld [vmem:[%s6803_s21 + $0x50] sm:$0x1] }
  0x49   : > { %v2257_v47 = vor.u32 %v2256_v39, %v2252_v38  ;;  %v442_v52 = vsel %vm6822_vm2, %v437_v42, %v441_v19  ;;  %v446_v53 = vrot.slane %v444_v43, 4  ;;  %v457_v58 = vshrl.u32 %v281_v35, 16 }
  0x4a   : > { %v449_v55 = vrot.slane %v447_v44, 5  ;;  %v5172_v61 = vcombine.low %v432_v41, %v442_v52  ;;  %v2248_v2 = vrot.slane %v2247_v46, 4  ;;  %v455_v0 = vrot.slane %v453_v50, 5  ;;  %v5370_v41 = vld [vmem:[%s6803_s21 + $0x54] sm:$0xf] }
  0x4b   : > { %v2258_v63 = vrot.slane %v2257_v47, 4  ;;  %v459_v4 = vrot.slane %v457_v58, 4  ;;  %v463_v5 = vshll.u32 %v309_v49, 16  ;;  %v2265_v6 = vshrl.u32 %v5367_v51, 16 }
  0x4c   : > { %v450_v1 = vor.u32 %v449_v55, %v446_v53  ;;  %5890 = vmatprep.mubr.msk.bf16.mxu1 %vm764_vm3, %v5172_v61  ;;  %v2253_v7 = vsel %vm6822_vm2, %v2248_v2, %v2252_v38  ;;  %v2268_v11 = vshll.u32 %v5367_v51, 16  ;;  %v2274_v12 = vshll.u32 %v6945_v60, 16  ;;  %v6976_v51 = vld [vmem:[%s6803_s21 + $0x58] sm:$0xf] }
  0x4d   : > { %v2263_v8 = vsel %vm6822_vm2, %v2258_v63, %v2262_v48  ;;  %v460_v19 = vor.u32 %v459_v4, %v455_v0  ;;  %v465_v24 = vrot.slane %v463_v5, 5  ;;  %v2267_v26 = vrot.slane %v2265_v6, 4 }
  0x4e   : > { %v5406_v17 = vcombine.low %v2253_v7, %v2263_v8  ;;  %v451_v18 = vrot.slane %v450_v1, 4  ;;  %v2270_v3 = vrot.slane %v2268_v11, 5  ;;  %v2276_v27 = vrot.slane %v2274_v12, 5  ;;  %v6986_v8 = vld [vmem:[%s6803_s21 + $0x54] sm:$0xf] }
  0x4f   : > { %v2278_v29 = vshrl.u32 %v6945_v60, 16  ;;  %v461_v32 = vrot.slane %v460_v19, 4  ;;  %v2284_v33 = vshll.u32 %v6953_v10, 16  ;;  %v468_v35 = vshrl.u32 %v6957_v15, 16  ;;  %v6992_v19 = vld [vmem:[%s6803_s21 + $0x58] sm:$0xf] }
  0x50   : > { %6026 = vmatprep.mubr.msk.bf16.mxu0 %vm764_vm3, %v5406_v17  ;;  %v456_v31 = vsel %vm6822_vm2, %v451_v18, %v455_v0  ;;  %v2271_v36 = vor.u32 %v2270_v3, %v2267_v26  ;;  %v471_v39 = vshll.u32 %v6957_v15, 16  ;;  %v477_v40 = vshll.u32 %v6960_v25, 16  ;;  %v6982_v0 = vld [vmem:[%s6803_s21 + $0x5c] sm:$0x1] }
  0x51   : > { %v2280_v38 = vrot.slane %v2278_v29, 4  ;;  %v466_v42 = vsel %vm6822_vm2, %v461_v32, %v465_v24  ;;  %v2286_v43 = vrot.slane %v2284_v33, 5  ;;  %v470_v44 = vrot.slane %v468_v35, 4  ;;  %v311_v33 = vld [vmem:[%s6803_s21 + $0x5c] sm:$0x1] }
  0x52   : > { %v481_v46 = vshrl.u32 %v6960_v25, 16  ;;  %v5173_v47 = vcombine.low %v456_v31, %v466_v42  ;;  %v2272_v48 = vrot.slane %v2271_v36, 4  ;;  %v473_v50 = vrot.slane %v471_v39, 5 }
  0x53   : > { %v2281_v49 = vor.u32 %v2280_v38, %v2276_v27  ;;  %v479_v52 = vrot.slane %v477_v40, 5  ;;  %v487_v55 = vshll.u32 %v310_v34, 16  ;;  %v2289_v58 = vshrl.u32 %v5370_v41, 16  ;;  %v5373_v40 = vld [vmem:[%s6803_s21 + $0x60] sm:$0xf] }
  0x54   : > { %v483_v53 = vrot.slane %v481_v46, 4  ;;  %5891 = vmatmul.mubr.msk.bf16.gmra.mrb[8].mxu1 %vm764_vm3, %v5173_v47  ;;  %v2277_v61 = vsel %vm6822_vm2, %v2272_v48, %v2276_v27  ;;  %v474_v63 = vor.u32 %v473_v50, %v470_v44  ;;  %v2292_v1 = vshll.u32 %v5370_v41, 16  ;;  %v7006_v46 = vld [vmem:[%s6803_s21 + $0x64] sm:$0xf] }
  0x55   : > { %v2282_v2 = vrot.slane %v2281_v49, 4  ;;  %v489_v5 = vrot.slane %v487_v55, 5  ;;  %v2291_v6 = vrot.slane %v2289_v58, 4  ;;  %v2298_v7 = vshll.u32 %v6976_v51, 16  ;;  %v7013_v55 = vld [vmem:[%s6803_s21 + $0x68] sm:$0x1] }
  0x56   : > { %v484_v4 = vor.u32 %v483_v53, %v479_v52  ;;  %v475_v12 = vrot.slane %v474_v63, 4  ;;  %v2294_v17 = vrot.slane %v2292_v1, 5  ;;  %v2302_v18 = vshrl.u32 %v6976_v51, 16 }
  0x57   : > { %v2287_v11 = vsel %vm6822_vm2, %v2282_v2, %v2286_v43  ;;  %v2300_v3 = vrot.slane %v2298_v7, 5  ;;  %v2308_v27 = vshll.u32 %v6982_v0, 16  ;;  %v492_v34 = vshrl.u32 %v6986_v8, 16 }
  0x58   : > { %v5407_v24 = vcombine.low %v2277_v61, %v2287_v11  ;;  %v485_v26 = vrot.slane %v484_v4, 4  ;;  %v480_v29 = vsel %vm6822_vm2, %v475_v12, %v479_v52  ;;  %v2295_v31 = vor.u32 %v2294_v17, %v2291_v6  ;;  %v7023_v17 = vld [vmem:[%s6803_s21 + $0x64] sm:$0xf] }
  0x59   : > { %v2304_v32 = vrot.slane %v2302_v18, 4  ;;  %v2310_v36 = vrot.slane %v2308_v27, 5  ;;  %v495_v38 = vshll.u32 %v6986_v8, 16  ;;  %v501_v39 = vshll.u32 %v6992_v19, 16 }
  0x5a   : > { %6027 = vmatmul.mubr.msk.bf16.gmra.mrb[8].mxu0 %vm764_vm3, %v5407_v24  ;;  %v490_v35 = vsel %vm6822_vm2, %v485_v26, %v489_v5  ;;  %v2296_v42 = vrot.slane %v2295_v31, 4  ;;  %v494_v44 = vrot.slane %v492_v34, 4  ;;  %v505_v49 = vshrl.u32 %v6992_v19, 16  ;;  %v7017_v5 = vld [vmem:[%s6803_s21 + $0x60] sm:$0xf] }
  0x5b   : > { %v5174_v41 = vcombine.low %v480_v29, %v490_v35  ;;  %v2305_v43 = vor.u32 %v2304_v32, %v2300_v3  ;;  %v497_v47 = vrot.slane %v495_v38, 5  ;;  %v503_v48 = vrot.slane %v501_v39, 5  ;;  %v312_v35 = vld [vmem:[%s6803_s21 + $0x68] sm:$0x1] }
  0x5c   : > { %v511_v50 = vshll.u32 %v311_v33, 16  ;;  %v2301_v52 = vsel %vm6822_vm2, %v2296_v42, %v2300_v3  ;;  %v2313_v58 = vshrl.u32 %v5373_v40, 16  ;;  %v2316_v61 = vshll.u32 %v5373_v40, 16 }
  0x5d   : > { %5894 = vmatprep.mubr.msk.bf16.mxu1 %vm764_vm3, %v5174_v41  ;;  %v2306_v53 = vrot.slane %v2305_v43, 4  ;;  %v498_v2 = vor.u32 %v497_v47, %v494_v44  ;;  %v507_v63 = vrot.slane %v505_v49, 4  ;;  %v2322_v4 = vshll.u32 %v7006_v46, 16  ;;  %v5435_v43 = vld [vmem:[%s6803_s21 + $0xc] sm:$0xe] }
  0x5e   : > { %v513_v1 = vrot.slane %v511_v50, 5  ;;  %v2315_v7 = vrot.slane %v2313_v58, 4  ;;  %v2318_v11 = vrot.slane %v2316_v61, 5  ;;  %v2326_v12 = vshrl.u32 %v7006_v46, 16 }
  0x5f   : > { %v2311_v6 = vsel %vm6822_vm2, %v2306_v53, %v2310_v36  ;;  %v499_v24 = vrot.slane %v498_v2, 4  ;;  %v508_v26 = vor.u32 %v507_v63, %v503_v48  ;;  %v2324_v3 = vrot.slane %v2322_v4, 5 }
  0x60   : > { %v5408_v18 = vcombine.low %v2301_v52, %v2311_v6  ;;  %v2319_v27 = vor.u32 %v2318_v11, %v2315_v7  ;;  %v2328_v29 = vrot.slane %v2326_v12, 4  ;;  %v2332_v31 = vshll.u32 %v7013_v55, 16  ;;  %v7051_v7 = vld [vmem:[%s6803_s21 + $0x70] sm:$0xf] }
  0x61   : > { %v516_v32 = vshrl.u32 %v7017_v5, 16  ;;  %v504_v33 = vsel %vm6822_vm2, %v499_v24, %v503_v48  ;;  %v509_v34 = vrot.slane %v508_v26, 4  ;;  %v519_v36 = vshll.u32 %v7017_v5, 16  ;;  %v7038_v48 = vld [vmem:[%s6803_s21 + $0x6c] sm:$0xf] }
  0x62   : > { %6030 = vmatprep.mubr.msk.bf16.mxu0 %vm764_vm3, %v5408_v18  ;;  %v525_v38 = vshll.u32 %v7023_v17, 16  ;;  %v2320_v39 = vrot.slane %v2319_v27, 4  ;;  %v2329_v40 = vor.u32 %v2328_v29, %v2324_v3  ;;  %v2334_v41 = vrot.slane %v2332_v31, 5  ;;  %v313_v31 = vld [vmem:[%s6803_s21 + $0x74] sm:$0x1] }
  0x63   : > { %v518_v42 = vrot.slane %v516_v32, 4  ;;  %v514_v44 = vsel %vm6822_vm2, %v509_v34, %v513_v1  ;;  %v521_v47 = vrot.slane %v519_v36, 5  ;;  %v529_v50 = vshrl.u32 %v7023_v17, 16  ;;  %v5436_v32 = vld [vmem:[%s6803_s21 + $0x18] sm:$0xe] }
  0x64   : > { %v527_v49 = vrot.slane %v525_v38, 5  ;;  %v5175_v52 = vcombine.low %v504_v33, %v514_v44  ;;  %v2325_v53 = vsel %vm6822_vm2, %v2320_v39, %v2324_v3  ;;  %v2330_v58 = vrot.slane %v2329_v40, 4  ;;  %v7070_v38 = vld [vmem:[%s6803_s21 + $0x78] sm:$0xf] }
  0x65   : > { %v535_v61 = vshll.u32 %v312_v35, 16  ;;  %v522_v63 = vor.u32 %v521_v47, %v518_v42  ;;  %v531_v1 = vrot.slane %v529_v50, 4  ;;  %v5451_v4 = vrot.slane %v5435_v43, 9  ;;  %v5437_v47 = vld [vmem:[%s6803_s21 + $0x24] sm:$0xe] }
  0x66   : > { %v2894_v6 = vrot.slane %v2892_v56, 4  ;;  %5895 = vmatmul.mubr.msk.bf16.gmra.mrb[12].mxu1 %vm764_vm3, %v5175_v52  ;;  %v2335_v11 = vsel %vm6822_vm2, %v2330_v58, %v2334_v41  ;;  %v540_v18 = vshrl.u32 %v7038_v48, 16  ;;  %v543_v24 = vshll.u32 %v7038_v48, 16  ;;  %v314_v41 = vld [vmem:[%s6803_s21 + $0x80] sm:$0x1] }
  0x67   : > { %v537_v12 = vrot.slane %v535_v61, 5  ;;  %v5409_v26 = vcombine.low %v2325_v53, %v2335_v11  ;;  %v523_v3 = vrot.slane %v522_v63, 4  ;;  %v532_v27 = vor.u32 %v531_v1, %v527_v49 }
  0x68   : > { %v2893_v29 = vsel %vm7044_vm6, %v5451_v4, %v2892_v56  ;;  %v2896_v33 = vsel %vm7044_vm6, %v2894_v6, %v2895_v57  ;;  %v542_v34 = vrot.slane %v540_v18, 4  ;;  %v545_v35 = vrot.slane %v543_v24, 5  ;;  %v7104_v24 = vld [vmem:[%s6803_s21 + $0x88] sm:$0xf] }
  0x69   : > { %v549_v36 = vshll.u32 %v7051_v7, 16  ;;  %6031 = vmatmul.mubr.msk.bf16.gmra.mrb[12].mxu0 %vm764_vm3, %v5409_v26  ;;  %v528_v13 = vsel %vm6822_vm2, %v523_v3, %v527_v49  ;;  %v533_v56 = vrot.slane %v532_v27, 4  ;;  %v5469_v39 = vcombine.low %v2893_v29, %v2896_v33 }
  0x6a   : > { %v553_v40 = vshrl.u32 %v7051_v7, 16  ;;  %v546_v57 = vor.u32 %v545_v35, %v542_v34  ;;  %v559_v43 = vshll.u32 %v313_v31, 16  ;;  %v5452_v44 = vrot.slane %v5436_v32, 9  ;;  %v315_v35 = vld [vmem:[%s6803_s21 + $0x8c] sm:$0x1] }
  0x6b   : > { %v551_v42 = vrot.slane %v549_v36, 5  ;;  %v538_v50 = vsel %vm6822_vm2, %v533_v56, %v537_v12  ;;  %6052 = vmatprep.mubr.msk.bf16.mxu0 %vm764_vm3, %v5469_v39  ;;  %v2903_v49 = vsel %vm7044_vm6, %v6858_v23, %v2902_v21  ;;  %v564_v53 = vshrl.u32 %v7070_v38, 16  ;;  %v7096_v12 = vld [vmem:[%s6803_s21 + $0x84] sm:$0xf] }
  0x6c   : > { %v555_v52 = vrot.slane %v553_v40, 4  ;;  %v5176_v58 = vcombine.low %v528_v13, %v538_v50  ;;  %v547_v61 = vrot.slane %v546_v57, 4  ;;  %v561_v63 = vrot.slane %v559_v43, 5  ;;  %v5438_v40 = vld [vmem:[%s6803_s21 + $0x30] sm:$0xe] }
  0x6d   : > { %v2900_v1 = vsel %vm7044_vm6, %v5452_v44, %v2899_v16  ;;  %v566_v11 = vrot.slane %v564_v53, 4  ;;  %v567_v59 = vshll.u32 %v7070_v38, 16  ;;  %v573_v23 = vshll.u32 %v7077_v14, 16  ;;  %v7109_v16 = vld [vmem:[%s8649_s1 + $0x38] sm:$0xff]   ;;  %v7128_v50 = vld [vmem:[%s6803_s21 + $0x90] sm:$0xf] }
  0x6e   : > { %v556_v4 = vor.u32 %v555_v52, %v551_v42  ;;  %v5470_v6 = vcombine.low %v2900_v1, %v2903_v49  ;;  %5898 = vmatprep.mubr.msk.bf16.mxu1 %vm764_vm3, %v5176_v58  ;;  %v552_v21 = vsel %vm6822_vm2, %v547_v61, %v551_v42  ;;  %v577_v54 = vshrl.u32 %v7077_v14, 16  ;;  %v7133_v58 = vld [vmem:[%s6803_s21 + $0x94] sm:$0xf] }
  0x6f   : > { %v583_v18 = vshll.u32 %v314_v41, 16  ;;  %v569_v3 = vrot.slane %v567_v59, 5  ;;  %v5453_v27 = vrot.slane %v5437_v47, 9  ;;  %v2906_v29 = vrot.slane %v6865_v37, 5 }
  0x70   : > { %v557_v26 = vrot.slane %v556_v4, 4  ;;  %v575_v31 = vrot.slane %v573_v23, 5  ;;  %v579_v32 = vrot.slane %v577_v54, 4  ;;  %v2909_v34 = vrot.slane %v6874_v45, 5  ;;  %v316_v23 = vld [vmem:[%s6803_s21 + $0x98] sm:$0x1] }
  0x71   : > { %v585_v33 = vrot.slane %v583_v18, 5  ;;  %6053 = vmatmul.mubr.msk.bf16.vlgmr.msra.gmra.mrb[0].mxu0 %vm764_vm3, %v5470_v6  ;;  %v570_v13 = vor.u32 %v569_v3, %v566_v11  ;;  %v2907_v56 = vsel %vm7044_vm6, %v5453_v27, %v2906_v29  ;;  %v2908_v39 = vrot.slane %v2906_v29, 4  ;;  %v5439_v27 = vld [vmem:[%s6803_s21 + $0x3c] sm:$0xe] }
  0x72   : > { %v562_v36 = vsel %vm6822_vm2, %v557_v26, %v561_v63  ;;  %6085 = vmatpush3.bf16.msra.mxu0 %v6885_v62  ;;  %v580_v37 = vor.u32 %v579_v32, %v575_v31  ;;  %v588_v45 = vshrl.u32 %v7096_v12, 16  ;;  %v591_v57 = vshll.u32 %v7096_v12, 16 }
  0x73   : > { %v5177_v41 = vcombine.low %v552_v21, %v562_v36  ;;  %v571_v42 = vrot.slane %v570_v13, 4  ;;  %v2910_v43 = vsel %vm7044_vm6, %v2908_v39, %v2909_v34  ;;  %v597_v44 = vshll.u32 %v7104_v24, 16  ;;  %6118 = vmatprep.subr.bf16.mxu0 %v7109_v16 }
  0x74   : > { %v601_v47 = vshrl.u32 %v7104_v24, 16  ;;  %v581_v62 = vrot.slane %v580_v37, 4  ;;  %v5471_v52 = vcombine.low %v2907_v56, %v2910_v43  ;;  %v590_v49 = vrot.slane %v588_v45, 4 }
  0x75   : > { %5899 = vmatmul.mubr.msk.bf16.gmra.mrb[16].mxu1 %vm764_vm3, %v5177_v41  ;;  %v593_v53 = vrot.slane %v591_v57, 5  ;;  %v576_v61 = vsel %vm6822_vm2, %v571_v42, %v575_v31  ;;  %v599_v63 = vrot.slane %v597_v44, 5  ;;  %v607_v4 = vshll.u32 %v315_v35, 16  ;;  %v7161_v42 = vld [vmem:[%s6803_s21 + $0xa0] sm:$0xf] }
  0x76   : > { %v603_v1 = vrot.slane %v601_v47, 4  ;;  %v586_v6 = vsel %vm6822_vm2, %v581_v62, %v585_v33  ;;  %6056 = vmatprep.mubr.msk.bf16.mxu0 %vm764_vm3, %v5471_v52  ;;  %v5454_v59 = vrot.slane %v5438_v40, 9  ;;  %v2913_v21 = vrot.slane %v6898_v22, 5  ;;  %v7156_v40 = vld [vmem:[%s6803_s21 + $0x9c] sm:$0xf] }
  0x77   : > { %v594_v11 = vor.u32 %v593_v53, %v590_v49  ;;  %v5178_v54 = vcombine.low %v576_v61, %v586_v6  ;;  %v609_v26 = vrot.slane %v607_v4, 5  ;;  %v2916_v3 = vrot.slane %v6905_v30, 5  ;;  %v317_v52 = vld [vmem:[%s6803_s21 + $0xa4] sm:$0x1] }
  0x78   : > { %v604_v18 = vor.u32 %v603_v1, %v599_v63  ;;  %v2914_v31 = vsel %vm7044_vm6, %v5454_v59, %v2913_v21  ;;  %v2915_v32 = vrot.slane %v2913_v21, 4  ;;  %v612_v33 = vshrl.u32 %v7128_v50, 16  ;;  %v5440_v59 = vld [vmem:[%s6803_s21 + $0x48] sm:$0xe] }
  0x79   : > { %v595_v29 = vrot.slane %v594_v11, 4  ;;  %5902 = vmatprep.mubr.msk.bf16.mxu1 %vm764_vm3, %v5178_v54  ;;  %v615_v22 = vshll.u32 %v7128_v50, 16  ;;  %v621_v35 = vshll.u32 %v7133_v58, 16  ;;  %v625_v36 = vshrl.u32 %v7133_v58, 16 }
  0x7a   : > { %v605_v34 = vrot.slane %v604_v18, 4  ;;  %v2917_v13 = vsel %vm7044_vm6, %v2915_v32, %v2916_v3  ;;  %v614_v56 = vrot.slane %v612_v33, 4  ;;  %v631_v39 = vshll.u32 %v316_v23, 16  ;;  %v7180_v33 = vld [vmem:[%s6803_s21 + $0xa8] sm:$0xf] }
  0x7b   : > { %v600_v30 = vsel %vm6822_vm2, %v595_v29, %v599_v63  ;;  %v5472_v37 = vcombine.low %v2914_v31, %v2917_v13  ;;  %v617_v45 = vrot.slane %v615_v22, 5  ;;  %v623_v57 = vrot.slane %v621_v35, 5 }
  0x7c   : > { %v610_v41 = vsel %vm6822_vm2, %v605_v34, %v609_v26  ;;  %v627_v44 = vrot.slane %v625_v36, 4  ;;  %v633_v47 = vrot.slane %v631_v39, 5  ;;  %v5455_v62 = vrot.slane %v5439_v27, 9 }
  0x7d   : > { %v5179_v43 = vcombine.low %v600_v30, %v610_v41  ;;  %6057 = vmatmul.mubr.msk.bf16.gmra.mrb[4].mxu0 %vm764_vm3, %v5472_v37  ;;  %v618_v49 = vor.u32 %v617_v45, %v614_v56  ;;  %v2920_v53 = vrot.slane %v6922_v9, 5  ;;  %v2923_v61 = vrot.slane %v6927_v20, 5  ;;  %v7185_v30 = vld [vmem:[%s6803_s21 + $0xac] sm:$0xf]  ;;  %v318_v37 = vld [vmem:[%s6803_s21 + $0xb0] sm:$0x1] }
  0x7e   : > { %v636_v63 = vshrl.u32 %v7156_v40, 16  ;;  %v628_v1 = vor.u32 %v627_v44, %v623_v57  ;;  %v639_v4 = vshll.u32 %v7156_v40, 16  ;;  %v645_v6 = vshll.u32 %v7161_v42, 16  ;;  %v5441_v45 = vld [vmem:[%s6803_s21 + $0x54] sm:$0xe] }
  0x7f   : > { %5903 = vmatmul.mubr.msk.bf16.gmra.mrb[20].mxu1 %vm764_vm3, %v5179_v43  ;;  %v649_v11 = vshrl.u32 %v7161_v42, 16  ;;  %v619_v21 = vrot.slane %v618_v49, 4  ;;  %v2921_v23 = vsel %vm7044_vm6, %v5455_v62, %v2920_v53  ;;  %v2922_v9 = vrot.slane %v2920_v53, 4  ;;  %v7195_v62 = vld [vmem:[%s6803_s21 + $0xb4] sm:$0xf] }
  0x80   : > { %v638_v20 = vrot.slane %v636_v63, 4  ;;  %v629_v54 = vrot.slane %v628_v1, 4  ;;  %v641_v18 = vrot.slane %v639_v4, 5  ;;  %v647_v26 = vrot.slane %v645_v6, 5  ;;  %v7207_v4 = vld [vmem:[%s6803_s21 + $0xb8] sm:$0xf] }
  0x81   : > { %v651_v3 = vrot.slane %v649_v11, 4  ;;  %v624_v27 = vsel %vm6822_vm2, %v619_v21, %v623_v57  ;;  %v2924_v29 = vsel %vm7044_vm6, %v2922_v9, %v2923_v61  ;;  %v655_v31 = vshll.u32 %v317_v52, 16 }
  0x82   : > { %v5456_v32 = vrot.slane %v5440_v59, 9  ;;  %v634_v34 = vsel %vm6822_vm2, %v629_v54, %v633_v47  ;;  %v5473_v22 = vcombine.low %v2921_v23, %v2924_v29  ;;  %v642_v35 = vor.u32 %v641_v18, %v638_v20  ;;  %v319_v18 = vld [vmem:[%s6803_s21 + $0xbc] sm:$0x1] }
  0x83   : > { %v652_v36 = vor.u32 %v651_v3, %v647_v26  ;;  %v5180_v13 = vcombine.low %v624_v27, %v634_v34  ;;  %v657_v56 = vrot.slane %v655_v31, 5  ;;  %v2927_v39 = vrot.slane %v6945_v60, 5  ;;  %v5442_v31 = vld [vmem:[%s6803_s21 + $0x60] sm:$0xe] }
  0x84   : > { %v2930_v41 = vrot.slane %v6953_v10, 5  ;;  %6060 = vmatprep.mubr.msk.bf16.mxu0 %vm764_vm3, %v5473_v22  ;;  %v643_v57 = vrot.slane %v642_v35, 4  ;;  %v660_v44 = vshrl.u32 %v7180_v33, 16  ;;  %v663_v47 = vshll.u32 %v7180_v33, 16 }
  0x85   : > { %v653_v43 = vrot.slane %v652_v36, 4  ;;  %5906 = vmatprep.mubr.msk.bf16.mxu1 %vm764_vm3, %v5180_v13  ;;  %v2928_v60 = vsel %vm7044_vm6, %v5456_v32, %v2927_v39  ;;  %v2929_v52 = vrot.slane %v2927_v39, 4  ;;  %v669_v10 = vshll.u32 %v7185_v30, 16  ;;  %v5443_v36 = vld [vmem:[%s6803_s21 + $0x6c] sm:$0xe] }
  0x86   : > { %v673_v49 = vshrl.u32 %v7185_v30, 16  ;;  %v648_v53 = vsel %vm6822_vm2, %v643_v57, %v647_v26  ;;  %v662_v63 = vrot.slane %v660_v44, 4  ;;  %v665_v1 = vrot.slane %v663_v47, 5 }
  0x87   : > { %v658_v61 = vsel %vm6822_vm2, %v653_v43, %v657_v56  ;;  %v2931_v11 = vsel %vm7044_vm6, %v2929_v52, %v2930_v41  ;;  %v671_v59 = vrot.slane %v669_v10, 5  ;;  %v679_v20 = vshll.u32 %v318_v37, 16  ;;  %v5378_v52 = vld [vmem:[%s6803_s21 + $0x74] sm:$0x1] }
  0x88   : > { %v5181_v6 = vcombine.low %v648_v53, %v658_v61  ;;  %v675_v21 = vrot.slane %v673_v49, 4  ;;  %v5474_v23 = vcombine.low %v2928_v60, %v2931_v11  ;;  %v666_v9 = vor.u32 %v665_v1, %v662_v63  ;;  %v5377_v60 = vld [vmem:[%s6803_s21 + $0x70] sm:$0xf] }
  0x89   : > { %v5457_v54 = vrot.slane %v5441_v45, 9  ;;  %v2934_v3 = vrot.slane %v6976_v51, 5  ;;  %v2937_v27 = vrot.slane %v6982_v0, 5  ;;  %v684_v29 = vshrl.u32 %v7195_v62, 16 }
  0x8a   : > { %5907 = vmatmul.mubr.msk.bf16.gmra.mrb[24].mxu1 %vm764_vm3, %v5181_v6  ;;  %v676_v26 = vor.u32 %v675_v21, %v671_v59  ;;  %6061 = vmatmul.mubr.msk.bf16.gmra.mrb[8].mxu0 %vm764_vm3, %v5474_v23  ;;  %v667_v32 = vrot.slane %v666_v9, 4  ;;  %v681_v34 = vrot.slane %v679_v20, 5  ;;  %v687_v22 = vshll.u32 %v7195_v62, 16 }
  0x8b   : > { %v693_v35 = vshll.u32 %v7207_v4, 16  ;;  %v2935_v51 = vsel %vm7044_vm6, %v5457_v54, %v2934_v3  ;;  %v2936_v56 = vrot.slane %v2934_v3, 4  ;;  %v686_v0 = vrot.slane %v684_v29, 4  ;;  %v5444_v54 = vld [vmem:[%s6803_s21 + $0x78] sm:$0xe] }
  0x8c   : > { %v677_v13 = vrot.slane %v676_v26, 4  ;;  %v672_v39 = vsel %vm6822_vm2, %v667_v32, %v671_v59  ;;  %v689_v41 = vrot.slane %v687_v22, 5  ;;  %v697_v45 = vshrl.u32 %v7207_v4, 16  ;;  %v6559_v29 = vld [vmem:[%s6803_s21] sm:$0xf] }
  0x8d   : > { %v695_v37 = vrot.slane %v693_v35, 5  ;;  %v2938_v43 = vsel %vm7044_vm6, %v2936_v56, %v2937_v27  ;;  %v703_v44 = vshll.u32 %v319_v18, 16  ;;  %v5458_v47 = vrot.slane %v5442_v31, 9  ;;  %v7247_v31 = vld [vmem:[%s6803_s21 + $0x4] sm:$0xf] }
  0x8e   : > { %v682_v57 = vsel %vm6822_vm2, %v677_v13, %v681_v34  ;;  %v5475_v49 = vcombine.low %v2935_v51, %v2938_v43  ;;  %v690_v53 = vor.u32 %v689_v41, %v686_v0  ;;  %v699_v61 = vrot.slane %v697_v45, 4  ;;  %v7251_v34 = vld [vmem:[%s6803_s21 + $0x7c] sm:$0xf]  ;;  %v7254_v22 = vld [vmem:[%s6803_s21 + $0x80] sm:$0x1] }
  0x8f   : > { %v5182_v10 = vcombine.low %v672_v39, %v682_v57  ;;  %v705_v63 = vrot.slane %v703_v44, 5  ;;  %v2941_v1 = vrot.slane %v7006_v46, 5  ;;  %v2944_v6 = vrot.slane %v7013_v55, 5  ;;  %v5445_v35 = vld [vmem:[%s6803_s21 + $0x84] sm:$0xe] }
  0x90   : > { %v5459_v11 = vrot.slane %v5443_v36, 9  ;;  %6064 = vmatprep.mubr.msk.bf16.mxu0 %vm764_vm3, %v5475_v49  ;;  %v691_v59 = vrot.slane %v690_v53, 4  ;;  %v700_v21 = vor.u32 %v699_v61, %v695_v37  ;;  %v2948_v23 = vrot.slane %v5377_v60, 5  ;;  %v5383_v0 = vld [vmem:[%s6803_s21 + $0x88] sm:$0xf] }
  0x91   : > { %5910 = vmatprep.mubr.msk.bf16.mxu1 %vm764_vm3, %v5182_v10  ;;  %v2951_v9 = vrot.slane %v5378_v52, 5  ;;  %v2942_v20 = vsel %vm7044_vm6, %v5458_v47, %v2941_v1  ;;  %v2943_v46 = vrot.slane %v2941_v1, 4  ;;  %v5201_v32 = vcombine.low %v6559_v29, %v7247_v31  ;;  %v5384_v39 = vld [vmem:[%s6803_s21 + $0x8c] sm:$0x1]  ;;  %v5386_v45 = vld [vmem:[%s6803_s21 + $0x94] sm:$0xf] }
  0x92   : > { %v696_v55 = vsel %vm6822_vm2, %v691_v59, %v695_v37  ;;  %v701_v18 = vrot.slane %v700_v21, 4  ;;  %v2949_v26 = vsel %vm7044_vm6, %v5459_v11, %v2948_v23  ;;  %v2950_v3 = vrot.slane %v2948_v23, 4  ;;  %v5387_v52 = vld [vmem:[%s6803_s21 + $0x98] sm:$0x1]  ;;  %v5446_v10 = vld [vmem:[%s6803_s21 + $0x90] sm:$0xe] }
  0x93   : > { %v2945_v27 = vsel %vm7044_vm6, %v2943_v46, %v2944_v6  ;;  %v5460_v56 = vrot.slane %v5444_v54, 9  ;;  %v2955_v57 = vrot.slane %v7251_v34, 5  ;;  %v2958_v43 = vrot.slane %v7254_v22, 5  ;;  %v5390_v11 = vld [vmem:[%s6803_s21 + $0xa4] sm:$0x1] }
  0x94   : > { %v706_v36 = vsel %vm6822_vm2, %v701_v18, %v705_v63  ;;  %v5476_v13 = vcombine.low %v2942_v20, %v2945_v27  ;;  %v2952_v51 = vsel %vm7044_vm6, %v2950_v3, %v2951_v9  ;;  %v5461_v44 = vrot.slane %v5445_v35, 9  ;;  %v5389_v63 = vld [vmem:[%s6803_s21 + $0xa0] sm:$0xf]  ;;  %v5447_v59 = vld [vmem:[%s6803_s21 + $0x9c] sm:$0xe] }
  0x95   : > { %v5183_v41 = vcombine.low %v696_v55, %v706_v36  ;;  %v5477_v37 = vcombine.low %v2949_v26, %v2952_v51  ;;  %v2962_v47 = vrot.slane %v5383_v0, 5  ;;  %v2965_v60 = vrot.slane %v5384_v39, 5  ;;  %v6561_v21 = vld [vmem:[%s6803_s21 + $0xc] sm:$0xf]  ;;  %v7281_v23 = vld [vmem:[%s6803_s21 + $0x10] sm:$0xf] }
  0x96   : > { %6065 = vmatmul.mubr.msk.bf16.gmra.mrb[12].mxu0 %vm764_vm3, %v5476_v13  ;;  %v2956_v49 = vsel %vm7044_vm6, %v5460_v56, %v2955_v57  ;;  %v2957_v53 = vrot.slane %v2955_v57, 4  ;;  %v2969_v61 = vrot.slane %v5386_v45, 5  ;;  %v5202_v9 = vcombine.low %v6561_v21, %v7281_v23  ;;  %v6563_v27 = vld [vmem:[%s6803_s21 + $0x18] sm:$0xf]  ;;  %v7290_v29 = vld [vmem:[%s6803_s21 + $0x1c] sm:$0xf] }
  0x97   : > { %5911 = vmatmul.mubr.msk.bf16.gmra.mrb[28].mxu1 %vm764_vm3, %v5183_v41  ;;  %6068 = vmatprep.mubr.msk.bf16.mxu0 %vm764_vm3, %v5477_v37  ;;  %v2963_v1 = vsel %vm7044_vm6, %v5461_v44, %v2962_v47  ;;  %v2964_v6 = vrot.slane %v2962_v47, 4  ;;  %v5462_v46 = vrot.slane %v5446_v10, 9  ;;  %v2972_v54 = vrot.slane %v5387_v52, 5  ;;  %v5392_v51 = vld [vmem:[%s6803_s21 + $0xac] sm:$0xf]  ;;  %v7298_v39 = vld [vmem:[%s8649_s1 + $0x18] sm:$0xff]  }
  0x98   : > { %5916 = vmatprep.mubr.msk.bf16.mxu1 %vm764_vm3, %v5201_v32  ;;  %v2959_v20 = vsel %vm7044_vm6, %v2957_v53, %v2958_v43  ;;  %v2971_v26 = vrot.slane %v2969_v61, 4  ;;  %v2976_v3 = vrot.slane %v5389_v63, 5  ;;  %v5203_v32 = vcombine.low %v6563_v27, %v7290_v29  ;;  %v5395_v0 = vld [vmem:[%s6803_s21 + $0xb8] sm:$0xf]  ;;  %v6565_v57 = vld [vmem:[%s8649_s1 + $0x10] sm:$0xff]  }
  0x99   : > { %v5478_v55 = vcombine.low %v2956_v49, %v2959_v20  ;;  %v2966_v18 = vsel %vm7044_vm6, %v2964_v6, %v2965_v60  ;;  %v5463_v36 = vrot.slane %v5447_v59, 9  ;;  %v2979_v13 = vrot.slane %v5390_v11, 5  ;;  %v5393_v47 = vld [vmem:[%s6803_s21 + $0xb0] sm:$0x1]  ;;  %v5448_v60 = vld [vmem:[%s6803_s21 + $0xa8] sm:$0xe] }
  0x9a   : > { %v5479_v35 = vcombine.low %v2963_v1, %v2966_v18  ;;  %v2978_v56 = vrot.slane %v2976_v3, 4  ;;  %v2970_v41 = vsel %vm7044_vm6, %v5462_v46, %v2969_v61  ;;  %v2973_v37 = vsel %vm7044_vm6, %v2971_v26, %v2972_v54  ;;  %v5396_v10 = vld [vmem:[%s6803_s21 + $0xbc] sm:$0x1]  ;;  %v5449_v49 = vld [vmem:[%s6803_s21 + $0xb4] sm:$0xe] }
  0x9b   : > { %v2983_v45 = vrot.slane %v5392_v51, 5  ;;  %v2977_v43 = vsel %vm7044_vm6, %v5463_v36, %v2976_v3  ;;  %v2990_v52 = vrot.slane %v5395_v0, 5  ;;  %v6566_v53 = vld [vmem:[%s6803_s21 + $0x24] sm:$0xf]  ;;  %v7322_v61 = vld [vmem:[%s6803_s21 + $0x28] sm:$0xf]  ;;  %v5480_v1 = vcombine.low %v2970_v41, %v2973_v37 }
  0x9c   : > { %v2980_v44 = vsel %vm7044_vm6, %v2978_v56, %v2979_v13  ;;  %v5204_v63 = vcombine.low %v6566_v53, %v7322_v61  ;;  %v5398_v6 = vld [vmem:[%s6803_s21 + $0xc4] sm:$0xf]  ;;  %v5464_v59 = vrot.slane %v5448_v60, 9  ;;  %v6568_v20 = vld [vmem:[%s6803_s21 + $0x30] sm:$0xf]  ;;  %v2993_v26 = vrot.slane %v5396_v10, 5 }
  0x9d   : > { %v5481_v11 = vcombine.low %v2977_v43, %v2980_v44  ;;  %v2985_v21 = vrot.slane %v2983_v45, 4  ;;  %v7328_v46 = vld [vmem:[%s6803_s21 + $0x34] sm:$0xf]  ;;  %v2992_v18 = vrot.slane %v2990_v52, 4  ;;  %v5399_v13 = vld [vmem:[%s6803_s21 + $0xc8] sm:$0x1] }
  0x9e   : > { %6069 = vmatmul.mubr.msk.bf16.gmra.mrb[16].mxu0 %vm764_vm3, %v5478_v55  ;;  %v5205_v54 = vcombine.low %v6568_v20, %v7328_v46  ;;  %v5465_v55 = vrot.slane %v5449_v49, 9  ;;  %v2984_v3 = vsel %vm7044_vm6, %v5464_v59, %v2983_v45  ;;  %v5450_v51 = vld [vmem:[%s6803_s21 + $0xc0] sm:$0xe]  ;;  %v6570_v56 = vld [vmem:[%s6803_s21 + $0x3c] sm:$0xf]  ;;  %v3000_v44 = vrot.slane %v5399_v13, 5 }
  0x9f   : > { %5917 = vmatmul.mubr.msk.bf16.vlgmr.msra.gmra.mrb[0].mxu1 %vm764_vm3, %v5202_v9  ;;  %6072 = vmatprep.mubr.msk.bf16.mxu0 %vm764_vm3, %v5479_v35  ;;  %v2986_v9 = vrot.slane %v5393_v47, 5  ;;  %v2994_v36 = vsel %vm7044_vm6, %v2992_v18, %v2993_v26  ;;  %v7347_v0 = vld [vmem:[%s6803_s21 + $0x40] sm:$0xf]  ;;  %v5207_v47 = vcombine.low %v6957_v15, %v6960_v25  ;;  %v2370_v10 = vshll.u32 %v7251_v34, 16  ;;  %v6517_v53 = vld [vmem:[%s6803_s21 + $0x18] sm:$0xff]  }
  0xa0   : > { %5949 = vmatpush3.bf16.msra.mxu1 %v6565_v57  ;;  %5920 = vmatprep.mubr.msk.bf16.mxu1 %vm764_vm3, %v5203_v32  ;;  %v2997_v32 = vrot.slane %v5398_v6, 5  ;;  %v2991_v35 = vsel %vm7044_vm6, %v5465_v55, %v2990_v52  ;;  %v5206_v41 = vcombine.low %v6570_v56, %v7347_v0  ;;  %v5466_v57 = vrot.slane %v5450_v51, 9 }
  0xa1   : > { %5982 = vmatprep.subr.bf16.mxu1 %v7298_v39  ;;  %v2987_v27 = vsel %vm7044_vm6, %v2985_v21, %v2986_v9  ;;  %v5483_v45 = vcombine.low %v2991_v35, %v2994_v36  ;;  %v2374_v15 = vshrl.u32 %v7251_v34, 16  ;;  %v5208_v49 = vcombine.low %v6986_v8, %v6992_v19  ;;  %v1269_v8 = vld [vmem:[%s6803_s21] sm:$0xe]  ;;  %v1270_v19 = vld [vmem:[%s6803_s21 + $0xc] sm:$0xe] }
  0xa2   : > { %v5482_v37 = vcombine.low %v2984_v3, %v2987_v27  ;;  %v2999_v43 = vrot.slane %v2997_v32, 4  ;;  %v2998_v60 = vsel %vm7044_vm6, %v5466_v57, %v2997_v32  ;;  %v1329_v21 = vrot.slane %v7281_v23, 5  ;;  %v1271_v34 = vld [vmem:[%s6803_s21 + $0x18] sm:$0xe]  ;;  %v6520_v27 = vld [vmem:[%s6803_s21 + $0x24] sm:$0xff]   ;;  %v6522_v32 = vld [vmem:[%s6803_s21 + $0x30] sm:$0xff]  }
  0xa3   : > { %v2376_v6 = vrot.slane %v2374_v15, 4  ;;  %v2380_v9 = vshll.u32 %v7254_v22, 16  ;;  %v1322_v23 = vrot.slane %v7247_v31, 5  ;;  %v1336_v20 = vrot.slane %v7290_v29, 5  ;;  %v1273_v36 = vld [vmem:[%s6803_s21 + $0x30] sm:$0xe] }
  0xa4   : > { %v3001_v52 = vsel %vm7044_vm6, %v2999_v43, %v3000_v44  ;;  %v5210_v18 = vcombine.low %v7038_v48, %v7051_v7  ;;  %v1343_v26 = vrot.slane %v7322_v61, 5  ;;  %v1350_v3 = vrot.slane %v7328_v46, 5  ;;  %v6574_v48 = vld [vmem:[%s6803_s21 + $0x20] sm:$0x1]  ;;  %v6575_v57 = vld [vmem:[%s6803_s21 + $0x2c] sm:$0x1] }
  0xa5   : > { %v5484_v25 = vcombine.low %v2998_v60, %v3001_v52  ;;  %v5211_v22 = vcombine.low %v7070_v38, %v7077_v14  ;;  %v5212_v31 = vcombine.low %v7096_v12, %v7104_v24  ;;  %v5234_v29 = vrot.slane %v1269_v8, 9  ;;  %v7399_v46 = vld [vmem:[%s8649_s1 + $0x40] sm:$0xff]  }
  0xa6   : > { %6073 = vmatmul.mubr.msk.bf16.gmra.mrb[20].mxu0 %vm764_vm3, %v5480_v1  ;;  %v7367_v1 = vrot.slane %v2370_v10, 5  ;;  %v5235_v35 = vrot.slane %v1270_v19, 9  ;;  %v1331_v13 = vrot.slane %v1329_v21, 4  ;;  %v5236_v51 = vrot.slane %v1271_v34, 9  ;;  %v6576_v10 = vld [vmem:[%s6803_s21 + $0x38] sm:$0x1] }
  0xa7   : > { %5921 = vmatmul.mubr.msk.bf16.gmra.mrb[4].mxu1 %vm764_vm3, %v5204_v63  ;;  %6076 = vmatprep.mubr.msk.bf16.mxu0 %vm764_vm3, %v5481_v11  ;;  %v5209_v63 = vcombine.low %v7017_v5, %v7023_v17  ;;  %v6572_v11 = vld [vmem:[%s6803_s21 + $0x8] sm:$0x1]  ;;  %v6573_v5 = vld [vmem:[%s6803_s21 + $0x14] sm:$0x1]  ;;  %v1339_v7 = vrot.slane %v6574_v48, 5  ;;  %v5213_v38 = vcombine.low %v7128_v50, %v7133_v58  ;;  %v5214_v14 = vcombine.low %v7156_v40, %v7161_v42 }
  0xa8   : > { %5924 = vmatprep.mubr.msk.bf16.mxu1 %vm764_vm3, %v5205_v54  ;;  %8671 = vst [vmem:[#allocation5_spill] sm:$0xff] %v7367_v1  ;;  %v1325_v59 = vrot.slane %v6572_v11, 5  ;;  %v1332_v17 = vrot.slane %v6573_v5, 5  ;;  %v1272_v54 = vld [vmem:[%s6803_s21 + $0x24] sm:$0xe]  ;;  %v2377_v55 = vor.u32 %v2376_v6, %v7367_v1  ;;  %v1324_v56 = vrot.slane %v1322_v23, 4 }
  0xa9   : > { %v5237_v61 = vrot.slane %v1272_v54, 9  ;;  %v1346_v43 = vrot.slane %v6575_v57, 5  ;;  %v5238_v44 = vrot.slane %v1273_v36, 9  ;;  %v5215_v60 = vcombine.low %v7180_v33, %v7185_v30  ;;  %v1275_v6 = vld [vmem:[%s6803_s21 + $0x48] sm:$0xe]  ;;  %v6528_v58 = vld [vmem:[%s6803_s21 + $0x54] sm:$0xff]  }
  0xaa   : > { %v7412_v52 = vsel %vm7044_vm6, %v5234_v29, %v1322_v23  ;;  %v1353_v15 = vrot.slane %v6576_v10, 5  ;;  %v7433_v11 = vrot.slane %v2377_v55, 4  ;;  %v5569_v34 = vld [vmem:[%s6803_s21 + $0x18] sm:$0xf]  ;;  %v6526_v5 = vld [vmem:[%s6803_s21 + $0x48] sm:$0xff]  }
  0xab   : > { %v7448_v19 = vsel %vm7044_vm6, %v5237_v61, %v1343_v26  ;;  %v6577_v23 = vld [vmem:[%s6803_s21 + $0x44] sm:$0x1]  ;;  %v1276_v55 = vld [vmem:[%s6803_s21 + $0x54] sm:$0xe]  ;;  %v3718_v48 = vshll.u32 %v5569_v34, 16 }
  0xac   : > { %8673 = vst [vmem:[#allocation7_spill] sm:$0xff] %v7433_v11  ;;  %v5241_v10 = vrot.slane %v1276_v55, 9  ;;  %v5575_v55 = vld [vmem:[%s6803_s21 + $0x30] sm:$0xf]  ;;  %v5576_v50 = vld [vmem:[%s6803_s21 + $0x34] sm:$0xf] }
  0xad   : > { %v3720_v24 = vrot.slane %v3718_v48, 5 }
  0xae   : > { %6077 = vmatmul.mubr.msk.bf16.gmra.mrb[24].mxu0 %vm764_vm3, %v5482_v37  ;;  %v1274_v37 = vld [vmem:[%s6803_s21 + $0x3c] sm:$0xe] }
  0xaf   : > { %5925 = vmatmul.mubr.msk.bf16.gmra.mrb[8].mxu1 %vm764_vm3, %v5206_v41  ;;  %6080 = vmatprep.mubr.msk.bf16.mxu0 %vm764_vm3, %v5483_v45  ;;  %v1338_v41 = vrot.slane %v1336_v20, 4  ;;  %v1345_v45 = vrot.slane %v1343_v26, 4 }
  0xb0   : > { %5928 = vmatprep.mubr.msk.bf16.mxu1 %vm764_vm3, %v5207_v47  ;;  %v1352_v47 = vrot.slane %v1350_v3, 4 }
  0xb1   : > { %v7444_v8 = vsel %vm7044_vm6, %v1338_v41, %v1339_v7  ;;  %v7463_v26 = vsel %vm7044_vm6, %v1345_v45, %v1346_v43  ;;  %v6579_v45 = vld [vmem:[%s6803_s21 + $0x50] sm:$0x1]  ;;  %v3772_v41 = vshll.u32 %v5576_v50, 16 }
  0xb2   : > { %v1367_v57 = vrot.slane %v6579_v45, 5  ;;  %v8681_v11 = vcombine.low %v7448_v19, %v7463_v26 }
  0xb6   : > { %6081 = vmatmul.mubr.msk.bf16.gmra.mrb[28].mxu0 %vm764_vm3, %v5484_v25  ;;  %v1357_v25 = vrot.slane %v7347_v0, 5  ;;  %v7430_v0 = vsel %vm7044_vm6, %v5236_v51, %v1336_v20  ;;  %v1360_v20 = vrot.slane %v6577_v23, 5  ;;  %v3715_v51 = vshrl.u32 %v5569_v34, 16  ;;  %v7507_v34 = vld [vmem:[%s6803_s21 + $0x5c] sm:$0x1] }
  0xb7   : > { %5929 = vmatmul.mubr.msk.bf16.gmra.mrb[12].mxu1 %vm764_vm3, %v5208_v49  ;;  %6086 = vmatprep.mubr.msk.bf16.mxu0 %vm764_vm3, %v6517_v53  ;;  %v7416_v49 = vrot.slane %v2380_v9, 5  ;;  %v7422_v53 = vsel %vm7044_vm6, %v5235_v35, %v1329_v21  ;;  %v7440_v21 = vsel %vm7044_vm6, %v1324_v56, %v1325_v59  ;;  %v5239_v9 = vrot.slane %v1274_v37, 9  ;;  %v6578_v59 = vld [vmem:[%s6803_s21 + $0x4c] sm:$0xf] }
  0xb8   : > { %5932 = vmatprep.mubr.msk.bf16.mxu1 %vm764_vm3, %v5209_v63  ;;  %v7426_v63 = vsel %vm7044_vm6, %v1331_v13, %v1332_v17  ;;  %v7454_v17 = vsel %vm7044_vm6, %v5238_v44, %v1350_v3  ;;  %v1364_v54 = vrot.slane %v6578_v59, 5  ;;  %v1359_v3 = vrot.slane %v1357_v25, 4  ;;  %v7478_v13 = vld [vmem:[%s6803_s21 + $0x60] sm:$0xe] }
  0xb9   : > { %8672 = vst [vmem:[#allocation6_spill] sm:$0xff] %v7416_v49  ;;  %v7488_v43 = vsel %vm7044_vm6, %v5239_v9, %v1357_v25  ;;  %v6580_v25 = vld [vmem:[%s6803_s21 + $0x58] sm:$0xf]  ;;  %v1374_v9 = vrot.slane %v7507_v34, 5  ;;  %v5242_v23 = vrot.slane %v7478_v13, 9  ;;  %v3717_v12 = vrot.slane %v3715_v51, 4 }
  0xba   : > { %v1366_v37 = vrot.slane %v1364_v54, 4  ;;  %v7492_v44 = vsel %vm7044_vm6, %v1359_v3, %v1360_v20  ;;  %v6582_v20 = vld [vmem:[%s6803_s21 + $0x64] sm:$0xf]  ;;  %v6583_v34 = vld [vmem:[%s6803_s21 + $0x70] sm:$0xf]  ;;  %v3776_v56 = vshrl.u32 %v5576_v50, 16 }
  0xbb   : > { %v1378_v59 = vrot.slane %v6582_v20, 5  ;;  %v1385_v20 = vrot.slane %v6583_v34, 5  ;;  %v5574_v34 = vld [vmem:[%s6803_s21 + $0x2c] sm:$0x1] }
  0xbc   : > { %v7524_v3 = vsel %vm7044_vm6, %v1366_v37, %v1367_v57  ;;  %v3763_v37 = vshrl.u32 %v5575_v55, 16  ;;  %v3766_v57 = vshll.u32 %v5575_v55, 16 }
  0xbd   : > { %v1380_v36 = vrot.slane %v1378_v59, 4 }
  0xbe   : > { %6087 = vmatmul.mubr.msk.bf16.vlgmr.msra.gmra.mrb[0].mxu0 %vm764_vm3, %v6520_v27  ;;  %v7467_v27 = vsel %vm7044_vm6, %v1352_v47, %v1353_v15  ;;  %v5571_v15 = vld [vmem:[%s6803_s21 + $0x20] sm:$0x1]  ;;  %v3768_v50 = vrot.slane %v3766_v57, 5  ;;  %v6534_v57 = vld [vmem:[%s6803_s21 + $0x78] sm:$0xff]  }
  0xbf   : > { %5933 = vmatmul.mubr.msk.bf16.gmra.mrb[16].mxu1 %vm764_vm3, %v5210_v18  ;;  %6119 = vmatpush3.bf16.msra.mxu0 %v7109_v16  ;;  %v6524_v16 = vld [vmem:[%s6803_s21 + $0x3c] sm:$0xff]   ;;  %v3734_v48 = vshll.u32 %v5571_v15, 16 }
  0xc0   : > { %5936 = vmatprep.mubr.msk.bf16.mxu1 %vm764_vm3, %v5211_v22  ;;  %6090 = vmatprep.mubr.msk.bf16.mxu0 %vm764_vm3, %v6522_v32  ;;  %v5570_v18 = vld [vmem:[%s6803_s21 + $0x1c] sm:$0xf]  ;;  %v5240_v22 = vrot.slane %v1275_v6, 9  ;;  %v5572_v6 = vld [vmem:[%s6803_s21 + $0x24] sm:$0xf] }
  0xc1   : > { %6152 = vmatprep.subr.bf16.mxu0 %v7399_v46  ;;  %v3724_v7 = vshll.u32 %v5570_v18, 16  ;;  %v3728_v61 = vshrl.u32 %v5570_v18, 16  ;;  %v3742_v13 = vshll.u32 %v5572_v6, 16  ;;  %v3721_v18 = vor.u32 %v3720_v24, %v3717_v12 }
  0xc2   : > { %v7496_v47 = vsel %vm7044_vm6, %v5240_v22, %v1364_v54  ;;  %v5573_v54 = vld [vmem:[%s6803_s21 + $0x28] sm:$0xf]  ;;  %v3739_v22 = vshrl.u32 %v5572_v6, 16  ;;  %v1387_v24 = vrot.slane %v1385_v20, 4 }
  0xc3   : > { %v3744_v29 = vrot.slane %v3742_v13, 5  ;;  %v3765_v13 = vrot.slane %v3763_v37, 4  ;;  %v3722_v40 = vrot.slane %v3721_v18, 4 }
  0xc4   : > { %v3741_v15 = vrot.slane %v3739_v22, 4  ;;  %v5577_v22 = vld [vmem:[%s6803_s21 + $0x38] sm:$0x1] }
  0xc5   : > { %v3782_v37 = vshll.u32 %v5577_v22, 16 }
  0xc6   : > { %6091 = vmatmul.mubr.msk.bf16.gmra.mrb[4].mxu0 %vm764_vm3, %v6524_v16  ;;  %v1371_v16 = vrot.slane %v6580_v25, 5  ;;  %v1278_v25 = vld [vmem:[%s6803_s21 + $0x6c] sm:$0xe] }
  0xc7   : > { %5937 = vmatmul.mubr.msk.bf16.gmra.mrb[20].mxu1 %vm764_vm3, %v5212_v31  ;;  %6094 = vmatprep.mubr.msk.bf16.mxu0 %vm764_vm3, %v6526_v5  ;;  %v7517_v31 = vrot.slane %v3724_v7, 5  ;;  %v3730_v5 = vrot.slane %v3728_v61, 4  ;;  %v3748_v7 = vshll.u32 %v5573_v54, 16  ;;  %v3752_v61 = vshrl.u32 %v5573_v54, 16 }
  0xc8   : > { %5940 = vmatprep.mubr.msk.bf16.mxu1 %vm764_vm3, %v5213_v38  ;;  %v6530_v38 = vld [vmem:[%s6803_s21 + $0x60] sm:$0xff]   ;;  %v7531_v51 = vsel %vm7044_vm6, %v5241_v10, %v1371_v16  ;;  %v1373_v45 = vrot.slane %v1371_v16, 4  ;;  %v6584_v10 = vld [vmem:[%s6803_s21 + $0x68] sm:$0x1]  ;;  %v7538_v16 = vrot.slane %v3734_v48, 5  ;;  %v5243_v54 = vrot.slane %v1278_v25, 9 }
  0xc9   : > { %v3731_v6 = vor.u32 %v3730_v5, %v7517_v31  ;;  %v1381_v35 = vrot.slane %v6584_v10, 5  ;;  %v7541_v32 = vrot.slane %v3748_v7, 5  ;;  %v3754_v12 = vrot.slane %v3752_v61, 4  ;;  %v6585_v5 = vld [vmem:[%s6803_s21 + $0x74] sm:$0x1]  ;;  %v6532_v25 = vld [vmem:[%s6803_s21 + $0x6c] sm:$0xff]  }
  0xca   : > { %v1388_v55 = vrot.slane %v6585_v5, 5  ;;  %v7560_v48 = vsel %vm7044_vm6, %v5242_v23, %v1378_v59  ;;  %v3745_v7 = vor.u32 %v3744_v29, %v3741_v15  ;;  %v3758_v61 = vshll.u32 %v5574_v34, 16  ;;  %v6587_v10 = vld [vmem:[%s6803_s21 + $0x88] sm:$0xf] }
  0xcb   : > { %v3732_v42 = vrot.slane %v3731_v6, 4  ;;  %v7565_v33 = vsel %vm7044_vm6, %v1373_v45, %v1374_v9  ;;  %v7573_v23 = vsel %vm7044_vm6, %v1380_v36, %v1381_v35  ;;  %v7577_v29 = vsel %vm7044_vm6, %v5243_v54, %v1385_v20  ;;  %v1280_v45 = vld [vmem:[%s6803_s21 + $0x84] sm:$0xe]  ;;  %v5578_v20 = vld [vmem:[%s6803_s21 + $0x3c] sm:$0xf] }
  0xcc   : > { %v7581_v9 = vsel %vm7044_vm6, %v1387_v24, %v1388_v55  ;;  %v3769_v59 = vor.u32 %v3768_v50, %v3765_v13  ;;  %v3727_v6 = vsel %vm6822_vm2, %v3722_v40, %v7517_v31  ;;  %v1399_v15 = vrot.slane %v6587_v10, 5  ;;  %v6588_v24 = vld [vmem:[%s6803_s21 + $0x80] sm:$0x1] }
  0xcd   : > { %v3737_v35 = vsel %vm6822_vm2, %v3732_v42, %v7538_v16  ;;  %v3746_v54 = vrot.slane %v3745_v7, 4  ;;  %v3760_v34 = vrot.slane %v3758_v61, 5  ;;  %v1395_v5 = vrot.slane %v6588_v24, 5  ;;  %v7595_v55 = vld [vmem:[%s6803_s21 + $0x40] sm:$0xf] }
  0xce   : > { %6095 = vmatmul.mubr.msk.bf16.gmra.mrb[8].mxu0 %vm764_vm3, %v6528_v58  ;;  %v3778_v58 = vrot.slane %v3776_v56, 4  ;;  %v1279_v56 = vld [vmem:[%s6803_s21 + $0x78] sm:$0xe]  ;;  %8674 = vst [vmem:[#allocation8_spill] sm:$0xff] %v7595_v55  ;;  %v3784_v13 = vrot.slane %v3782_v37, 5  ;;  %v5245_v16 = vrot.slane %v1280_v45, 9  ;;  %v8675_v50 = vcombine.low %v7195_v62, %v7207_v4 }
  0xcf   : > { %5941 = vmatmul.mubr.msk.bf16.gmra.mrb[24].mxu1 %vm764_vm3, %v5214_v14  ;;  %6098 = vmatprep.mubr.msk.bf16.mxu0 %vm764_vm3, %v6530_v38  ;;  %v7554_v14 = vrot.slane %v3772_v41, 5  ;;  %v6586_v41 = vld [vmem:[%s6803_s21 + $0x7c] sm:$0xf]  ;;  %v3770_v40 = vrot.slane %v3769_v59, 4  ;;  %v6589_v42 = vld [vmem:[%s6803_s21 + $0x8c] sm:$0x1]  ;;  %v3751_v45 = vsel %vm6822_vm2, %v3746_v54, %v7541_v32 }
  0xd0   : > { %5944 = vmatprep.mubr.msk.bf16.mxu1 %vm764_vm3, %v5215_v60  ;;  %v3755_v60 = vor.u32 %v3754_v12, %v7541_v32  ;;  %v1392_v18 = vrot.slane %v6586_v41, 5  ;;  %v5244_v12 = vrot.slane %v1279_v56, 9  ;;  %v3787_v7 = vshrl.u32 %v5578_v20, 16  ;;  %v6535_v41 = vld [vmem:[%s6803_s21 + $0x84] sm:$0xff]   ;;  %v6536_v59 = vld [vmem:[%s6803_s21 + $0x90] sm:$0xff]  }
  0xd1   : > { %v3779_v36 = vor.u32 %v3778_v58, %v7554_v14  ;;  %v1402_v58 = vrot.slane %v6589_v42, 5  ;;  %v3790_v61 = vshll.u32 %v5578_v20, 16  ;;  %v1401_v56 = vrot.slane %v1399_v15, 4  ;;  %v7635_v20 = vld [vmem:[%s6803_s21 + $0x4c] sm:$0xf] }
  0xd2   : > { %v3756_v31 = vrot.slane %v3755_v60, 4  ;;  %v1394_v22 = vrot.slane %v1392_v18, 4  ;;  %v3796_v62 = vshll.u32 %v7595_v55, 16  ;;  %v3800_v4 = vshrl.u32 %v7595_v55, 16  ;;  %v7713_v37 = vld [vmem:[%s6803_s21 + $0x5c] sm:$0x1] }
  0xd3   : > { %v3780_v60 = vrot.slane %v3779_v36, 4  ;;  %v7627_v10 = vsel %vm7044_vm6, %v5244_v12, %v1392_v18  ;;  %v3775_v24 = vsel %vm6822_vm2, %v3770_v40, %v7554_v14  ;;  %v7642_v32 = vsel %vm7044_vm6, %v5245_v16, %v1399_v15  ;;  %v7646_v18 = vld [vmem:[%s6803_s21 + $0x58] sm:$0xf]  ;;  %v7660_v40 = vld [vmem:[%s6803_s21 + $0x90] sm:$0xe] }
  0xd4   : > { %v3761_v36 = vsel %vm6822_vm2, %v3756_v31, %v3760_v34  ;;  %v3789_v54 = vrot.slane %v3787_v7, 4  ;;  %v3792_v34 = vrot.slane %v3790_v61, 5  ;;  %v5584_v31 = vld [vmem:[%s6803_s21 + $0x54] sm:$0xf]  ;;  %v3802_v14 = vrot.slane %v3800_v4, 4 }
  0xd5   : > { %v3785_v12 = vsel %vm6822_vm2, %v3780_v60, %v3784_v13  ;;  %v3820_v42 = vshll.u32 %v7635_v20, 16  ;;  %v3824_v7 = vshrl.u32 %v7635_v20, 16  ;;  %v3835_v13 = vshrl.u32 %v5584_v31, 16  ;;  %v1282_v38 = vld [vmem:[%s6803_s21 + $0x9c] sm:$0xe] }
  0xd6   : > { %6099 = vmatmul.mubr.msk.bf16.gmra.mrb[12].mxu0 %vm764_vm3, %v6532_v25  ;;  %v8676_v25 = vcombine.low %v7412_v52, %v7440_v21  ;;  %v7615_v52 = vcombine.low %v3727_v6, %v3737_v35  ;;  %v7631_v6 = vsel %vm7044_vm6, %v1394_v22, %v1395_v5  ;;  %v5581_v35 = vld [vmem:[%s6803_s21 + $0x48] sm:$0xf]  ;;  %v7652_v5 = vsel %vm7044_vm6, %v1401_v56, %v1402_v58  ;;  %v7655_v22 = vld [vmem:[%s6803_s21 + $0x44] sm:$0x1] }
  0xd7   : > { %5945 = vmatmul.mubr.msk.bf16.gmra.mrb[28].mxu1 %vm764_vm3, %v8675_v50  ;;  %6102 = vmatprep.mubr.msk.bf16.mxu0 %vm764_vm3, %v6534_v57  ;;  %8677 = vst [vmem:[#allocation9_spill] sm:$0xff] %v7655_v22  ;;  %v7657_v50 = vrot.slane %v3796_v62, 5  ;;  %v3811_v15 = vshrl.u32 %v5581_v35, 16  ;;  %v3814_v16 = vshll.u32 %v5581_v35, 16  ;;  %v3838_v61 = vshll.u32 %v5584_v31, 16 }
  0xd8   : > { %5950 = vmatprep.mubr.msk.bf16.mxu1 %vm764_vm3, %v8676_v25  ;;  %v3844_v58 = vshll.u32 %v7646_v18, 16  ;;  %v3848_v25 = vshrl.u32 %v7646_v18, 16  ;;  %v8678_v60 = vcombine.low %v7422_v53, %v7426_v63  ;;  %v7672_v56 = vcombine.low %v3751_v45, %v3761_v36  ;;  %v7689_v35 = vld [vmem:[%s6803_s21 + $0x50] sm:$0x1]  ;;  %v6592_v62 = vld [vmem:[%s6803_s21 + $0x98] sm:$0x1] }
  0xd9   : > { %v7676_v4 = vcombine.low %v3775_v24, %v3785_v12  ;;  %v8679_v53 = vcombine.low %v7430_v0, %v7444_v8  ;;  %v3803_v45 = vor.u32 %v3802_v14, %v7657_v50  ;;  %v5587_v24 = vld [vmem:[%s6803_s21 + $0x60] sm:$0xf]  ;;  %v3813_v31 = vrot.slane %v3811_v15, 4  ;;  %v7695_v8 = vld [vmem:[%s6803_s21 + $0x64] sm:$0xf]  ;;  %v6538_v14 = vld [vmem:[%s6803_s21 + $0xa8] sm:$0xff]  }
  0xda   : > { %v7692_v12 = vrot.slane %v3820_v42, 5  ;;  %v3826_v0 = vrot.slane %v3824_v7, 4  ;;  %v3840_v15 = vrot.slane %v3838_v61, 5  ;;  %v6591_v7 = vld [vmem:[%s6803_s21 + $0x94] sm:$0xf]  ;;  %v1409_v21 = vrot.slane %v6592_v62, 5 }
  0xdb   : > { %v1406_v63 = vrot.slane %v6591_v7, 5  ;;  %v3830_v57 = vshll.u32 %v7689_v35, 16  ;;  %v3859_v36 = vshrl.u32 %v5587_v24, 16  ;;  %v3872_v61 = vshrl.u32 %v7695_v8, 16  ;;  %v6593_v7 = vld [vmem:[%s6803_s21 + $0xa0] sm:$0xf] }
  0xdc   : > { %v1413_v55 = vrot.slane %v6593_v7, 5  ;;  %v3804_v62 = vrot.slane %v3803_v45, 4  ;;  %v1420_v45 = vrot.slane %v7185_v30, 5  ;;  %v7740_v7 = vld [vmem:[%s6803_s21 + $0x68] sm:$0x1]  ;;  %v6539_v30 = vld [vmem:[%s6803_s21 + $0xb4] sm:$0xff]  }
  0xdd   : > { %v3861_v19 = vrot.slane %v3859_v36, 4  ;;  %8683 = vst [vmem:[#allocation11_spill] sm:$0xff] %v7740_v7  ;;  %v6540_v36 = vld [vmem:[%s6803_s21 + $0xc0] sm:$0xff]  }
  0xde   : > { %6103 = vmatmul.mubr.msk.bf16.gmra.mrb[16].mxu0 %vm764_vm3, %v6535_v41  ;;  %v3806_v41 = vshll.u32 %v7655_v22, 16  ;;  %v3862_v22 = vshll.u32 %v5587_v24, 16  ;;  %v3854_v24 = vshll.u32 %v7713_v37, 16 }
  0xdf   : > { %5951 = vmatmul.mubr.msk.bf16.vlgmr.msra.gmra.mrb[0].mxu1 %vm764_vm3, %v8678_v60  ;;  %6106 = vmatprep.mubr.msk.bf16.mxu0 %vm764_vm3, %v6536_v59  ;;  %v3793_v59 = vor.u32 %v3792_v34, %v3789_v54  ;;  %v7700_v54 = vld [vmem:[%s8649_s1 + $0x20] sm:$0xff]   ;;  %v3837_v60 = vrot.slane %v3835_v13, 4  ;;  %v3868_v13 = vshll.u32 %v7695_v8, 16 }
  0xe0   : > { %5983 = vmatpush3.bf16.msra.mxu1 %v7298_v39  ;;  %5954 = vmatprep.mubr.msk.bf16.mxu1 %vm764_vm3, %v8679_v53  ;;  %v3816_v39 = vrot.slane %v3814_v16, 5  ;;  %8680 = vst [vmem:[#allocation10_spill] sm:$0xff] %v7700_v54  ;;  %v6537_v34 = vld [vmem:[%s6803_s21 + $0x9c] sm:$0xff]   ;;  %v7705_v53 = vrot.slane %v3844_v58, 5  ;;  %v3850_v16 = vrot.slane %v3848_v25, 4  ;;  %v7707_v42 = vrot.slane %v3806_v41, 5 }
  0xe1   : > { %6186 = vmatprep.subr.bf16.mxu1 %v7700_v54  ;;  %v7718_v58 = vrot.slane %v3793_v59, 4  ;;  %v3827_v41 = vor.u32 %v3826_v0, %v7692_v12  ;;  %v3841_v54 = vor.u32 %v3840_v15, %v3837_v60  ;;  %v1408_v59 = vrot.slane %v1406_v63, 4  ;;  %v1283_v0 = vld [vmem:[%s6803_s21 + $0xa8] sm:$0xe] }
  0xe2   : > { %v3817_v25 = vor.u32 %v3816_v39, %v3813_v31  ;;  %v3851_v1 = vor.u32 %v3850_v16, %v7705_v53  ;;  %v3832_v31 = vrot.slane %v3830_v57, 5  ;;  %v5247_v39 = vrot.slane %v1282_v38, 9  ;;  %v6594_v57 = vld [vmem:[%s6803_s21 + $0xa4] sm:$0x1] }
  0xe3   : > { %v3864_v26 = vrot.slane %v3862_v22, 5  ;;  %v7736_v60 = vrot.slane %v3868_v13, 5  ;;  %v3828_v15 = vrot.slane %v3827_v41, 4  ;;  %v1415_v16 = vrot.slane %v1413_v55, 4  ;;  %v6595_v41 = vld [vmem:[%s6803_s21 + $0xb0] sm:$0x1] }
  0xe4   : > { %v1416_v38 = vrot.slane %v6594_v57, 5  ;;  %v5248_v49 = vrot.slane %v1283_v0, 9  ;;  %v3799_v22 = vsel %vm6822_vm2, %v7718_v58, %v7657_v50  ;;  %v8684_v13 = vrot.slane %v7660_v40, 9  ;;  %v1284_v50 = vld [vmem:[%s6803_s21 + $0xb4] sm:$0xe] }
  0xe5   : > { %v1423_v57 = vrot.slane %v6595_v41, 5  ;;  %v3878_v0 = vshll.u32 %v7740_v7, 16  ;;  %v5590_v58 = vld [vmem:[%s6803_s21 + $0x6c] sm:$0xf]  ;;  %v7764_v40 = vsel %vm7044_vm6, %v1408_v59, %v1409_v21  ;;  %v8686_v59 = vcombine.low %v7488_v43, %v7492_v44 }
  0xe6   : > { %6107 = vmatmul.mubr.msk.bf16.gmra.mrb[20].mxu0 %vm764_vm3, %v6537_v34  ;;  %v8682_v34 = vcombine.low %v7454_v17, %v7467_v27  ;;  %v3842_v17 = vrot.slane %v3841_v54, 4  ;;  %v3852_v27 = vrot.slane %v3851_v1, 4  ;;  %v3809_v1 = vsel %vm6822_vm2, %v3804_v62, %v7707_v42 }
  0xe7   : > { %5955 = vmatmul.mubr.msk.bf16.gmra.mrb[4].mxu1 %vm764_vm3, %v8681_v11  ;;  %6110 = vmatprep.mubr.msk.bf16.mxu0 %vm764_vm3, %v6538_v14  ;;  %v3874_v11 = vrot.slane %v3872_v61, 4  ;;  %v3818_v14 = vrot.slane %v3817_v25, 4  ;;  %v7752_v61 = vsel %vm7044_vm6, %v8684_v13, %v1406_v63  ;;  %v1422_v25 = vrot.slane %v1420_v45, 4 }
  0xe8   : > { %5958 = vmatprep.mubr.msk.bf16.mxu1 %vm764_vm3, %v8682_v34  ;;  %v3856_v34 = vrot.slane %v3854_v24, 5  ;;  %v3865_v54 = vor.u32 %v3864_v26, %v3861_v19  ;;  %v7771_v42 = vsel %vm7044_vm6, %v5247_v39, %v1413_v55  ;;  %v7775_v62 = vsel %vm7044_vm6, %v1415_v16, %v1416_v38  ;;  %v6596_v39 = vld [vmem:[%s6803_s21 + $0xb8] sm:$0xf] }
  0xe9   : > { %v3875_v24 = vor.u32 %v3874_v11, %v7736_v60  ;;  %v3823_v63 = vsel %vm6822_vm2, %v3818_v14, %v7692_v12  ;;  %v3833_v19 = vsel %vm6822_vm2, %v3828_v15, %v3832_v31  ;;  %v3847_v21 = vsel %vm6822_vm2, %v3842_v17, %v7705_v53  ;;  %v7824_v17 = vld [vmem:[%s6803_s21 + $0x7c] sm:$0xf] }
  0xea   : > { %v3857_v12 = vsel %vm6822_vm2, %v3852_v27, %v3856_v34  ;;  %v7787_v55 = vsel %vm7044_vm6, %v5248_v49, %v1420_v45  ;;  %v7796_v31 = vsel %vm7044_vm6, %v1422_v25, %v1423_v57  ;;  %v5249_v53 = vrot.slane %v1284_v50, 9  ;;  %v7800_v49 = vld [vmem:[%s6803_s21 + $0x70] sm:$0xf]  ;;  %8690 = vst [vmem:[#allocation15_spill] sm:$0xff] %v7824_v17  ;;  %v5596_v27 = vld [vmem:[%s6803_s21 + $0x84] sm:$0xf] }
  0xeb   : > { %8685 = vst [vmem:[#allocation12_spill] sm:$0xff] %v7787_v55  ;;  %8687 = vst [vmem:[#allocation13_spill] sm:$0xff] %v7796_v31  ;;  %v1427_v26 = vrot.slane %v6596_v39, 5  ;;  %v3883_v45 = vshrl.u32 %v5590_v58, 16  ;;  %v8689_v43 = vcombine.low %v7496_v47, %v7524_v3  ;;  %v7806_v44 = vcombine.low %v3799_v22, %v3809_v1  ;;  %v5593_v3 = vld [vmem:[%s6803_s21 + $0x78] sm:$0xf] }
  0xec   : > { %8688 = vst [vmem:[#allocation14_spill] sm:$0xff] %v7800_v49  ;;  %v7808_v11 = vrot.slane %v3865_v54, 4  ;;  %v7810_v14 = vrot.slane %v3875_v24, 4  ;;  %v7812_v15 = vrot.slane %v3878_v0, 5  ;;  %v7816_v38 = vcombine.low %v3823_v63, %v3833_v19  ;;  %v6541_v34 = vld [vmem:[%s6803_s21 + $0xcc] sm:$0xff]  }
  0xed   : > { %v7820_v47 = vcombine.low %v3847_v21, %v3857_v12  ;;  %v7831_v22 = vld [vmem:[%s6803_s21 + $0xbc] sm:$0x1]  ;;  %v3886_v25 = vshll.u32 %v5590_v58, 16  ;;  %v3892_v41 = vshll.u32 %v7800_v49, 16  ;;  %v7836_v57 = vld [vmem:[%s6803_s21 + $0x88] sm:$0xf]  ;;  %v7840_v1 = vsel %vm7044_vm6, %v5249_v53, %v1427_v26 }
  0xee   : > { %6111 = vmatmul.mubr.msk.bf16.gmra.mrb[24].mxu0 %vm764_vm3, %v6539_v30  ;;  %8691 = vst [vmem:[#allocation16_spill] sm:$0xff] %v7836_v57  ;;  %v7842_v54 = vrot.slane %v1427_v26, 4  ;;  %v7844_v24 = vrot.slane %v3883_v45, 4  ;;  %v3896_v0 = vshrl.u32 %v7800_v49, 16  ;;  %v5599_v50 = vld [vmem:[%s6803_s21 + $0x90] sm:$0xf]  ;;  %v8694_v58 = vcombine.low %v7531_v51, %v7565_v33 }
  0xef   : > { %5959 = vmatmul.mubr.msk.bf16.gmra.mrb[8].mxu1 %vm764_vm3, %v8686_v59  ;;  %6114 = vmatprep.mubr.msk.bf16.mxu0 %vm764_vm3, %v6540_v36  ;;  %v3907_v19 = vshrl.u32 %v5593_v3, 16  ;;  %v3910_v21 = vshll.u32 %v5593_v3, 16  ;;  %v7857_v12 = vld [vmem:[%s6803_s21 + $0x94] sm:$0xf]  ;;  %v3916_v53 = vshll.u32 %v7824_v17, 16  ;;  %v3920_v39 = vshrl.u32 %v7824_v17, 16 }
  0xf0   : > { %5962 = vmatprep.mubr.msk.bf16.mxu1 %vm764_vm3, %v8689_v43  ;;  %8692 = vst [vmem:[#allocation17_spill] sm:$0xff] %v7857_v12  ;;  %v7860_v59 = vld [vmem:[%s6803_s21 + $0x74] sm:$0x1]  ;;  %v3931_v26 = vshrl.u32 %v5596_v27, 16  ;;  %v3934_v45 = vshll.u32 %v5596_v27, 16  ;;  %v3940_v43 = vshll.u32 %v7836_v57, 16 }
  0xf1   : > { %8693 = vst [vmem:[#allocation18_spill] sm:$0xff] %v7860_v59  ;;  %v3944_v36 = vshrl.u32 %v7836_v57, 16  ;;  %v3955_v30 = vshrl.u32 %v5599_v50, 16  ;;  %v3958_v3 = vshll.u32 %v5599_v50, 16  ;;  %v3888_v63 = vrot.slane %v3886_v25, 5 }
  0xf2   : > { %v7873_v27 = vrot.slane %v3892_v41, 5  ;;  %v3964_v16 = vshll.u32 %v7857_v12, 16  ;;  %v3968_v13 = vshrl.u32 %v7857_v12, 16  ;;  %v8695_v50 = vcombine.low %v7560_v48, %v7573_v23  ;;  %v5602_v41 = vld [vmem:[%s6803_s21 + $0x9c] sm:$0xf] }
  0xf3   : > { %v3898_v51 = vrot.slane %v3896_v0, 4  ;;  %v3902_v33 = vshll.u32 %v7860_v59, 16  ;;  %v3912_v25 = vrot.slane %v3910_v21, 5  ;;  %v3922_v57 = vrot.slane %v3920_v39, 4  ;;  %v7889_v17 = vld [vmem:[%s6803_s21 + $0x8c] sm:$0x1] }
  0xf4   : > { %v3933_v49 = vrot.slane %v3931_v26, 4  ;;  %v3936_v12 = vrot.slane %v3934_v45, 5  ;;  %v7891_v31 = vrot.slane %v3940_v43, 5  ;;  %v3946_v48 = vrot.slane %v3944_v36, 4  ;;  %v7897_v0 = vld [vmem:[%s6803_s21 + $0x98] sm:$0x1] }
  0xf5   : > { %v3957_v23 = vrot.slane %v3955_v30, 4  ;;  %v3960_v55 = vrot.slane %v3958_v3, 5  ;;  %v7899_v59 = vrot.slane %v3964_v16, 5  ;;  %v3979_v21 = vshrl.u32 %v5602_v41, 16 }
  0xf6   : > { %6115 = vmatmul.mubr.msk.bf16.gmra.mrb[28].mxu0 %vm764_vm3, %v6541_v34  ;;  %v7876_v34 = vld [vmem:[%s6803_s21 + $0x80] sm:$0x1]  ;;  %v3889_v39 = vor.u32 %v3888_v63, %v7844_v24  ;;  %v3899_v7 = vor.u32 %v3898_v51, %v7873_v27  ;;  %v3937_v30 = vor.u32 %v3936_v12, %v3933_v49  ;;  %v3947_v16 = vor.u32 %v3946_v48, %v7891_v31 }
  0xf7   : > { %5963 = vmatmul.mubr.msk.bf16.gmra.mrb[12].mxu1 %vm764_vm3, %v8694_v58  ;;  %6120 = vmatprep.mubr.msk.bf16.mxu0 %vm764_vm3, %v7615_v52  ;;  %v3909_v52 = vrot.slane %v3907_v19, 4  ;;  %v7886_v58 = vrot.slane %v3916_v53, 5  ;;  %v3970_v19 = vrot.slane %v3968_v13, 4  ;;  %v3982_v53 = vshll.u32 %v5602_v41, 16 }
  0xf8   : > { %5966 = vmatprep.mubr.msk.bf16.mxu1 %vm764_vm3, %v8695_v50  ;;  %v7894_v50 = vld [vmem:[%s6803_s21 + $0xa0] sm:$0xf]  ;;  %v3926_v45 = vshll.u32 %v7876_v34, 16  ;;  %v3950_v13 = vshll.u32 %v7889_v17, 16  ;;  %v3961_v24 = vor.u32 %v3960_v55, %v3957_v23  ;;  %v3974_v63 = vshll.u32 %v7897_v0, 16 }
  0xf9   : > { %v3913_v26 = vor.u32 %v3912_v25, %v3909_v52  ;;  %v3923_v36 = vor.u32 %v3922_v57, %v7886_v58  ;;  %v3988_v43 = vshll.u32 %v7894_v50, 16  ;;  %v3992_v3 = vshrl.u32 %v7894_v50, 16 }
  0xfa   : > { %v8696_v51 = vcombine.low %v7577_v29, %v7581_v9  ;;  %v3904_v49 = vrot.slane %v3902_v33, 5  ;;  %v3971_v57 = vor.u32 %v3970_v19, %v7899_v59  ;;  %v3981_v12 = vrot.slane %v3979_v21, 4 }
  0xfb   : > { %v8697_v52 = vcombine.low %v7627_v10, %v7631_v6  ;;  %v3890_v55 = vrot.slane %v3889_v39, 4  ;;  %v3900_v29 = vrot.slane %v3899_v7, 4  ;;  %v3914_v9 = vrot.slane %v3913_v26, 4 }
  0xfc   : > { %v3928_v25 = vrot.slane %v3926_v45, 5  ;;  %v3924_v33 = vrot.slane %v3923_v36, 4  ;;  %v3938_v41 = vrot.slane %v3937_v30, 4  ;;  %v7925_v48 = vrot.slane %v3988_v43, 5 }
  0xfd   : > { %v3994_v23 = vrot.slane %v3992_v3, 4  ;;  %v3948_v19 = vrot.slane %v3947_v16, 4  ;;  %v3952_v21 = vrot.slane %v3950_v13, 5  ;;  %v3962_v10 = vrot.slane %v3961_v24, 4 }
  0xfe   : > { %6121 = vmatmul.mubr.msk.bf16.vlgmr.msra.gmra.mrb[0].mxu0 %vm764_vm3, %v7672_v56  ;;  %v3984_v56 = vrot.slane %v3982_v53, 5  ;;  %v3976_v6 = vrot.slane %v3974_v63, 5  ;;  %v7928_v53 = vld [vmem:[%s6803_s21 + $0xa4] sm:$0x1]  ;;  %v8698_v26 = vrot.slane %v7831_v22, 5  ;;  %v3895_v36 = vsel %vm6822_vm2, %v3890_v55, %v7873_v27 }
  0xff   : > { %5967 = vmatmul.mubr.msk.bf16.gmra.mrb[16].mxu1 %vm764_vm3, %v8696_v51  ;;  %6153 = vmatpush3.bf16.msra.mxu0 %v7399_v46  ;;  %v5605_v46 = vld [vmem:[%s6803_s21 + $0xa8] sm:$0xf]  ;;  %v3972_v51 = vrot.slane %v3971_v57, 4  ;;  %v3905_v30 = vsel %vm6822_vm2, %v3900_v29, %v3904_v49  ;;  %v3919_v43 = vsel %vm6822_vm2, %v3914_v9, %v7886_v58  ;;  %v3929_v22 = vsel %vm6822_vm2, %v3924_v33, %v3928_v25 }
 0x100   : > { %5970 = vmatprep.mubr.msk.bf16.mxu1 %vm764_vm3, %v8697_v52  ;;  %6124 = vmatprep.mubr.msk.bf16.mxu0 %vm764_vm3, %v7676_v4  ;;  %v3985_v52 = vor.u32 %v3984_v56, %v3981_v12  ;;  %v7931_v4 = vld [vmem:[%s6803_s21 + $0xac] sm:$0xf]  ;;  %v4003_v7 = vshrl.u32 %v5605_v46, 16  ;;  %v4006_v39 = vshll.u32 %v5605_v46, 16  ;;  %v7938_v45 = vsel %vm7044_vm6, %v7842_v54, %v8698_v26 }
 0x101   : > { %v3943_v54 = vsel %vm6822_vm2, %v3938_v41, %v7891_v31  ;;  %v3995_v3 = vor.u32 %v3994_v23, %v7925_v48  ;;  %v3998_v16 = vshll.u32 %v7928_v53, 16  ;;  %v3953_v27 = vsel %vm6822_vm2, %v3948_v19, %v3952_v21  ;;  %v5656_v31 = vld [vmem:[%s6803_s21 + $0x48] sm:$0xe]  ;;  %v5659_v26 = vld [vmem:[%s6803_s21 + $0x6c] sm:$0xe] }
 0x102   : > { %v3967_v58 = vsel %vm6822_vm2, %v3962_v10, %v7899_v59  ;;  %v4012_v13 = vshll.u32 %v7931_v4, 16  ;;  %v4016_v24 = vshrl.u32 %v7931_v4, 16  ;;  %v8699_v63 = vcombine.low %v7642_v32, %v7652_v5  ;;  %v7974_v59 = vld [vmem:[%s6803_s21 + $0xb0] sm:$0x1] }
 0x103   : > { %v3986_v49 = vrot.slane %v3985_v52, 4  ;;  %v4005_v57 = vrot.slane %v4003_v7, 4  ;;  %v4008_v12 = vrot.slane %v4006_v39, 5  ;;  %v8700_v56 = vcombine.low %v7752_v61, %v7764_v40  ;;  %v5608_v40 = vld [vmem:[%s6803_s21 + $0xb4] sm:$0xf] }
 0x104   : > { %v8701_v32 = vsel %vm6822_vm2, %v7810_v14, %v7812_v15  ;;  %v8702_v5 = vsel %vm6822_vm2, %v7808_v11, %v7736_v60  ;;  %v5267_v55 = vcombine.low %v7840_v1, %v7938_v45  ;;  %v7992_v29 = vcombine.low %v3895_v36, %v3905_v30  ;;  %v5657_v15 = vld [vmem:[%s6803_s21 + $0x54] sm:$0xe] }
 0x105   : > { %v7994_v61 = vcombine.low %v3919_v43, %v3929_v22  ;;  %v7997_v9 = vcombine.low %v3943_v54, %v3953_v27  ;;  %v3996_v25 = vrot.slane %v3995_v3, 4  ;;  %v4000_v46 = vrot.slane %v3998_v16, 5  ;;  %v8704_v16 = vld [vmem:[#allocation11_spill] sm:$0xff] }
 0x106   : > { %6125 = vmatmul.mubr.msk.bf16.gmra.mrb[4].mxu0 %vm764_vm3, %v7806_v44  ;;  %v3977_v44 = vsel %vm6822_vm2, %v3972_v51, %v3976_v6  ;;  %v5672_v14 = vrot.slane %v5656_v31, 9  ;;  %v8002_v60 = vrot.slane %v4012_v13, 5  ;;  %v4018_v11 = vrot.slane %v4016_v24, 4  ;;  %v5658_v6 = vld [vmem:[%s6803_s21 + $0x60] sm:$0xe]  ;;  %v8705_v13 = vld [vmem:[#allocation12_spill] sm:$0xff] }
 0x107   : > { %5971 = vmatmul.mubr.msk.bf16.gmra.mrb[20].mxu1 %vm764_vm3, %v8699_v63  ;;  %6128 = vmatprep.mubr.msk.bf16.mxu0 %vm764_vm3, %v7816_v38  ;;  %v5625_v38 = vcombine.low %v8702_v5, %v8701_v32  ;;  %v8000_v33 = vcombine.low %v3967_v58, %v3977_v44  ;;  %v4022_v41 = vshll.u32 %v7974_v59, 16  ;;  %v3991_v23 = vsel %vm6822_vm2, %v3986_v49, %v7925_v48  ;;  %v8706_v24 = vld [vmem:[#allocation13_spill] sm:$0xff]  ;;  %v8708_v63 = vld [vmem:[#allocation14_spill] sm:$0xff] }
 0x108   : > { %5974 = vmatprep.mubr.msk.bf16.mxu1 %vm764_vm3, %v8700_v56  ;;  %v4009_v19 = vor.u32 %v4008_v12, %v4005_v57  ;;  %v4490_v21 = vrot.slane %v7635_v20, 5  ;;  %v4493_v10 = vrot.slane %v7689_v35, 5  ;;  %v4027_v51 = vshrl.u32 %v5608_v40, 16  ;;  %v8024_v35 = vld [vmem:[%s6803_s21 + $0xb8] sm:$0xf]  ;;  %v8709_v49 = vld [vmem:[#allocation18_spill] sm:$0xff] }
 0x109   : > { %v5673_v52 = vrot.slane %v5657_v15, 9  ;;  %v4497_v7 = vrot.slane %v7646_v18, 5  ;;  %v4500_v39 = vrot.slane %v7713_v37, 5  ;;  %v4001_v36 = vsel %vm6822_vm2, %v3996_v25, %v4000_v46  ;;  %v5611_v12 = vld [vmem:[%s6803_s21 + $0xc0] sm:$0xf] }
 0x10a   : > { %v4030_v30 = vshll.u32 %v5608_v40, 16  ;;  %v8018_v48 = vsel %vm7044_vm6, %v5672_v14, %v4490_v21  ;;  %v4492_v43 = vrot.slane %v4490_v21, 4  ;;  %v4019_v20 = vor.u32 %v4018_v11, %v8002_v60  ;;  %v5660_v14 = vld [vmem:[%s6803_s21 + $0x78] sm:$0xe] }
 0x10b   : > { %v8028_v37 = vsel %vm7044_vm6, %v5673_v52, %v4497_v7  ;;  %v4499_v18 = vrot.slane %v4497_v7, 4  ;;  %v5674_v22 = vrot.slane %v5658_v6, 9  ;;  %v8703_v54 = vcombine.low %v7771_v42, %v7775_v62  ;;  %v6543_v6 = vld [vmem:[%s6803_s21 + $0xc] sm:$0xff]  }
 0x10c   : > { %v4504_v3 = vrot.slane %v7695_v8, 5  ;;  %v4507_v27 = vrot.slane %v8704_v16, 5  ;;  %v5675_v58 = vrot.slane %v5659_v26, 9  ;;  %v8707_v31 = vcombine.low %v8705_v13, %v8706_v24  ;;  %v8711_v13 = vld [vmem:[#allocation6_spill] sm:$0xff]  ;;  %v8712_v24 = vld [vmem:[#allocation7_spill] sm:$0xff] }
 0x10d   : > { %v8049_v62 = vsel %vm7044_vm6, %v4499_v18, %v4500_v39  ;;  %v4511_v44 = vrot.slane %v8708_v63, 5  ;;  %v4514_v8 = vrot.slane %v8709_v49, 5  ;;  %v4036_v57 = vshll.u32 %v8024_v35, 16  ;;  %v8086_v39 = vld [vmem:[%s6803_s21 + $0xc4] sm:$0xf]  ;;  %v8713_v49 = vld [vmem:[#allocation16_spill] sm:$0xff] }
 0x10e   : > { %6129 = vmatmul.mubr.msk.bf16.gmra.mrb[8].mxu0 %vm764_vm3, %v7820_v47  ;;  %v8037_v47 = vsel %vm7044_vm6, %v4492_v43, %v4493_v10  ;;  %v5691_v56 = vcombine.low %v8028_v37, %v8049_v62  ;;  %v8059_v32 = vsel %vm7044_vm6, %v5674_v22, %v4504_v3  ;;  %v4506_v5 = vrot.slane %v4504_v3, 4  ;;  %v5379_v10 = vld [vmem:[%s6803_s21 + $0x78] sm:$0xf]  ;;  %v8710_v22 = vld [vmem:[#allocation15_spill] sm:$0xff]  ;;  %v6608_v62 = vld [vmem:[%s6803_s21 + $0xa0] sm:$0xf] }
 0x10f   : > { %5975 = vmatmul.mubr.msk.bf16.gmra.mrb[24].mxu1 %vm764_vm3, %v8703_v54  ;;  %6132 = vmatprep.mubr.msk.bf16.mxu0 %vm764_vm3, %v5625_v38  ;;  %v5690_v42 = vcombine.low %v8018_v48, %v8037_v47  ;;  %v8061_v38 = vrot.slane %v4022_v41, 5  ;;  %v4040_v40 = vshrl.u32 %v8024_v35, 16  ;;  %v8066_v25 = vsel %vm7044_vm6, %v5675_v58, %v4511_v44 }
 0x110   : > { %5978 = vmatprep.mubr.msk.bf16.mxu1 %vm764_vm3, %v8707_v31  ;;  %v4513_v46 = vrot.slane %v4511_v44, 4  ;;  %v8069_v15 = vcombine.low %v3991_v23, %v4001_v36  ;;  %v8071_v11 = vrot.slane %v4009_v19, 4  ;;  %v8073_v21 = vrot.slane %v4027_v51, 4 }
 0x111   : > { %v8077_v41 = vsel %vm7044_vm6, %v4506_v5, %v4507_v27  ;;  %v8081_v52 = vrot.slane %v4019_v20, 4  ;;  %v8083_v7 = vrot.slane %v4030_v30, 5  ;;  %v8094_v51 = vrot.slane %v4036_v57, 5  ;;  %v5661_v20 = vld [vmem:[%s6803_s21 + $0x84] sm:$0xe] }
 0x112   : > { %v5692_v23 = vcombine.low %v8059_v32, %v8077_v41  ;;  %v8092_v19 = vsel %vm7044_vm6, %v4513_v46, %v4514_v8  ;;  %v4051_v26 = vshrl.u32 %v5611_v12, 16  ;;  %v5676_v43 = vrot.slane %v5660_v14, 9  ;;  %v8102_v30 = vld [vmem:[%s6803_s21 + $0xbc] sm:$0x1]  ;;  %v5614_v5 = vld [vmem:[%s6803_s21 + $0xcc] sm:$0xf] }
 0x113   : > { %v5693_v36 = vcombine.low %v8066_v25, %v8092_v19  ;;  %v4054_v18 = vshll.u32 %v5611_v12, 16  ;;  %v4518_v54 = vrot.slane %v8710_v22, 5  ;;  %v4521_v3 = vrot.slane %v7876_v34, 5  ;;  %v6544_v14 = vld [vmem:[%s6803_s21 + $0x18] sm:$0xff]   ;;  %v5662_v22 = vld [vmem:[%s6803_s21 + $0x90] sm:$0xe] }
 0x114   : > { %v2361_v16 = vshrl.u32 %v5379_v10, 16  ;;  %v4060_v27 = vshll.u32 %v8086_v39, 16  ;;  %v2364_v58 = vshll.u32 %v5379_v10, 16  ;;  %v2383_v34 = vsel %vm6822_vm2, %v8712_v24, %v8711_v13  ;;  %v8714_v24 = vld [vmem:[#allocation17_spill] sm:$0xff]  ;;  %v6612_v19 = vld [vmem:[%s6803_s21 + $0xac] sm:$0xf] }
 0x115   : > { %v8121_v1 = vsel %vm7044_vm6, %v5676_v43, %v4518_v54  ;;  %v4520_v45 = vrot.slane %v4518_v54, 4  ;;  %v4042_v31 = vrot.slane %v4040_v40, 4  ;;  %v4046_v63 = vshll.u32 %v8102_v30, 16 }
 0x116   : > { %6133 = vmatmul.mubr.msk.bf16.gmra.mrb[12].mxu0 %vm764_vm3, %v7992_v29  ;;  %v4064_v29 = vshrl.u32 %v8086_v39, 16  ;;  %v2366_v44 = vrot.slane %v2364_v58, 5  ;;  %v4525_v8 = vrot.slane %v8713_v49, 5  ;;  %v4015_v57 = vsel %vm6822_vm2, %v8071_v11, %v8002_v60  ;;  %v6545_v60 = vld [vmem:[%s6803_s21 + $0x24] sm:$0xff]  }
 0x117   : > { %5979 = vmatmul.mubr.msk.bf16.gmra.mrb[28].mxu1 %vm764_vm3, %v5267_v55  ;;  %6136 = vmatprep.mubr.msk.bf16.mxu0 %vm764_vm3, %v7994_v61  ;;  %v2363_v55 = vrot.slane %v2361_v16, 4  ;;  %v5677_v61 = vrot.slane %v5661_v20, 9  ;;  %v4033_v12 = vor.u32 %v8083_v7, %v8073_v21  ;;  %v8134_v46 = vsel %vm7044_vm6, %v4520_v45, %v4521_v3  ;;  %v8145_v7 = vld [vmem:[%s6803_s21 + $0xd0] sm:$0xf] }
 0x118   : > { %5984 = vmatprep.mubr.msk.bf16.mxu1 %vm764_vm3, %v6543_v6  ;;  %v4528_v40 = vrot.slane %v7889_v17, 5  ;;  %v4053_v10 = vrot.slane %v4051_v26, 4  ;;  %v4056_v6 = vrot.slane %v4054_v18, 5  ;;  %v5694_v43 = vcombine.low %v8121_v1, %v8134_v46  ;;  %v8157_v18 = vld [vmem:[%s6803_s21 + $0xc8] sm:$0x1] }
 0x119   : > { %v2367_v20 = vor.u32 %v2366_v44, %v2363_v55  ;;  %v8142_v11 = vrot.slane %v4060_v27, 5  ;;  %v4066_v21 = vrot.slane %v4064_v29, 4  ;;  %v8149_v54 = vsel %vm7044_vm6, %v5677_v61, %v4525_v8  ;;  %v8715_v55 = vld [vmem:[#allocation5_spill] sm:$0xff] }
 0x11a   : > { %v4527_v3 = vrot.slane %v4525_v8, 4  ;;  %v4025_v17 = vsel %vm6822_vm2, %v8081_v52, %v8061_v38  ;;  %v4043_v26 = vor.u32 %v4042_v31, %v8094_v51  ;;  %v4075_v16 = vshrl.u32 %v5614_v5, 16  ;;  %v8716_v31 = vld [vmem:[#allocation10_spill] sm:$0xff] }
 0x11b   : > { %v2368_v27 = vrot.slane %v2367_v20, 4  ;;  %v4078_v29 = vshll.u32 %v5614_v5, 16  ;;  %v5678_v13 = vrot.slane %v5662_v22, 9  ;;  %v4532_v45 = vrot.slane %v8714_v24, 5 }
 0x11c   : > { %v8163_v58 = vsel %vm7044_vm6, %v4527_v3, %v4528_v40  ;;  %v4084_v38 = vshll.u32 %v8145_v7, 16  ;;  %v4088_v52 = vshrl.u32 %v8145_v7, 16  ;;  %v4057_v44 = vor.u32 %v4056_v6, %v4053_v10  ;;  %v5663_v10 = vld [vmem:[%s6803_s21 + $0x9c] sm:$0xe]  ;;  %v6546_v6 = vld [vmem:[%s6803_s21 + $0x30] sm:$0xff]  }
 0x11d   : > { %v5695_v61 = vcombine.low %v8149_v54, %v8163_v58  ;;  %v4070_v49 = vshll.u32 %v8157_v18, 16  ;;  %v4048_v5 = vrot.slane %v4046_v63, 5  ;;  %v8184_v40 = vsel %vm7044_vm6, %v5678_v13, %v4532_v45  ;;  %v6547_v13 = vld [vmem:[%s6803_s21 + $0x3c] sm:$0xff]  }
 0x11e   : > { %6137 = vmatmul.mubr.msk.bf16.gmra.mrb[16].mxu0 %vm764_vm3, %v7997_v9  ;;  %v2373_v9 = vsel %vm6822_vm2, %v2368_v27, %v8715_v55  ;;  %v4535_v20 = vrot.slane %v7897_v0, 5  ;;  %v5631_v22 = vcombine.low %v4015_v57, %v4025_v17  ;;  %v4034_v3 = vrot.slane %v4033_v12, 4 }
 0x11f   : > { %5985 = vmatmul.mubr.msk.bf16.vlgmr.msra.gmra.mrb[0].mxu1 %vm764_vm3, %v6544_v14  ;;  %6140 = vmatprep.mubr.msk.bf16.mxu0 %vm764_vm3, %v8000_v33  ;;  %v4067_v33 = vor.u32 %v4066_v21, %v8142_v11  ;;  %v8180_v8 = vcombine.low %v2373_v9, %v2383_v34  ;;  %v4534_v14 = vrot.slane %v4532_v45, 4  ;;  %v4044_v27 = vrot.slane %v4043_v26, 4  ;;  %v8190_v21 = vld [vmem:[%s6803_s21 + $0xd4] sm:$0x1]  ;;  %v5652_v9 = vld [vmem:[%s6803_s21 + $0x18] sm:$0xe] }
 0x120   : > { %6187 = vmatpush3.bf16.msra.mxu1 %v8716_v31  ;;  %5988 = vmatprep.mubr.msk.bf16.mxu1 %vm764_vm3, %v6545_v60  ;;  %v4077_v60 = vrot.slane %v4075_v16, 4  ;;  %v4080_v24 = vrot.slane %v4078_v29, 5  ;;  %v8192_v34 = vrot.slane %v4084_v38, 5  ;;  %v4090_v55 = vrot.slane %v4088_v52, 4 }
 0x121   : > { %v8196_v63 = vsel %vm7044_vm6, %v4534_v14, %v4535_v20  ;;  %v4058_v45 = vrot.slane %v4057_v44, 4  ;;  %v4068_v0 = vrot.slane %v4067_v33, 4  ;;  %v4072_v57 = vrot.slane %v4070_v49, 5  ;;  %v6598_v33 = vld [vmem:[%s6803_s21 + $0x1c] sm:$0xf] }
 0x122   : > { %v5696_v12 = vcombine.low %v8184_v40, %v8196_v63  ;;  %v5679_v17 = vrot.slane %v5663_v10, 9  ;;  %v4539_v26 = vrot.slane %v7894_v50, 5  ;;  %v4039_v16 = vsel %vm6822_vm2, %v4034_v3, %v8094_v51  ;;  %v5664_v14 = vld [vmem:[%s6803_s21 + $0xa8] sm:$0xe] }
 0x123   : > { %v4049_v29 = vsel %vm6822_vm2, %v4044_v27, %v4048_v5  ;;  %v4094_v38 = vshll.u32 %v8190_v21, 16  ;;  %v4542_v52 = vrot.slane %v7928_v53, 5  ;;  %v4081_v50 = vor.u32 %v4080_v24, %v4077_v60  ;;  %v6548_v60 = vld [vmem:[%s6803_s21 + $0x48] sm:$0xff]   ;;  %v6599_v24 = vld [vmem:[%s6803_s21 + $0x20] sm:$0x1] }
 0x124   : > { %v8217_v51 = vsel %vm7044_vm6, %v5679_v17, %v4539_v26  ;;  %v4541_v31 = vrot.slane %v4539_v26, 4  ;;  %v4063_v53 = vsel %vm6822_vm2, %v4058_v45, %v8142_v11  ;;  %v4073_v44 = vsel %vm6822_vm2, %v4068_v0, %v4072_v57  ;;  %v5665_v26 = vld [vmem:[%s6803_s21 + $0xb4] sm:$0xe] }
 0x125   : > { %v4462_v49 = vrot.slane %v6598_v33, 5  ;;  %v5632_v20 = vcombine.low %v4039_v16, %v4049_v29  ;;  %v5668_v3 = vrot.slane %v5652_v9, 9  ;;  %v5633_v11 = vcombine.low %v4063_v53, %v4073_v44  ;;  %v5654_v33 = vld [vmem:[%s6803_s21 + $0x30] sm:$0xe] }
 0x126   : > { %6141 = vmatmul.mubr.msk.bf16.gmra.mrb[20].mxu0 %vm764_vm3, %v8069_v15  ;;  %v4091_v15 = vor.u32 %v4090_v55, %v8192_v34  ;;  %v8228_v5 = vsel %vm7044_vm6, %v4541_v31, %v4542_v52  ;;  %v4082_v10 = vrot.slane %v4081_v50, 4  ;;  %v4465_v55 = vrot.slane %v6599_v24, 5  ;;  %v5653_v52 = vld [vmem:[%s6803_s21 + $0x24] sm:$0xe]  ;;  %v6600_v50 = vld [vmem:[%s6803_s21 + $0x28] sm:$0xf] }
 0x127   : > { %5989 = vmatmul.mubr.msk.bf16.gmra.mrb[4].mxu1 %vm764_vm3, %v6546_v6  ;;  %6144 = vmatprep.mubr.msk.bf16.mxu0 %vm764_vm3, %v5631_v22  ;;  %v4096_v22 = vrot.slane %v4094_v38, 5  ;;  %v5697_v27 = vcombine.low %v8217_v51, %v8228_v5  ;;  %v4464_v45 = vrot.slane %v4462_v49, 4  ;;  %v5680_v0 = vrot.slane %v5664_v14, 9  ;;  %v6601_v31 = vld [vmem:[%s6803_s21 + $0x34] sm:$0xf] }
 0x128   : > { %5992 = vmatprep.mubr.msk.bf16.mxu1 %vm764_vm3, %v6547_v13  ;;  %v4092_v6 = vrot.slane %v4091_v15, 4  ;;  %v6549_v13 = vld [vmem:[%s6803_s21 + $0x54] sm:$0xff]   ;;  %v4546_v57 = vrot.slane %v7931_v4, 5  ;;  %v4549_v17 = vrot.slane %v7974_v59, 5  ;;  %v4087_v4 = vsel %vm6822_vm2, %v4082_v10, %v8192_v34  ;;  %v6550_v10 = vld [vmem:[%s6803_s21 + $0x60] sm:$0xff]  }
 0x129   : > { %v4463_v38 = vsel %vm7044_vm6, %v5668_v3, %v4462_v49  ;;  %v4469_v15 = vrot.slane %v6600_v50, 5  ;;  %v4466_v9 = vsel %vm7044_vm6, %v4464_v45, %v4465_v55  ;;  %v4476_v53 = vrot.slane %v6601_v31, 5  ;;  %v6602_v3 = vld [vmem:[%s6803_s21 + $0x2c] sm:$0x1]  ;;  %v6617_v51 = vld [vmem:[%s6803_s21 + $0xc8] sm:$0x1] }
 0x12a   : > { %v8242_v16 = vsel %vm7044_vm6, %v5680_v0, %v4546_v57  ;;  %v4548_v29 = vrot.slane %v4546_v57, 4  ;;  %v4097_v59 = vsel %vm6822_vm2, %v4092_v6, %v4096_v22  ;;  %v5681_v44 = vrot.slane %v5665_v26, 9  ;;  %v6551_v45 = vld [vmem:[%s6803_s21 + $0x6c] sm:$0xff]   ;;  %v5666_v26 = vld [vmem:[%s6803_s21 + $0xc0] sm:$0xe] }
 0x12b   : > { %v4553_v14 = vrot.slane %v8024_v35, 5  ;;  %v5669_v22 = vrot.slane %v5653_v52, 9  ;;  %v5686_v6 = vcombine.low %v4463_v38, %v4466_v9  ;;  %v4471_v24 = vrot.slane %v4469_v15, 4  ;;  %v6603_v35 = vld [vmem:[%s6803_s21 + $0x38] sm:$0x1] }
 0x12c   : > { %v8261_v34 = vsel %vm7044_vm6, %v4548_v29, %v4549_v17  ;;  %v5670_v0 = vrot.slane %v5654_v33, 9  ;;  %v4478_v57 = vrot.slane %v4476_v53, 4  ;;  %v4479_v17 = vrot.slane %v6603_v35, 5  ;;  %v8717_v38 = vld [vmem:[#allocation8_spill] sm:$0xff] }
 0x12d   : > { %v5698_v49 = vcombine.low %v8242_v16, %v8261_v34  ;;  %v8272_v55 = vsel %vm7044_vm6, %v5681_v44, %v4553_v14  ;;  %v4483_v52 = vrot.slane %v8717_v38, 5  ;;  %v5682_v50 = vrot.slane %v5666_v26, 9  ;;  %v5655_v44 = vld [vmem:[%s6803_s21 + $0x3c] sm:$0xe]  ;;  %v6604_v38 = vld [vmem:[%s6803_s21 + $0x70] sm:$0xf] }
 0x12e   : > { %6145 = vmatmul.mubr.msk.bf16.gmra.mrb[24].mxu0 %vm764_vm3, %v5632_v20  ;;  %v5634_v20 = vcombine.low %v4087_v4, %v4097_v59  ;;  %v4470_v4 = vsel %vm7044_vm6, %v5669_v22, %v4469_v15  ;;  %v4477_v9 = vsel %vm7044_vm6, %v5670_v0, %v4476_v53  ;;  %v4480_v31 = vsel %vm7044_vm6, %v4478_v57, %v4479_v17  ;;  %v5376_v22 = vld [vmem:[%s6803_s21 + $0x6c] sm:$0xf] }
 0x12f   : > { %5993 = vmatmul.mubr.msk.bf16.gmra.mrb[8].mxu1 %vm764_vm3, %v6548_v60  ;;  %6148 = vmatprep.mubr.msk.bf16.mxu0 %vm764_vm3, %v5633_v11  ;;  %v4472_v60 = vrot.slane %v6602_v3, 5  ;;  %v4556_v11 = vrot.slane %v8102_v30, 5  ;;  %v4560_v33 = vrot.slane %v8086_v39, 5  ;;  %v4563_v15 = vrot.slane %v8157_v18, 5 }
 0x130   : > { %5996 = vmatprep.mubr.msk.bf16.mxu1 %vm764_vm3, %v6549_v13  ;;  %v4555_v13 = vrot.slane %v4553_v14, 4  ;;  %v5667_v14 = vld [vmem:[%s6803_s21 + $0xcc] sm:$0xe]  ;;  %v4485_v53 = vrot.slane %v4483_v52, 4  ;;  %v2337_v0 = vshrl.u32 %v5376_v22, 16  ;;  %v2340_v57 = vshll.u32 %v5376_v22, 16 }
 0x131   : > { %v4473_v59 = vsel %vm7044_vm6, %v4471_v24, %v4472_v60  ;;  %v8303_v3 = vsel %vm7044_vm6, %v5682_v50, %v4560_v33  ;;  %v4562_v60 = vrot.slane %v4560_v33, 4  ;;  %v8718_v24 = vld [vmem:[#allocation9_spill] sm:$0xff]  ;;  %v5683_v18 = vrot.slane %v5667_v14, 9 }
 0x132   : > { %v8279_v29 = vsel %vm7044_vm6, %v4555_v13, %v4556_v11  ;;  %v6552_v11 = vld [vmem:[%s6803_s21 + $0x78] sm:$0xff]   ;;  %v4486_v13 = vrot.slane %v8718_v24, 5  ;;  %v4567_v17 = vrot.slane %v8145_v7, 5  ;;  %v4570_v26 = vrot.slane %v8190_v21, 5 }
 0x133   : > { %v5699_v30 = vcombine.low %v8272_v55, %v8279_v29  ;;  %v8310_v39 = vsel %vm7044_vm6, %v4562_v60, %v4563_v15  ;;  %v2346_v50 = vshll.u32 %v6604_v38, 16  ;;  %v6554_v15 = vld [vmem:[%s6803_s21 + $0x90] sm:$0xff]   ;;  %v6555_v60 = vld [vmem:[%s6803_s21 + $0x9c] sm:$0xff]   ;;  %v2524_v5 = vshll.u32 %v6617_v51, 16 }
 0x134   : > { %v5700_v35 = vcombine.low %v8303_v3, %v8310_v39  ;;  %v8327_v7 = vsel %vm7044_vm6, %v5683_v18, %v4567_v17  ;;  %v4569_v21 = vrot.slane %v4567_v17, 4  ;;  %v5385_v17 = vld [vmem:[%s6803_s21 + $0x90] sm:$0xf] }
 0x135   : > { %v2348_v14 = vrot.slane %v2346_v50, 5 }
 0x136   : > { %6149 = vmatmul.mubr.msk.bf16.gmra.mrb[28].mxu0 %vm764_vm3, %v5634_v20  ;;  %v5687_v20 = vcombine.low %v4470_v4, %v4473_v59  ;;  %v4487_v59 = vsel %vm7044_vm6, %v4485_v53, %v4486_v13 }
 0x137   : > { %5997 = vmatmul.mubr.msk.bf16.gmra.mrb[12].mxu1 %vm764_vm3, %v6550_v10  ;;  %6154 = vmatprep.mubr.msk.bf16.mxu0 %vm764_vm3, %v5686_v6  ;;  %v5688_v10 = vcombine.low %v4477_v9, %v4480_v31  ;;  %v5671_v6 = vrot.slane %v5655_v44, 9  ;;  %v2350_v9 = vshrl.u32 %v6604_v38, 16  ;;  %v2339_v31 = vrot.slane %v2337_v0, 4  ;;  %v6557_v38 = vld [vmem:[%s6803_s21 + $0xb4] sm:$0xff]  }
 0x138   : > { %6000 = vmatprep.mubr.msk.bf16.mxu1 %vm764_vm3, %v6551_v45  ;;  %v6553_v45 = vld [vmem:[%s6803_s21 + $0x84] sm:$0xff]   ;;  %v2342_v44 = vrot.slane %v2340_v57, 5 }
 0x139   : > { %v4484_v4 = vsel %vm7044_vm6, %v5671_v6, %v4483_v52  ;;  %v8331_v52 = vsel %vm7044_vm6, %v4569_v21, %v4570_v26  ;;  %v6605_v6 = vld [vmem:[%s6803_s21 + $0x74] sm:$0x1]  ;;  %v6556_v26 = vld [vmem:[%s6803_s21 + $0xa8] sm:$0xff]   ;;  %v2409_v21 = vshrl.u32 %v5385_v17, 16 }
 0x13a   : > { %v5689_v33 = vcombine.low %v4484_v4, %v4487_v59  ;;  %v5701_v22 = vcombine.low %v8327_v7, %v8331_v52  ;;  %v2356_v53 = vshll.u32 %v6605_v6, 16  ;;  %v5388_v59 = vld [vmem:[%s6803_s21 + $0x9c] sm:$0xf]  ;;  %v6609_v6 = vld [vmem:[%s6803_s21 + $0x8c] sm:$0x1] }
 0x13c   : > { %v2358_v48 = vrot.slane %v2356_v53, 5  ;;  %v2404_v53 = vshll.u32 %v6609_v6, 16 }
 0x13e   : > { %6155 = vmatmul.mubr.msk.bf16.vlgmr.msra.gmra.mrb[0].mxu0 %vm764_vm3, %v5687_v20  ;;  %v2352_v20 = vrot.slane %v2350_v9, 4 }
 0x13f   : > { %6001 = vmatmul.mubr.msk.bf16.gmra.mrb[16].mxu1 %vm764_vm3, %v6552_v11  ;;  %6158 = vmatprep.mubr.msk.bf16.mxu0 %vm764_vm3, %v5688_v10  ;;  %v5382_v11 = vld [vmem:[%s6803_s21 + $0x84] sm:$0xf]  ;;  %v2343_v10 = vor.u32 %v2342_v44, %v2339_v31  ;;  %v2412_v31 = vshll.u32 %v5385_v17, 16 }
 0x140   : > { %6004 = vmatprep.mubr.msk.bf16.mxu1 %vm764_vm3, %v6553_v45  ;;  %v2353_v2 = vor.u32 %v2352_v20, %v2348_v14  ;;  %v2385_v24 = vshrl.u32 %v5382_v11, 16  ;;  %v2388_v13 = vshll.u32 %v5382_v11, 16  ;;  %v6606_v45 = vld [vmem:[%s6803_s21 + $0x88] sm:$0xf]  ;;  %v2436_v11 = vshll.u32 %v5388_v59, 16 }
 0x141   : > { %v2394_v18 = vshll.u32 %v6606_v45, 16  ;;  %v2398_v0 = vshrl.u32 %v6606_v45, 16  ;;  %v2344_v57 = vrot.slane %v2343_v10, 4  ;;  %v2442_v10 = vshll.u32 %v6608_v62, 16 }
 0x142   : > { %v2354_v4 = vrot.slane %v2353_v2, 4  ;;  %v2387_v47 = vrot.slane %v2385_v24, 4  ;;  %v2411_v24 = vrot.slane %v2409_v21, 4  ;;  %v2414_v32 = vrot.slane %v2412_v31, 5  ;;  %v6611_v31 = vld [vmem:[%s6803_s21 + $0xa4] sm:$0x1] }
 0x143   : > { %v8351_v50 = vrot.slane %v2394_v18, 5  ;;  %v2400_v9 = vrot.slane %v2398_v0, 4  ;;  %v2349_v44 = vsel %vm6822_vm2, %v2344_v57, %v2348_v14  ;;  %v2438_v45 = vrot.slane %v2436_v11, 5  ;;  %v6558_v18 = vld [vmem:[%s6803_s21 + $0xc0] sm:$0xff]  }
 0x144   : > { %v2359_v14 = vsel %vm6822_vm2, %v2354_v4, %v2358_v48  ;;  %v8374_v17 = vrot.slane %v2442_v10, 5  ;;  %v5391_v4 = vld [vmem:[%s6803_s21 + $0xa8] sm:$0xf] }
 0x145   : > { %v2401_v2 = vor.u32 %v2400_v9, %v8351_v50  ;;  %v5410_v0 = vcombine.low %v2349_v44, %v2359_v14  ;;  %v2452_v44 = vshll.u32 %v6611_v31, 16  ;;  %v2460_v25 = vshll.u32 %v5391_v4, 16 }
 0x146   : > { %6159 = vmatmul.mubr.msk.bf16.gmra.mrb[4].mxu0 %vm764_vm3, %v5689_v33  ;;  %v6607_v33 = vld [vmem:[%s6803_s21 + $0x94] sm:$0xf] }
 0x147   : > { %6005 = vmatmul.mubr.msk.bf16.gmra.mrb[20].mxu1 %vm764_vm3, %v6554_v15  ;;  %6162 = vmatprep.mubr.msk.bf16.mxu0 %vm764_vm3, %v5690_v42  ;;  %v2390_v42 = vrot.slane %v2388_v13, 5  ;;  %v2418_v15 = vshll.u32 %v6607_v33, 16  ;;  %v2422_v20 = vshrl.u32 %v6607_v33, 16  ;;  %v2402_v48 = vrot.slane %v2401_v2, 4 }
 0x148   : > { %6008 = vmatprep.mubr.msk.bf16.mxu1 %vm764_vm3, %v6555_v60  ;;  %v2433_v60 = vshrl.u32 %v5388_v59, 16  ;;  %v6610_v59 = vld [vmem:[%s6803_s21 + $0x98] sm:$0x1]  ;;  %v2457_v33 = vshrl.u32 %v5391_v4, 16  ;;  %v5397_v4 = vld [vmem:[%s6803_s21 + $0xc0] sm:$0xf] }
 0x149   : > { %v2391_v37 = vor.u32 %v2390_v42, %v2387_v47  ;;  %v8371_v41 = vrot.slane %v2418_v15, 5  ;;  %v2406_v47 = vrot.slane %v2404_v53, 5  ;;  %v2415_v42 = vor.u32 %v2414_v32, %v2411_v24  ;;  %v5394_v15 = vld [vmem:[%s6803_s21 + $0xb4] sm:$0xf] }
 0x14a   : > { %v2435_v13 = vrot.slane %v2433_v60, 4  ;;  %v2470_v60 = vshrl.u32 %v6612_v19, 16  ;;  %v2481_v1 = vshrl.u32 %v5394_v15, 16  ;;  %v2484_v46 = vshll.u32 %v5394_v15, 16 }
 0x14b   : > { %v2392_v57 = vrot.slane %v2391_v37, 4  ;;  %v2407_v14 = vsel %vm6822_vm2, %v2402_v48, %v2406_v47  ;;  %v2416_v37 = vrot.slane %v2415_v42, 4  ;;  %v2454_v53 = vrot.slane %v2452_v44, 5 }
 0x14c   : > { %v2439_v21 = vor.u32 %v2438_v45, %v2435_v13  ;;  %v2459_v24 = vrot.slane %v2457_v33, 4  ;;  %v2472_v45 = vrot.slane %v2470_v60, 4  ;;  %v6616_v33 = vld [vmem:[%s6803_s21 + $0xbc] sm:$0x1] }
 0x14d   : > { %v2397_v11 = vsel %vm6822_vm2, %v2392_v57, %v8351_v50  ;;  %v2421_v48 = vsel %vm6822_vm2, %v2416_v37, %v8371_v41  ;;  %v2500_v40 = vshll.u32 %v6616_v33, 16 }
 0x14e   : > { %6163 = vmatmul.mubr.msk.bf16.gmra.mrb[8].mxu0 %vm764_vm3, %v5691_v56  ;;  %v2446_v56 = vshrl.u32 %v6608_v62, 16  ;;  %v2440_v6 = vrot.slane %v2439_v21, 4  ;;  %v5412_v50 = vcombine.low %v2397_v11, %v2407_v14 }
 0x14f   : > { %6009 = vmatmul.mubr.msk.bf16.gmra.mrb[24].mxu1 %vm764_vm3, %v6556_v26  ;;  %6166 = vmatprep.mubr.msk.bf16.mxu0 %vm764_vm3, %v5692_v23  ;;  %v2424_v23 = vrot.slane %v2422_v20, 4 }
 0x150   : > { %6012 = vmatprep.mubr.msk.bf16.mxu1 %vm764_vm3, %v6557_v38  ;;  %v2448_v26 = vrot.slane %v2446_v56, 4  ;;  %v2428_v38 = vshll.u32 %v6610_v59, 16  ;;  %v2445_v42 = vsel %vm6822_vm2, %v2440_v6, %v8374_v17  ;;  %v2526_v6 = vrot.slane %v2524_v5, 5 }
 0x151   : > { %v2425_v9 = vor.u32 %v2424_v23, %v8371_v41  ;;  %v2462_v23 = vrot.slane %v2460_v25, 5  ;;  %v6614_v41 = vld [vmem:[%s6803_s21 + $0xb0] sm:$0x1] }
 0x152   : > { %v2449_v20 = vor.u32 %v2448_v26, %v8374_v17  ;;  %v2430_v62 = vrot.slane %v2428_v38, 5  ;;  %v2476_v59 = vshll.u32 %v6614_v41, 16  ;;  %v2505_v38 = vshrl.u32 %v5397_v4, 16 }
 0x153   : > { %v2426_v2 = vrot.slane %v2425_v9, 4  ;;  %v2463_v58 = vor.u32 %v2462_v23, %v2459_v24  ;;  %v2508_v17 = vshll.u32 %v5397_v4, 16  ;;  %v6615_v9 = vld [vmem:[%s6803_s21 + $0xc4] sm:$0xf] }
 0x154   : > { %v2450_v32 = vrot.slane %v2449_v20, 4  ;;  %v2514_v21 = vshll.u32 %v6615_v9, 16  ;;  %v2518_v31 = vshrl.u32 %v6615_v9, 16  ;;  %v2478_v25 = vrot.slane %v2476_v59, 5 }
 0x155   : > { %v2431_v47 = vsel %vm6822_vm2, %v2426_v2, %v2430_v62  ;;  %v2464_v15 = vrot.slane %v2463_v58, 4  ;;  %v2502_v62 = vrot.slane %v2500_v40, 5 }
 0x156   : > { %6167 = vmatmul.mubr.msk.bf16.gmra.mrb[12].mxu0 %vm764_vm3, %v5693_v36  ;;  %v2466_v36 = vshll.u32 %v6612_v19, 16  ;;  %v2455_v54 = vsel %vm6822_vm2, %v2450_v32, %v2454_v53  ;;  %v5413_v63 = vcombine.low %v2421_v48, %v2431_v47  ;;  %v2507_v19 = vrot.slane %v2505_v38, 4  ;;  %v8483_v47 = vld [vmem:[%s8651_s3] ss:$0 sm:$0xff] }
 0x157   : > { %6013 = vmatmul.mubr.msk.bf16.gmra.mrb[28].mxu1 %vm764_vm3, %v6558_v18  ;;  %6170 = vmatprep.mubr.msk.bf16.mxu0 %vm764_vm3, %v5694_v43  ;;  %v6613_v43 = vld [vmem:[%s6803_s21 + $0xb8] sm:$0xf]  ;;  %v2483_v18 = vrot.slane %v2481_v1, 4  ;;  %v2516_v60 = vrot.slane %v2514_v21, 5  ;;  %v2520_v11 = vrot.slane %v2518_v31, 4 }
 0x158   : > { %6034 = vmatprep.mubr.msk.bf16.mxu1 %vm764_vm3, %v5410_v0  ;;  %v2490_v10 = vshll.u32 %v6613_v43, 16  ;;  %v2494_v56 = vshrl.u32 %v6613_v43, 16  ;;  %v2468_v13 = vrot.slane %v2466_v36, 5  ;;  %v2486_v0 = vrot.slane %v2484_v46, 5 }
 0x159   : > { %v2510_v36 = vrot.slane %v2508_v17, 5 }
 0x15a   : > { %v2492_v57 = vrot.slane %v2490_v10, 5  ;;  %v2496_v26 = vrot.slane %v2494_v56, 4  ;;  %v2469_v1 = vsel %vm6822_vm2, %v2464_v15, %v2468_v13  ;;  %v2521_v10 = vor.u32 %v2520_v11, %v2516_v60 }
 0x15b   : > { %v2511_v43 = vor.u32 %v2510_v36, %v2507_v19 }
 0x15c   : > { %v2497_v44 = vor.u32 %v2496_v26, %v2492_v57  ;;  %v2522_v2 = vrot.slane %v2521_v10, 4  ;;  %v8478_v26 = vld [vmem:[%s8650_s2] ss:$0 sm:$0xff] }
 0x15d   : > { %v2512_v56 = vrot.slane %v2511_v43, 4 }
 0x15e   : > { %6171 = vmatmul.mubr.msk.bf16.gmra.mrb[16].mxu0 %vm764_vm3, %v5695_v61  ;;  %v2473_v61 = vor.u32 %v2472_v45, %v2468_v13  ;;  %v2498_v37 = vrot.slane %v2497_v44, 4  ;;  %v2527_v24 = vsel %vm6822_vm2, %v2522_v2, %v2526_v6 }
 0x15f   : > { %6035 = vmatmul.mubr.msk.bf16.vlgmr.msra.gmra.mrb[16].mxu1 %vm764_vm3, %v8180_v8  ;;  %6174 = vmatprep.mubr.msk.bf16.mxu0 %vm764_vm3, %v5696_v12  ;;  %v2487_v8 = vor.u32 %v2486_v0, %v2483_v18  ;;  %v5414_v12 = vcombine.low %v2445_v42, %v2455_v54  ;;  %v2517_v53 = vsel %vm6822_vm2, %v2512_v56, %v2516_v60 }
 0x160   : > { %6038 = vmatprep.mubr.msk.bf16.mxu1 %vm764_vm3, %v5412_v50  ;;  %v2474_v20 = vrot.slane %v2473_v61, 4  ;;  %v2503_v16 = vsel %vm6822_vm2, %v2498_v37, %v2502_v62  ;;  %v5417_v32 = vcombine.low %v2517_v53, %v2527_v24 }
 0x161   : > { %v2488_v14 = vrot.slane %v2487_v8, 4 }
 0x162   : > { %v2479_v46 = vsel %vm6822_vm2, %v2474_v20, %v2478_v25 }
 0x163   : > { %v5415_v34 = vcombine.low %v2469_v1, %v2479_v46 }
 0x166   : > { %6175 = vmatmul.mubr.msk.bf16.gmra.mrb[20].mxu0 %vm764_vm3, %v5697_v27  ;;  %v2493_v27 = vsel %vm6822_vm2, %v2488_v14, %v2492_v57 }
 0x167   : > { %6039 = vmatmul.mubr.msk.bf16.gmra.mrb[20].mxu1 %vm764_vm3, %v5413_v63  ;;  %6178 = vmatprep.mubr.msk.bf16.mxu0 %vm764_vm3, %v5698_v49  ;;  %v5416_v49 = vcombine.low %v2493_v27, %v2503_v16 }
 0x168   : > { %6042 = vmatprep.mubr.msk.bf16.mxu1 %vm764_vm3, %v5414_v12 }
 0x16e   : > { %6179 = vmatmul.mubr.msk.bf16.gmra.mrb[24].mxu0 %vm764_vm3, %v5699_v30 }
 0x16f   : > { %6043 = vmatmul.mubr.msk.bf16.gmra.mrb[24].mxu1 %vm764_vm3, %v5415_v34  ;;  %6182 = vmatprep.mubr.msk.bf16.mxu0 %vm764_vm3, %v5700_v35 }
 0x170   : > { %6046 = vmatprep.mubr.msk.bf16.mxu1 %vm764_vm3, %v5416_v49 }
 0x176   : > { %6183 = vmatmul.mubr.msk.bf16.gmra.mrb[28].mxu0 %vm764_vm3, %v5701_v22 }
 0x177   : > { %6047 = vmatmul.mubr.msk.bf16.gmra.mrb[28].mxu1 %vm764_vm3, %v5417_v32 }
 0x1f2   : > { %v5986_v55 = vpop.f32.mrb[0].mxu1 }
 0x1f3   : > { %v1937_v29 = vpop.f32.mrb[1].mxu1 }
 0x1f4   : > { %v5987_v30 = vpop.f32.mrb[2].mxu1 }
 0x1f5   : > { %v1940_v3 = vpop.f32.mrb[3].mxu1 }
 0x1fa   : > { %v5990_v39 = vpop.f32.mrb[4].mxu1 }
 0x1fb   : > { %v1953_v35 = vpop.f32.mrb[5].mxu1 }
 0x1fc   : > { %v5991_v23 = vpop.f32.mrb[6].mxu1 }
 0x1fd   : > { %v1956_v13 = vpop.f32.mrb[7].mxu1 }
 0x202   : > { %v5994_v45 = vpop.f32.mrb[8].mxu1 }
 0x203   : > { %v1969_v28 = vpop.f32.mrb[9].mxu1 }
 0x204   : > { %v8462_v50 = vpop.f32.mrb[10].mxu1 }
 0x205   : > { %v8464_v18 = vpop.f32.mrb[11].mxu1 }
 0x20a   : > { %v8466_v7 = vpop.f32.mrb[12].mxu1 }
 0x20b   : > { %v8468_v52 = vpop.f32.mrb[13].mxu1 }
 0x20c   : > { %v8470_v22 = vpop.f32.mrb[14].mxu1 }
 0x20d   : > { %v8472_v0 = vpop.f32.mrb[15].mxu1 }
 0x211   : > { %v6156_v57 = vpop.f32.mrb[0].mxu0 }
 0x212   : > { %v6188_v4 = vadd.f32 %v6156_v57, %v5986_v55  ;;  %v4711_v48 = vpop.f32.mrb[1].mxu0 }
 0x213   : > { %v6189_v42 = vadd.f32 %v4711_v48, %v1937_v29  ;;  %v6157_v54 = vpop.f32.mrb[2].mxu0 }
 0x214   : > { %v4879_v58 = vmul.f32 %v6188_v4, %v8478_v26  ;;  %v6190_v61 = vadd.f32 %v6157_v54, %v5987_v30  ;;  %v4714_v41 = vpop.f32.mrb[3].mxu0 }
 0x215   : > { %v4877_v59 = vmul.f32 %v6189_v42, %v8478_v26  ;;  %v6191_v38 = vadd.f32 %v4714_v41, %v1940_v3 }
 0x216   : > { %v4918_v17 = vadd.f32 %v8483_v47, %v4879_v58  ;;  %v4880_v9 = vmul.f32 %v6190_v61, %v8478_v26 }
 0x217   : > { %v4916_v21 = vadd.f32 %v8483_v47, %v4877_v59  ;;  %v4878_v31 = vmul.f32 %v6191_v38, %v8478_v26 }
 0x218   : > { %v4950_v8 = vmax.f32 %v4918_v17, 0.0  ;;  %v4919_v44 = vadd.f32 %v8483_v47, %v4880_v9 }
 0x219   : > { %v4948_v33 = vmax.f32 %v4916_v21, 0.0  ;;  %v4917_v40 = vadd.f32 %v8483_v47, %v4878_v31  ;;  %v6160_v63 = vpop.f32.mrb[4].mxu0 }
 0x21a   : > { %4982 = vst [vmem:[%s8495_s30 + $0x10] sm:$0xff] %v4950_v8  ;;  %v4951_v12 = vmax.f32 %v4919_v44, 0.0  ;;  %v6192_v15 = vadd.f32 %v6160_v63, %v5990_v39  ;;  %v4727_v20 = vpop.f32.mrb[5].mxu0 }
 0x21b   : > { %4980 = vst [vmem:[%s8495_s30] sm:$0xff] %v4948_v33  ;;  %v4949_v25 = vmax.f32 %v4917_v40, 0.0  ;;  %v6193_v19 = vadd.f32 %v4727_v20, %v1953_v35  ;;  %v6161_v36 = vpop.f32.mrb[6].mxu0 }
 0x21c   : > { %4983 = vst [vmem:[%s8495_s30 + $0x18] sm:$0xff] %v4951_v12  ;;  %v4883_v60 = vmul.f32 %v6192_v15, %v8478_v26  ;;  %v6194_v11 = vadd.f32 %v6161_v36, %v5991_v23  ;;  %v4730_v14 = vpop.f32.mrb[7].mxu0 }
 0x21d   : > { %4981 = vst [vmem:[%s8495_s30 + $0x8] sm:$0xff] %v4949_v25  ;;  %v4881_v37 = vmul.f32 %v6193_v19, %v8478_v26  ;;  %v6195_v62 = vadd.f32 %v4730_v14, %v1956_v13 }
 0x21e   : > { %v4922_v1 = vadd.f32 %v8483_v47, %v4883_v60  ;;  %v4884_v46 = vmul.f32 %v6194_v11, %v8478_v26 }
 0x21f   : > { %v4920_v43 = vadd.f32 %v8483_v47, %v4881_v37  ;;  %v4882_v10 = vmul.f32 %v6195_v62, %v8478_v26 }
 0x220   : > { %v4954_v51 = vmax.f32 %v4922_v1, 0.0  ;;  %v4923_v5 = vadd.f32 %v8483_v47, %v4884_v46 }
 0x221   : > { %v4952_v27 = vmax.f32 %v4920_v43, 0.0  ;;  %v4921_v16 = vadd.f32 %v8483_v47, %v4882_v10  ;;  %v6164_v34 = vpop.f32.mrb[8].mxu0 }
 0x222   : > { %4986 = vst [vmem:[%s8495_s30 + $0x30] sm:$0xff] %v4954_v51  ;;  %v4955_v49 = vmax.f32 %v4923_v5, 0.0  ;;  %v6196_v56 = vadd.f32 %v6164_v34, %v5994_v45  ;;  %v4743_v2 = vpop.f32.mrb[9].mxu0 }
 0x223   : > { %4984 = vst [vmem:[%s8495_s30 + $0x20] sm:$0xff] %v4952_v27  ;;  %v4953_v6 = vmax.f32 %v4921_v16, 0.0  ;;  %v6197_v53 = vadd.f32 %v4743_v2, %v1969_v28  ;;  %v6165_v24 = vpop.f32.mrb[10].mxu0 }
 0x224   : > { %4987 = vst [vmem:[%s8495_s30 + $0x38] sm:$0xff] %v4955_v49  ;;  %v4887_v32 = vmul.f32 %v6196_v56, %v8478_v26  ;;  %v6198_v55 = vadd.f32 %v6165_v24, %v8462_v50  ;;  %v4746_v29 = vpop.f32.mrb[11].mxu0 }
 0x225   : > { %4985 = vst [vmem:[%s8495_s30 + $0x28] sm:$0xff] %v4953_v6  ;;  %v4885_v30 = vmul.f32 %v6197_v53, %v8478_v26  ;;  %v6199_v3 = vadd.f32 %v4746_v29, %v8464_v18 }
 0x226   : > { %v4926_v39 = vadd.f32 %v8483_v47, %v4887_v32  ;;  %v4888_v35 = vmul.f32 %v6198_v55, %v8478_v26 }
 0x227   : > { %v4924_v23 = vadd.f32 %v8483_v47, %v4885_v30  ;;  %v4886_v13 = vmul.f32 %v6199_v3, %v8478_v26 }
 0x228   : > { %v4958_v45 = vmax.f32 %v4926_v39, 0.0  ;;  %v4927_v28 = vadd.f32 %v8483_v47, %v4888_v35 }
 0x229   : > { %v4956_v50 = vmax.f32 %v4924_v23, 0.0  ;;  %v4925_v57 = vadd.f32 %v8483_v47, %v4886_v13  ;;  %v6168_v4 = vpop.f32.mrb[12].mxu0 }
 0x22a   : > { %4990 = vst [vmem:[%s8495_s30 + $0x50] sm:$0xff] %v4958_v45  ;;  %v4959_v48 = vmax.f32 %v4927_v28, 0.0  ;;  %v6200_v18 = vadd.f32 %v6168_v4, %v8466_v7  ;;  %v4759_v42 = vpop.f32.mrb[13].mxu0 }
 0x22b   : > { %4988 = vst [vmem:[%s8495_s30 + $0x40] sm:$0xff] %v4956_v50  ;;  %v4957_v54 = vmax.f32 %v4925_v57, 0.0  ;;  %v6201_v58 = vadd.f32 %v4759_v42, %v8468_v52  ;;  %v6169_v61 = vpop.f32.mrb[14].mxu0 }
 0x22c   : > { %4991 = vst [vmem:[%s8495_s30 + $0x58] sm:$0xff] %v4959_v48  ;;  %v4891_v41 = vmul.f32 %v6200_v18, %v8478_v26  ;;  %v6202_v59 = vadd.f32 %v6169_v61, %v8470_v22  ;;  %v4762_v38 = vpop.f32.mrb[15].mxu0 }
 0x22d   : > { %4989 = vst [vmem:[%s8495_s30 + $0x48] sm:$0xff] %v4957_v54  ;;  %v4889_v17 = vmul.f32 %v6201_v58, %v8478_v26  ;;  %v6203_v9 = vadd.f32 %v4762_v38, %v8472_v0 }
 0x22e   : > { %v4930_v7 = vadd.f32 %v8483_v47, %v4891_v41  ;;  %v4892_v21 = vmul.f32 %v6202_v59, %v8478_v26 }
 0x22f   : > { %v4928_v52 = vadd.f32 %v8483_v47, %v4889_v17  ;;  %v4890_v31 = vmul.f32 %v6203_v9, %v8478_v26 }
 0x230   : > { %v4962_v8 = vmax.f32 %v4930_v7, 0.0  ;;  %v4931_v44 = vadd.f32 %v8483_v47, %v4892_v21 }
 0x231   : > { %v4960_v22 = vmax.f32 %v4928_v52, 0.0  ;;  %v4929_v33 = vadd.f32 %v8483_v47, %v4890_v31  ;;  %v6172_v40 = vpop.f32.mrb[16].mxu0 }
 0x232   : > { %4994 = vst [vmem:[%s8495_s30 + $0x70] sm:$0xff] %v4962_v8  ;;  %v4963_v63 = vmax.f32 %v4931_v44, 0.0  ;;  %v6036_v0 = vpop.f32.mrb[16].mxu1  ;;  %v4775_v12 = vpop.f32.mrb[17].mxu0 }
 0x233   : > { %4992 = vst [vmem:[%s8495_s30 + $0x60] sm:$0xff] %v4960_v22  ;;  %v4961_v15 = vmax.f32 %v4929_v33, 0.0  ;;  %v6204_v20 = vadd.f32 %v6172_v40, %v6036_v0  ;;  %v2731_v25 = vpop.f32.mrb[17].mxu1  ;;  %v6173_v19 = vpop.f32.mrb[18].mxu0 }
 0x234   : > { %4995 = vst [vmem:[%s8495_s30 + $0x78] sm:$0xff] %v4963_v63  ;;  %v6205_v36 = vadd.f32 %v4775_v12, %v2731_v25  ;;  %v6037_v60 = vpop.f32.mrb[18].mxu1  ;;  %v4778_v11 = vpop.f32.mrb[19].mxu0 }
 0x235   : > { %4993 = vst [vmem:[%s8495_s30 + $0x68] sm:$0xff] %v4961_v15  ;;  %v4895_v14 = vmul.f32 %v6204_v20, %v8478_v26  ;;  %v6206_v37 = vadd.f32 %v6173_v19, %v6037_v60  ;;  %v2734_v62 = vpop.f32.mrb[19].mxu1 }
 0x236   : > { %v4893_v1 = vmul.f32 %v6205_v36, %v8478_v26  ;;  %v6207_v46 = vadd.f32 %v4778_v11, %v2734_v62 }
 0x237   : > { %v4934_v43 = vadd.f32 %v8483_v47, %v4895_v14  ;;  %v4896_v10 = vmul.f32 %v6206_v37, %v8478_v26 }
 0x238   : > { %v4932_v51 = vadd.f32 %v8483_v47, %v4893_v1  ;;  %v4894_v5 = vmul.f32 %v6207_v46, %v8478_v26 }
 0x239   : > { %v4966_v27 = vmax.f32 %v4934_v43, 0.0  ;;  %v4935_v16 = vadd.f32 %v8483_v47, %v4896_v10  ;;  %v6176_v34 = vpop.f32.mrb[20].mxu0 }
 0x23a   : > { %v4964_v49 = vmax.f32 %v4932_v51, 0.0  ;;  %v4933_v56 = vadd.f32 %v8483_v47, %v4894_v5  ;;  %v6040_v2 = vpop.f32.mrb[20].mxu1  ;;  %v4791_v6 = vpop.f32.mrb[21].mxu0 }
 0x23b   : > { %4998 = vst [vmem:[%s8495_s30 + $0x90] sm:$0xff] %v4966_v27  ;;  %v4967_v53 = vmax.f32 %v4935_v16, 0.0  ;;  %v6208_v24 = vadd.f32 %v6176_v34, %v6040_v2  ;;  %v2747_v32 = vpop.f32.mrb[21].mxu1  ;;  %v6177_v55 = vpop.f32.mrb[22].mxu0 }
 0x23c   : > { %4996 = vst [vmem:[%s8495_s30 + $0x80] sm:$0xff] %v4964_v49  ;;  %v4965_v29 = vmax.f32 %v4933_v56, 0.0  ;;  %v6209_v30 = vadd.f32 %v4791_v6, %v2747_v32  ;;  %v6041_v3 = vpop.f32.mrb[22].mxu1  ;;  %v4794_v39 = vpop.f32.mrb[23].mxu0 }
 0x23d   : > { %4999 = vst [vmem:[%s8495_s30 + $0x98] sm:$0xff] %v4967_v53  ;;  %v4899_v35 = vmul.f32 %v6208_v24, %v8478_v26  ;;  %v6210_v23 = vadd.f32 %v6177_v55, %v6041_v3  ;;  %v2750_v13 = vpop.f32.mrb[23].mxu1 }
 0x23e   : > { %4997 = vst [vmem:[%s8495_s30 + $0x88] sm:$0xff] %v4965_v29  ;;  %v4897_v45 = vmul.f32 %v6209_v30, %v8478_v26  ;;  %v6211_v28 = vadd.f32 %v4794_v39, %v2750_v13 }
 0x23f   : > { %v4938_v50 = vadd.f32 %v8483_v47, %v4899_v35  ;;  %v4900_v57 = vmul.f32 %v6210_v23, %v8478_v26 }
 0x240   : > { %v4936_v4 = vadd.f32 %v8483_v47, %v4897_v45  ;;  %v4898_v48 = vmul.f32 %v6211_v28, %v8478_v26 }
 0x241   : > { %v4970_v18 = vmax.f32 %v4938_v50, 0.0  ;;  %v4939_v42 = vadd.f32 %v8483_v47, %v4900_v57  ;;  %v6180_v54 = vpop.f32.mrb[24].mxu0 }
 0x242   : > { %v4968_v58 = vmax.f32 %v4936_v4, 0.0  ;;  %v4937_v61 = vadd.f32 %v8483_v47, %v4898_v48  ;;  %v6044_v41 = vpop.f32.mrb[24].mxu1  ;;  %v4807_v59 = vpop.f32.mrb[25].mxu0 }
 0x243   : > { %5002 = vst [vmem:[%s8495_s30 + $0xb0] sm:$0xff] %v4970_v18  ;;  %v4971_v38 = vmax.f32 %v4939_v42, 0.0  ;;  %v6212_v17 = vadd.f32 %v6180_v54, %v6044_v41  ;;  %v2763_v9 = vpop.f32.mrb[25].mxu1  ;;  %v6181_v7 = vpop.f32.mrb[26].mxu0 }
 0x244   : > { %5000 = vst [vmem:[%s8495_s30 + $0xa0] sm:$0xff] %v4968_v58  ;;  %v4969_v21 = vmax.f32 %v4937_v61, 0.0  ;;  %v6213_v52 = vadd.f32 %v4807_v59, %v2763_v9  ;;  %v6045_v31 = vpop.f32.mrb[26].mxu1  ;;  %v4810_v8 = vpop.f32.mrb[27].mxu0 }
 0x245   : > { %5003 = vst [vmem:[%s8495_s30 + $0xb8] sm:$0xff] %v4971_v38  ;;  %v4903_v44 = vmul.f32 %v6212_v17, %v8478_v26  ;;  %v6214_v22 = vadd.f32 %v6181_v7, %v6045_v31  ;;  %v2766_v33 = vpop.f32.mrb[27].mxu1 }
 0x246   : > { %5001 = vst [vmem:[%s8495_s30 + $0xa8] sm:$0xff] %v4969_v21  ;;  %v4901_v40 = vmul.f32 %v6213_v52, %v8478_v26  ;;  %v6215_v63 = vadd.f32 %v4810_v8, %v2766_v33 }
 0x247   : > { %v4942_v0 = vadd.f32 %v8483_v47, %v4903_v44  ;;  %v4904_v12 = vmul.f32 %v6214_v22, %v8478_v26 }
 0x248   : > { %v4940_v15 = vadd.f32 %v8483_v47, %v4901_v40  ;;  %v4902_v20 = vmul.f32 %v6215_v63, %v8478_v26 }
 0x249   : > { %v4974_v25 = vmax.f32 %v4942_v0, 0.0  ;;  %v4943_v19 = vadd.f32 %v8483_v47, %v4904_v12  ;;  %v6184_v36 = vpop.f32.mrb[28].mxu0 }
 0x24a   : > { %v4972_v60 = vmax.f32 %v4940_v15, 0.0  ;;  %v4941_v11 = vadd.f32 %v8483_v47, %v4902_v20  ;;  %v6048_v14 = vpop.f32.mrb[28].mxu1  ;;  %v4823_v37 = vpop.f32.mrb[29].mxu0 }
 0x24b   : > { %5006 = vst [vmem:[%s8495_s30 + $0xd0] sm:$0xff] %v4974_v25  ;;  %v4975_v62 = vmax.f32 %v4943_v19, 0.0  ;;  %v6216_v1 = vadd.f32 %v6184_v36, %v6048_v14  ;;  %v2779_v46 = vpop.f32.mrb[29].mxu1  ;;  %v6185_v43 = vpop.f32.mrb[30].mxu0 }
 0x24c   : > { %5004 = vst [vmem:[%s8495_s30 + $0xc0] sm:$0xff] %v4972_v60  ;;  %v4973_v10 = vmax.f32 %v4941_v11, 0.0  ;;  %v6217_v51 = vadd.f32 %v4823_v37, %v2779_v46  ;;  %v6049_v5 = vpop.f32.mrb[30].mxu1  ;;  %v4826_v27 = vpop.f32.mrb[31].mxu0 }
 0x24d   : > { %5007 = vst [vmem:[%s8495_s30 + $0xd8] sm:$0xff] %v4975_v62  ;;  %v4907_v16 = vmul.f32 %v6216_v1, %v8478_v26  ;;  %v6218_v34 = vadd.f32 %v6185_v43, %v6049_v5  ;;  %v2782_v49 = vpop.f32.mrb[31].mxu1 }
 0x24e   : > { %5005 = vst [vmem:[%s8495_s30 + $0xc8] sm:$0xff] %v4973_v10  ;;  %v4905_v56 = vmul.f32 %v6217_v51, %v8478_v26  ;;  %v6219_v2 = vadd.f32 %v4826_v27, %v2782_v49 }
 0x24f   : > { %v4946_v6 = vadd.f32 %v8483_v47, %v4907_v16  ;;  %v4908_v53 = vmul.f32 %v6218_v34, %v8478_v26 }
 0x250   : > { %v4944_v24 = vadd.f32 %v8483_v47, %v4905_v56  ;;  %v4906_v32 = vmul.f32 %v6219_v2, %v8478_v26 }
 0x251   : > { %v4978_v55 = vmax.f32 %v4946_v6, 0.0  ;;  %v4947_v29 = vadd.f32 %v8483_v47, %v4908_v53 }
 0x252   : > { %v4976_v30 = vmax.f32 %v4944_v24, 0.0  ;;  %v4945_v3 = vadd.f32 %v8483_v47, %v4906_v32 }
 0x253   : > { %5010 = vst [vmem:[%s8495_s30 + $0xf0] sm:$0xff] %v4978_v55  ;;  %v4979_v39 = vmax.f32 %v4947_v29, 0.0 }
 0x254   : > { %5008 = vst [vmem:[%s8495_s30 + $0xe0] sm:$0xff] %v4976_v30  ;;  %v4977_v26 = vmax.f32 %v4945_v3, 0.0 }
 0x255   : > { %5011 = vst [vmem:[%s8495_s30 + $0xf8] sm:$0xff] %v4979_v39 }
 0x256   : > { %5009 = vst [vmem:[%s8495_s30 + $0xe8] sm:$0xff] %v4977_v26 }
 0x257   : > { %6631 = shalt.err (!%p6628_p5)
}
 0x258   : > { %s6632_s14 = scalar_lea.hbm %s8593_s9, 4096  ;;  %s6636_s24 = scalar_lea.hbm %s8652_s4, 8192 }
 0x259   : > { %p6633_p6 = scmp.ne.s32.totalorder %s8593_s9, %s6632_s14  ;;  %p6637_p10 = scmp.lt.u32.totalorder %s8593_s9, %s8652_s4 }
 0x25a   : > { %p6638_p11 = scmp.lt.u32.totalorder %s6636_s24, %s6632_s14  ;;  %p6640_p13 = scmp.lt.u32.totalorder %s6632_s14, %s8593_s9 }
 0x25b   : > { %p6634_p7 = pnand %p6633_p6, %p6766_p4 }
 0x25c   : > { %p6639_p12 = por %p6638_p11, %p6637_p10 }
 0x25d   : > { %p6635_p9 = pneg %p6634_p7 }
 0x25e   : > { %p6641_p0 = por %p6640_p13, %p6639_p12 }
 0x260   : > { %p6642_p1 = pnand %p6641_p0, %p6635_p9 }
 0x262   : > { %6645 = shalt.err (!%p6642_p1)
}
 0x263   : > { %s6699_s30 = smov 128   ;;  %s6700_s5 = smov 8  }
 0x264   : > { %6445 = dma.vmem_to_hbm [thread:$0]  (%p6766_p4), %s8595_s6, 4096, %s8593_s9, %s8602_s18, %s6699_s30, %s6699_s30, %s6700_s5  }
 0x265 PF: > { %p6451_p2 = scmp.ge.s32.totalorder %s6696_s20, 2  ;;  %s5045_s7 = sand.u32 1, %s6676_s15  }
 0x266   : > { %s5046_s8 = scalar_lea.sflag [#allocation3], %s5045_s7 }
 0x267   : > { %p6448_p3 = pnand %p6451_p2, %p6773_p8 }
 0x269   : > { %6671 = dma.done.wait (!%p6448_p3), %s5046_s8, 4096  }
 0x26a   : > { %6673 = vsyncadd (!%p6448_p3), %s5046_s8, 4294963200  ;;  %s17_s20 = sadd.s32 1, %s6696_s20   ;;  %s8719_s15 = smov %s6680_s16 }
 0x26b   : > { %p14_p5 = scmp.ge.s32.totalorder %s17_s20, 4   ;;  %s8720_s16 = smov %s6684_s17 }
 0x26c   : > { %s8721_s17 = smov %s6779_s28  ;;  %s8722_s18 = smov %s6692_s19 }
 0x26d   : > { %s8723_s19 = smov %s8725_s23  ;;  %16 = sbr.rel (!%p14_p5) target bundleno = 4 (0x4), region = 91 }
 0x274   :  { %5051 = vsyncpa [#allocation3], 1 }
 0x275   :  { %5053 = vsyncpa [#allocation3 + $0x1], 1 }

</bundles_post_ra>
